<compile_context>
chip_gen: v7x
topology: tpu7x:2x2x1
jax: 0.10.0
libtpu: 0.0.40
codegen_flags: <defaults>
</compile_context>

<pallas_src>
import functools

import jax
import jax.numpy as jnp
from jax.experimental import pallas as pl
from jax.experimental.pallas import tpu as pltpu

EPS = 1e-5


# ----------------------------- Fused Pallas kernel -------------------------------

def _bottleneck_kernel(x_ref, w1_ref, b1_ref, w2_ref, b2_ref, w3_ref, b3_ref,
                       m1_ref, m2_ref, m3_ref, wl_ref, wr_ref,
                       o_ref, h1pad_ref, *, H, W, TOP):
    """Whole bottleneck for one batch image, everything resident in VMEM.

    x_ref      : (1, HW, CIN)  f32   input (also the residual)
    w1/w2/w3   : bf16 weights with the BN scale folded into the output columns
                 (w2_ref is (9, P, P), tap k = ky*3 + kx)
    b1/b2/b3   : (1, Cout) f32 folded BN bias
    m1/m2/m3   : (HW, 1) f32 dense spatial masks
    wl/wr      : (HW, 1) f32 horizontal-boundary masks for the shifted 3x3 taps
    h1pad_ref  : (TOP + HW + TOP, P) f32 scratch, zero rows above/below act as the
                 vertical halo of the 3x3 conv.
    """
    HW = H * W

    x = x_ref[0]                                    # (HW, CIN) f32, kept for residual
    xb = x.astype(jnp.bfloat16)

    # ---- stage 1: 1x1 conv (BN scale folded) + bias + mask + relu -------------
    h1 = jnp.dot(xb, w1_ref[...], preferred_element_type=jnp.float32)   # (HW, P)
    h1 = jnp.maximum((h1 + b1_ref[...]) * m1_ref[...], 0.0)

    # write h1 into the zero-padded flat scratch (pads stay zero -> vertical halo)
    h1pad_ref[...] = jnp.zeros(h1pad_ref.shape, h1pad_ref.dtype)
    h1pad_ref[TOP:TOP + HW, :] = h1

    # ---- stage 2: 3x3 conv as 9 shifted (HW, P) @ (P, P) matmuls, f32 accum ---
    def tap_sum(ox):
        acc = None
        for oy in (-1, 0, 1):
            s = TOP + oy * W + ox                   # static row offset into the scratch
            k = (oy + 1) * 3 + (ox + 1)             # matches OIHW tap (ky, kx)
            tap = h1pad_ref[s:s + HW, :].astype(jnp.bfloat16)
            c = jnp.dot(tap, w2_ref[k], preferred_element_type=jnp.float32)
            acc = c if acc is None else acc + c
        return acc

    h2 = tap_sum(0) + wl_ref[...] * tap_sum(-1) + wr_ref[...] * tap_sum(1)
    h2 = jnp.maximum((h2 + b2_ref[...]) * m2_ref[...], 0.0)

    # ---- stage 3: 1x1 conv + bias + mask + residual + relu --------------------
    h3 = jnp.dot(h2.astype(jnp.bfloat16), w3_ref[...],
                 preferred_element_type=jnp.float32)                    # (HW, 4P)
    h3 = (h3 + b3_ref[...]) * m3_ref[...]
    o_ref[0] = jnp.maximum(h3 + x, 0.0)


# ----------------------------- Bottleneck forward --------------------------------

def bottleneck_forward(x_nchw, p):
    N, CIN, H, W = x_nchw.shape
    P = p["w1"].shape[0]          # planes
    COUT = 4 * P
    HW = H * W
    assert CIN == COUT, "identity residual requires inplanes == planes * 4"

    # NCHW -> flattened NHWC (glue; a composed network would stay NHWC end-to-end)
    x2d = jnp.transpose(x_nchw, (0, 2, 3, 1)).reshape(N, HW, CIN).astype(jnp.float32)

    def fold_bn(i):
        scale = p[f"gamma{i}"] / jnp.sqrt(p[f"var{i}"] + EPS)
        bias = p[f"beta{i}"] - p[f"mean{i}"] * scale
        return scale.astype(jnp.float32), bias.astype(jnp.float32)

    s1, b1 = fold_bn(1)
    s2, b2 = fold_bn(2)
    s3, b3 = fold_bn(3)

    # BN scale folded into weight output-columns; weights cast to bf16 for the MXU.
    w1 = (jnp.transpose(p["w1"][:, :, 0, 0], (1, 0)) * s1[None, :]).astype(jnp.bfloat16)   # (CIN, P)
    w3 = (jnp.transpose(p["w3"][:, :, 0, 0], (1, 0)) * s3[None, :]).astype(jnp.bfloat16)   # (P, 4P)
    w2 = jnp.transpose(p["w2"], (2, 3, 1, 0)).reshape(9, P, P)                              # (ky*3+kx, in, out)
    w2 = (w2 * s2[None, None, :]).astype(jnp.bfloat16)

    b1 = b1.reshape(1, P)
    b2 = b2.reshape(1, P)
    b3 = b3.reshape(1, COUT)

    m1 = p["mask1"].reshape(HW, 1).astype(jnp.float32)
    m2 = p["mask2"].reshape(HW, 1).astype(jnp.float32)
    m3 = p["mask3"].reshape(HW, 1).astype(jnp.float32)

    # Horizontal-boundary masks: zero the shifted-tap contributions that would
    # wrap across image rows in the flattened HW layout.
    wcol = jnp.arange(HW, dtype=jnp.int32) % W
    wl = (wcol > 0).astype(jnp.float32).reshape(HW, 1)        # valid rows for ox = -1
    wr = (wcol < W - 1).astype(jnp.float32).reshape(HW, 1)    # valid rows for ox = +1

    TOP = ((W + 1 + 15) // 16) * 16          # aligned top pad covering the vertical halo
    ROWS = TOP + HW + TOP

    kernel = functools.partial(_bottleneck_kernel, H=H, W=W, TOP=TOP)

    out2d = pl.pallas_call(
        kernel,
        out_shape=jax.ShapeDtypeStruct((N, HW, COUT), jnp.float32),
        grid=(N,),
        in_specs=[
            pl.BlockSpec((1, HW, CIN), lambda b: (b, 0, 0)),   # x (also residual)
            pl.BlockSpec((CIN, P), lambda b: (0, 0)),          # w1 (scale folded)
            pl.BlockSpec((1, P), lambda b: (0, 0)),            # b1
            pl.BlockSpec((9, P, P), lambda b: (0, 0, 0)),      # w2 taps (scale folded)
            pl.BlockSpec((1, P), lambda b: (0, 0)),            # b2
            pl.BlockSpec((P, COUT), lambda b: (0, 0)),         # w3 (scale folded)
            pl.BlockSpec((1, COUT), lambda b: (0, 0)),         # b3
            pl.BlockSpec((HW, 1), lambda b: (0, 0)),           # mask1
            pl.BlockSpec((HW, 1), lambda b: (0, 0)),           # mask2
            pl.BlockSpec((HW, 1), lambda b: (0, 0)),           # mask3
            pl.BlockSpec((HW, 1), lambda b: (0, 0)),           # wl
            pl.BlockSpec((HW, 1), lambda b: (0, 0)),           # wr
        ],
        out_specs=pl.BlockSpec((1, HW, COUT), lambda b: (b, 0, 0)),
        scratch_shapes=[pltpu.VMEM((ROWS, P), jnp.float32)],   # padded h1, VMEM-resident
        compiler_params=pltpu.CompilerParams(
            dimension_semantics=("parallel",),
            vmem_limit_bytes=32 * 1024 * 1024,
        ),
    )(x2d, w1, b1, w2, b2, w3, b3, m1, m2, m3, wl, wr)

    # flattened NHWC -> NCHW (glue to preserve the module's NCHW interface)
    return jnp.transpose(out2d.reshape(N, H, W, COUT), (0, 3, 1, 2))


# ----------------------------- Pure-JAX reference (PyTorch semantics) ------------

def reference_forward(x, p):
    def conv(inp, w, padding=0):
        return jax.lax.conv_general_dilated(
            inp, w, (1, 1), [(padding, padding)] * 2,
            dimension_numbers=("NCHW", "OIHW", "NCHW"),
            precision=jax.lax.Precision.HIGHEST)

    def bn(inp, i):
        g = p[f"gamma{i}"][None, :, None, None]
        b = p[f"beta{i}"][None, :, None, None]
        m = p[f"mean{i}"][None, :, None, None]
        v = p[f"var{i}"][None, :, None, None]
        return (inp - m) / jnp.sqrt(v + EPS) * g + b

    out = jax.nn.relu(bn(conv(x, p["w1"]), 1) * p["mask1"])            # (H,W) mask broadcasts
    out = jax.nn.relu(bn(conv(out, p["w2"], padding=1), 2) * p["mask2"])
    out = bn(conv(out, p["w3"]), 3) * p["mask3"]
    return jax.nn.relu(out + x)


# ----------------------------- Deterministic parameter init ----------------------

def init_params(key, inplanes, planes, H, W):
    ks = jax.random.split(key, 20)

    def kaiming(k, shape, fan_in):
        return jax.random.normal(k, shape, jnp.float32) * jnp.sqrt(2.0 / fan_in)

    p = {}
    p["w1"] = kaiming(ks[0], (planes, inplanes, 1, 1), inplanes)
    p["w2"] = kaiming(ks[1], (planes, planes, 3, 3), planes * 9)
    p["w3"] = kaiming(ks[2], (planes * 4, planes, 1, 1), planes)

    for i, c in enumerate([planes, planes, planes * 4]):
        p[f"gamma{i + 1}"] = 1.0 + 0.1 * jax.random.normal(ks[3 + i], (c,), jnp.float32)
        p[f"beta{i + 1}"] = 0.1 * jax.random.normal(ks[6 + i], (c,), jnp.float32)
        p[f"mean{i + 1}"] = 0.1 * jax.random.normal(ks[9 + i], (c,), jnp.float32)
        p[f"var{i + 1}"] = 1.0 + 0.1 * jnp.abs(jax.random.normal(ks[12 + i], (c,), jnp.float32))

    # DenseMaskBlock2D.initial(): ones + 0.08 * kaiming_normal (fan_in = last dim for 2D)
    for i in range(3):
        p[f"mask{i + 1}"] = 1.0 + 0.08 * kaiming(ks[15 + i], (H, W), W)
    return p


# ----------------------------- Main ----------------------------------------------

if __name__ == "__main__":
    N, PLANES, H, W = 2, 4, 16, 16
    INPLANES = PLANES * 4          # identity residual path (downsample=None, stride=1)

    key = jax.random.PRNGKey(0)
    kx, kp = jax.random.split(key)
    x = jax.random.normal(kx, (N, INPLANES, H, W), jnp.float32)
    params = init_params(kp, INPLANES, PLANES, H, W)

    out = bottleneck_forward(x, params)
    out = jax.block_until_ready(out)

    ref = reference_forward(x, params)
    assert out.shape == ref.shape == (N, INPLANES, H, W)
    # Tolerance accounts for bf16 MXU matmuls vs the f32 HIGHEST-precision reference.
    err = float(jnp.max(jnp.abs(out - ref) / (1.0 + jnp.abs(ref))))
    assert err < 1e-1, f"mismatch vs reference: {err}"

    print("KERNEL_OK")
</pallas_src>

<mosaic_0001>
module attributes {stable_mosaic.version = 11 : i64} {
  func.func @_bottleneck_kernel(%arg0: i32, %arg1: memref<1x256x16xf32, #tpu.memory_space<vmem>>, %arg2: memref<16x4xbf16, #tpu.memory_space<vmem>>, %arg3: memref<1x4xf32, #tpu.memory_space<vmem>>, %arg4: memref<9x4x4xbf16, #tpu.memory_space<vmem>>, %arg5: memref<1x4xf32, #tpu.memory_space<vmem>>, %arg6: memref<4x16xbf16, #tpu.memory_space<vmem>>, %arg7: memref<1x16xf32, #tpu.memory_space<vmem>>, %arg8: memref<256x1xf32, #tpu.memory_space<vmem>>, %arg9: memref<256x1xf32, #tpu.memory_space<vmem>>, %arg10: memref<256x1xf32, #tpu.memory_space<vmem>>, %arg11: memref<256x1xf32, #tpu.memory_space<vmem>>, %arg12: memref<256x1xf32, #tpu.memory_space<vmem>>, %arg13: memref<1x256x16xf32, #tpu.memory_space<vmem>>, %arg14: memref<320x4xf32, #tpu.memory_space<vmem>>) attributes {dimension_semantics = [#tpu.dimension_semantics<parallel>], iteration_bounds = array<i64: 2>, scalar_prefetch = 0 : i64, scratch_operands = 1 : i64, tpu.core_type = #tpu.core_type<tc>, window_params = [{transform_indices = @transform_0, window_bounds = array<i64: 1, 256, 16>}, {pipeline_mode = #tpu.pipeline_mode<synchronous>, transform_indices = @transform_1, window_bounds = array<i64: 16, 4>}, {pipeline_mode = #tpu.pipeline_mode<synchronous>, transform_indices = @transform_2, window_bounds = array<i64: 1, 4>}, {pipeline_mode = #tpu.pipeline_mode<synchronous>, transform_indices = @transform_3, window_bounds = array<i64: 9, 4, 4>}, {pipeline_mode = #tpu.pipeline_mode<synchronous>, transform_indices = @transform_4, window_bounds = array<i64: 1, 4>}, {pipeline_mode = #tpu.pipeline_mode<synchronous>, transform_indices = @transform_5, window_bounds = array<i64: 4, 16>}, {pipeline_mode = #tpu.pipeline_mode<synchronous>, transform_indices = @transform_6, window_bounds = array<i64: 1, 16>}, {pipeline_mode = #tpu.pipeline_mode<synchronous>, transform_indices = @transform_7, window_bounds = array<i64: 256, 1>}, {pipeline_mode = #tpu.pipeline_mode<synchronous>, transform_indices = @transform_8, window_bounds = array<i64: 256, 1>}, {pipeline_mode = #tpu.pipeline_mode<synchronous>, transform_indices = @transform_9, window_bounds = array<i64: 256, 1>}, {pipeline_mode = #tpu.pipeline_mode<synchronous>, transform_indices = @transform_10, window_bounds = array<i64: 256, 1>}, {pipeline_mode = #tpu.pipeline_mode<synchronous>, transform_indices = @transform_11, window_bounds = array<i64: 256, 1>}, {transform_indices = @transform_12, window_bounds = array<i64: 1, 256, 16>}]} {
    %c0 = arith.constant 0 : index
    %c0_0 = arith.constant 0 : index
    %c0_1 = arith.constant 0 : index
    %0 = vector.load %arg1[%c0, %c0_0, %c0_1] : memref<1x256x16xf32, #tpu.memory_space<vmem>>, vector<1x256x16xf32>
    %1 = vector.shape_cast %0 : vector<1x256x16xf32> to vector<256x16xf32>
    %2 = arith.truncf %1 : vector<256x16xf32> to vector<256x16xbf16>
    %c0_2 = arith.constant 0 : index
    %c0_3 = arith.constant 0 : index
    %3 = vector.load %arg2[%c0_2, %c0_3] : memref<16x4xbf16, #tpu.memory_space<vmem>>, vector<16x4xbf16>
    %cst = arith.constant dense<0.000000e+00> : vector<256x4xf32>
    %4 = tpu.matmul %2, %3, %cst {dimension_numbers = #tpu.dot_dimension_numbers<[1], [0], [0], [1], [0, 0, 1, 1], [], []>} : vector<256x16xbf16>, vector<16x4xbf16>, vector<256x4xf32> -> vector<256x4xf32>
    %c0_4 = arith.constant 0 : index
    %c0_5 = arith.constant 0 : index
    %5 = vector.load %arg3[%c0_4, %c0_5] : memref<1x4xf32, #tpu.memory_space<vmem>>, vector<1x4xf32>
    %6 = vector.broadcast %5 : vector<1x4xf32> to vector<256x4xf32>
    %7 = arith.addf %4, %6 : vector<256x4xf32>
    %c0_6 = arith.constant 0 : index
    %c0_7 = arith.constant 0 : index
    %8 = vector.load %arg8[%c0_6, %c0_7] : memref<256x1xf32, #tpu.memory_space<vmem>>, vector<256x1xf32>
    %9 = vector.broadcast %8 : vector<256x1xf32> to vector<256x4xf32>
    %10 = arith.mulf %7, %9 : vector<256x4xf32>
    %cst_8 = arith.constant 0.000000e+00 : f32
    %11 = vector.broadcast %cst_8 : f32 to vector<256x4xf32>
    %12 = arith.maximumf %10, %11 : vector<256x4xf32>
    %cst_9 = arith.constant 0.000000e+00 : f32
    %13 = vector.broadcast %cst_9 : f32 to vector<320x4xf32>
    %c0_10 = arith.constant 0 : index
    %c0_11 = arith.constant 0 : index
    %14 = vector.load %arg14[%c0_10, %c0_11] : memref<320x4xf32, #tpu.memory_space<vmem>>, vector<320x4xf32>
    tpu.vector_store %arg14[%c0_10, %c0_11], %13 {strides = array<i32>} : memref<320x4xf32, #tpu.memory_space<vmem>>, vector<320x4xf32>,
    %c32 = arith.constant 32 : index
    %c0_12 = arith.constant 0 : index
    %15 = vector.load %arg14[%c32, %c0_12] : memref<320x4xf32, #tpu.memory_space<vmem>>, vector<256x4xf32>
    tpu.vector_store %arg14[%c32, %c0_12], %12 {strides = array<i32>} : memref<320x4xf32, #tpu.memory_space<vmem>>, vector<256x4xf32>,
    %c16 = arith.constant 16 : index
    %c0_13 = arith.constant 0 : index
    %16 = vector.load %arg14[%c16, %c0_13] : memref<320x4xf32, #tpu.memory_space<vmem>>, vector<256x4xf32>
    %17 = arith.truncf %16 : vector<256x4xf32> to vector<256x4xbf16>
    %c1 = arith.constant 1 : index
    %c0_14 = arith.constant 0 : index
    %c0_15 = arith.constant 0 : index
    %18 = vector.load %arg4[%c1, %c0_14, %c0_15] : memref<9x4x4xbf16, #tpu.memory_space<vmem>>, vector<1x4x4xbf16>
    %19 = vector.shape_cast %18 : vector<1x4x4xbf16> to vector<4x4xbf16>
    %cst_16 = arith.constant dense<0.000000e+00> : vector<256x4xf32>
    %20 = tpu.matmul %17, %19, %cst_16 {dimension_numbers = #tpu.dot_dimension_numbers<[1], [0], [0], [1], [0, 0, 1, 1], [], []>} : vector<256x4xbf16>, vector<4x4xbf16>, vector<256x4xf32> -> vector<256x4xf32>
    %c32_17 = arith.constant 32 : index
    %c0_18 = arith.constant 0 : index
    %21 = vector.load %arg14[%c32_17, %c0_18] : memref<320x4xf32, #tpu.memory_space<vmem>>, vector<256x4xf32>
    %22 = arith.truncf %21 : vector<256x4xf32> to vector<256x4xbf16>
    %c4 = arith.constant 4 : index
    %c0_19 = arith.constant 0 : index
    %c0_20 = arith.constant 0 : index
    %23 = vector.load %arg4[%c4, %c0_19, %c0_20] : memref<9x4x4xbf16, #tpu.memory_space<vmem>>, vector<1x4x4xbf16>
    %24 = vector.shape_cast %23 : vector<1x4x4xbf16> to vector<4x4xbf16>
    %cst_21 = arith.constant dense<0.000000e+00> : vector<256x4xf32>
    %25 = tpu.matmul %22, %24, %cst_21 {dimension_numbers = #tpu.dot_dimension_numbers<[1], [0], [0], [1], [0, 0, 1, 1], [], []>} : vector<256x4xbf16>, vector<4x4xbf16>, vector<256x4xf32> -> vector<256x4xf32>
    %26 = arith.addf %20, %25 : vector<256x4xf32>
    %c48 = arith.constant 48 : index
    %c0_22 = arith.constant 0 : index
    %27 = vector.load %arg14[%c48, %c0_22] : memref<320x4xf32, #tpu.memory_space<vmem>>, vector<256x4xf32>
    %28 = arith.truncf %27 : vector<256x4xf32> to vector<256x4xbf16>
    %c7 = arith.constant 7 : index
    %c0_23 = arith.constant 0 : index
    %c0_24 = arith.constant 0 : index
    %29 = vector.load %arg4[%c7, %c0_23, %c0_24] : memref<9x4x4xbf16, #tpu.memory_space<vmem>>, vector<1x4x4xbf16>
    %30 = vector.shape_cast %29 : vector<1x4x4xbf16> to vector<4x4xbf16>
    %cst_25 = arith.constant dense<0.000000e+00> : vector<256x4xf32>
    %31 = tpu.matmul %28, %30, %cst_25 {dimension_numbers = #tpu.dot_dimension_numbers<[1], [0], [0], [1], [0, 0, 1, 1], [], []>} : vector<256x4xbf16>, vector<4x4xbf16>, vector<256x4xf32> -> vector<256x4xf32>
    %32 = arith.addf %26, %31 : vector<256x4xf32>
    %c0_26 = arith.constant 0 : index
    %c0_27 = arith.constant 0 : index
    %33 = vector.load %arg11[%c0_26, %c0_27] : memref<256x1xf32, #tpu.memory_space<vmem>>, vector<256x1xf32>
    %c15 = arith.constant 15 : index
    %c0_28 = arith.constant 0 : index
    %34 = vector.load %arg14[%c15, %c0_28] : memref<320x4xf32, #tpu.memory_space<vmem>>, vector<256x4xf32>
    %35 = arith.truncf %34 : vector<256x4xf32> to vector<256x4xbf16>
    %c0_29 = arith.constant 0 : index
    %c0_30 = arith.constant 0 : index
    %c0_31 = arith.constant 0 : index
    %36 = vector.load %arg4[%c0_29, %c0_30, %c0_31] : memref<9x4x4xbf16, #tpu.memory_space<vmem>>, vector<1x4x4xbf16>
    %37 = vector.shape_cast %36 : vector<1x4x4xbf16> to vector<4x4xbf16>
    %cst_32 = arith.constant dense<0.000000e+00> : vector<256x4xf32>
    %38 = tpu.matmul %35, %37, %cst_32 {dimension_numbers = #tpu.dot_dimension_numbers<[1], [0], [0], [1], [0, 0, 1, 1], [], []>} : vector<256x4xbf16>, vector<4x4xbf16>, vector<256x4xf32> -> vector<256x4xf32>
    %c31 = arith.constant 31 : index
    %c0_33 = arith.constant 0 : index
    %39 = vector.load %arg14[%c31, %c0_33] : memref<320x4xf32, #tpu.memory_space<vmem>>, vector<256x4xf32>
    %40 = arith.truncf %39 : vector<256x4xf32> to vector<256x4xbf16>
    %c3 = arith.constant 3 : index
    %c0_34 = arith.constant 0 : index
    %c0_35 = arith.constant 0 : index
    %41 = vector.load %arg4[%c3, %c0_34, %c0_35] : memref<9x4x4xbf16, #tpu.memory_space<vmem>>, vector<1x4x4xbf16>
    %42 = vector.shape_cast %41 : vector<1x4x4xbf16> to vector<4x4xbf16>
    %cst_36 = arith.constant dense<0.000000e+00> : vector<256x4xf32>
    %43 = tpu.matmul %40, %42, %cst_36 {dimension_numbers = #tpu.dot_dimension_numbers<[1], [0], [0], [1], [0, 0, 1, 1], [], []>} : vector<256x4xbf16>, vector<4x4xbf16>, vector<256x4xf32> -> vector<256x4xf32>
    %44 = arith.addf %38, %43 : vector<256x4xf32>
    %c47 = arith.constant 47 : index
    %c0_37 = arith.constant 0 : index
    %45 = vector.load %arg14[%c47, %c0_37] : memref<320x4xf32, #tpu.memory_space<vmem>>, vector<256x4xf32>
    %46 = arith.truncf %45 : vector<256x4xf32> to vector<256x4xbf16>
    %c6 = arith.constant 6 : index
    %c0_38 = arith.constant 0 : index
    %c0_39 = arith.constant 0 : index
    %47 = vector.load %arg4[%c6, %c0_38, %c0_39] : memref<9x4x4xbf16, #tpu.memory_space<vmem>>, vector<1x4x4xbf16>
    %48 = vector.shape_cast %47 : vector<1x4x4xbf16> to vector<4x4xbf16>
    %cst_40 = arith.constant dense<0.000000e+00> : vector<256x4xf32>
    %49 = tpu.matmul %46, %48, %cst_40 {dimension_numbers = #tpu.dot_dimension_numbers<[1], [0], [0], [1], [0, 0, 1, 1], [], []>} : vector<256x4xbf16>, vector<4x4xbf16>, vector<256x4xf32> -> vector<256x4xf32>
    %50 = arith.addf %44, %49 : vector<256x4xf32>
    %51 = vector.broadcast %33 : vector<256x1xf32> to vector<256x4xf32>
    %52 = arith.mulf %51, %50 : vector<256x4xf32>
    %53 = arith.addf %32, %52 : vector<256x4xf32>
    %c0_41 = arith.constant 0 : index
    %c0_42 = arith.constant 0 : index
    %54 = vector.load %arg12[%c0_41, %c0_42] : memref<256x1xf32, #tpu.memory_space<vmem>>, vector<256x1xf32>
    %c17 = arith.constant 17 : index
    %c0_43 = arith.constant 0 : index
    %55 = vector.load %arg14[%c17, %c0_43] : memref<320x4xf32, #tpu.memory_space<vmem>>, vector<256x4xf32>
    %56 = arith.truncf %55 : vector<256x4xf32> to vector<256x4xbf16>
    %c2 = arith.constant 2 : index
    %c0_44 = arith.constant 0 : index
    %c0_45 = arith.constant 0 : index
    %57 = vector.load %arg4[%c2, %c0_44, %c0_45] : memref<9x4x4xbf16, #tpu.memory_space<vmem>>, vector<1x4x4xbf16>
    %58 = vector.shape_cast %57 : vector<1x4x4xbf16> to vector<4x4xbf16>
    %cst_46 = arith.constant dense<0.000000e+00> : vector<256x4xf32>
    %59 = tpu.matmul %56, %58, %cst_46 {dimension_numbers = #tpu.dot_dimension_numbers<[1], [0], [0], [1], [0, 0, 1, 1], [], []>} : vector<256x4xbf16>, vector<4x4xbf16>, vector<256x4xf32> -> vector<256x4xf32>
    %c33 = arith.constant 33 : index
    %c0_47 = arith.constant 0 : index
    %60 = vector.load %arg14[%c33, %c0_47] : memref<320x4xf32, #tpu.memory_space<vmem>>, vector<256x4xf32>
    %61 = arith.truncf %60 : vector<256x4xf32> to vector<256x4xbf16>
    %c5 = arith.constant 5 : index
    %c0_48 = arith.constant 0 : index
    %c0_49 = arith.constant 0 : index
    %62 = vector.load %arg4[%c5, %c0_48, %c0_49] : memref<9x4x4xbf16, #tpu.memory_space<vmem>>, vector<1x4x4xbf16>
    %63 = vector.shape_cast %62 : vector<1x4x4xbf16> to vector<4x4xbf16>
    %cst_50 = arith.constant dense<0.000000e+00> : vector<256x4xf32>
    %64 = tpu.matmul %61, %63, %cst_50 {dimension_numbers = #tpu.dot_dimension_numbers<[1], [0], [0], [1], [0, 0, 1, 1], [], []>} : vector<256x4xbf16>, vector<4x4xbf16>, vector<256x4xf32> -> vector<256x4xf32>
    %65 = arith.addf %59, %64 : vector<256x4xf32>
    %c49 = arith.constant 49 : index
    %c0_51 = arith.constant 0 : index
    %66 = vector.load %arg14[%c49, %c0_51] : memref<320x4xf32, #tpu.memory_space<vmem>>, vector<256x4xf32>
    %67 = arith.truncf %66 : vector<256x4xf32> to vector<256x4xbf16>
    %c8 = arith.constant 8 : index
    %c0_52 = arith.constant 0 : index
    %c0_53 = arith.constant 0 : index
    %68 = vector.load %arg4[%c8, %c0_52, %c0_53] : memref<9x4x4xbf16, #tpu.memory_space<vmem>>, vector<1x4x4xbf16>
    %69 = vector.shape_cast %68 : vector<1x4x4xbf16> to vector<4x4xbf16>
    %cst_54 = arith.constant dense<0.000000e+00> : vector<256x4xf32>
    %70 = tpu.matmul %67, %69, %cst_54 {dimension_numbers = #tpu.dot_dimension_numbers<[1], [0], [0], [1], [0, 0, 1, 1], [], []>} : vector<256x4xbf16>, vector<4x4xbf16>, vector<256x4xf32> -> vector<256x4xf32>
    %71 = arith.addf %65, %70 : vector<256x4xf32>
    %72 = vector.broadcast %54 : vector<256x1xf32> to vector<256x4xf32>
    %73 = arith.mulf %72, %71 : vector<256x4xf32>
    %74 = arith.addf %53, %73 : vector<256x4xf32>
    %c0_55 = arith.constant 0 : index
    %c0_56 = arith.constant 0 : index
    %75 = vector.load %arg5[%c0_55, %c0_56] : memref<1x4xf32, #tpu.memory_space<vmem>>, vector<1x4xf32>
    %76 = vector.broadcast %75 : vector<1x4xf32> to vector<256x4xf32>
    %77 = arith.addf %74, %76 : vector<256x4xf32>
    %c0_57 = arith.constant 0 : index
    %c0_58 = arith.constant 0 : index
    %78 = vector.load %arg9[%c0_57, %c0_58] : memref<256x1xf32, #tpu.memory_space<vmem>>, vector<256x1xf32>
    %79 = vector.broadcast %78 : vector<256x1xf32> to vector<256x4xf32>
    %80 = arith.mulf %77, %79 : vector<256x4xf32>
    %cst_59 = arith.constant 0.000000e+00 : f32
    %81 = vector.broadcast %cst_59 : f32 to vector<256x4xf32>
    %82 = arith.maximumf %80, %81 : vector<256x4xf32>
    %83 = arith.truncf %82 : vector<256x4xf32> to vector<256x4xbf16>
    %c0_60 = arith.constant 0 : index
    %c0_61 = arith.constant 0 : index
    %84 = vector.load %arg6[%c0_60, %c0_61] : memref<4x16xbf16, #tpu.memory_space<vmem>>, vector<4x16xbf16>
    %cst_62 = arith.constant dense<0.000000e+00> : vector<256x16xf32>
    %85 = tpu.matmul %83, %84, %cst_62 {dimension_numbers = #tpu.dot_dimension_numbers<[1], [0], [0], [1], [0, 0, 1, 1], [], []>} : vector<256x4xbf16>, vector<4x16xbf16>, vector<256x16xf32> -> vector<256x16xf32>
    %c0_63 = arith.constant 0 : index
    %c0_64 = arith.constant 0 : index
    %86 = vector.load %arg7[%c0_63, %c0_64] : memref<1x16xf32, #tpu.memory_space<vmem>>, vector<1x16xf32>
    %87 = vector.broadcast %86 : vector<1x16xf32> to vector<256x16xf32>
    %88 = arith.addf %85, %87 : vector<256x16xf32>
    %c0_65 = arith.constant 0 : index
    %c0_66 = arith.constant 0 : index
    %89 = vector.load %arg10[%c0_65, %c0_66] : memref<256x1xf32, #tpu.memory_space<vmem>>, vector<256x1xf32>
    %90 = vector.broadcast %89 : vector<256x1xf32> to vector<256x16xf32>
    %91 = arith.mulf %88, %90 : vector<256x16xf32>
    %92 = arith.addf %91, %1 : vector<256x16xf32>
    %cst_67 = arith.constant 0.000000e+00 : f32
    %93 = vector.broadcast %cst_67 : f32 to vector<256x16xf32>
    %94 = arith.maximumf %92, %93 : vector<256x16xf32>
    %c0_68 = arith.constant 0 : index
    %c0_69 = arith.constant 0 : index
    %c0_70 = arith.constant 0 : index
    %95 = vector.load %arg13[%c0_68, %c0_69, %c0_70] : memref<1x256x16xf32, #tpu.memory_space<vmem>>, vector<1x256x16xf32>
    %96 = vector.shape_cast %95 : vector<1x256x16xf32> to vector<256x16xf32>
    %97 = vector.shape_cast %94 : vector<256x16xf32> to vector<1x256x16xf32>
    tpu.vector_store %arg13[%c0_68, %c0_69, %c0_70], %97 {strides = array<i32>} : memref<1x256x16xf32, #tpu.memory_space<vmem>>, vector<1x256x16xf32>,
    return
  }
  func.func @transform_0(%arg0: i32) -> (i32, i32, i32) {
    %c0_i32 = arith.constant 0 : i32
    %c0_i32_0 = arith.constant 0 : i32
    %c0_i32_1 = arith.constant 0 : i32
    return %arg0, %c0_i32, %c0_i32_0 : i32, i32, i32
  }
  func.func @transform_1(%arg0: i32) -> (i32, i32) {
    %c0_i32 = arith.constant 0 : i32
    %c0_i32_0 = arith.constant 0 : i32
    %c0_i32_1 = arith.constant 0 : i32
    return %c0_i32, %c0_i32_0 : i32, i32
  }
  func.func @transform_2(%arg0: i32) -> (i32, i32) {
    %c0_i32 = arith.constant 0 : i32
    %c0_i32_0 = arith.constant 0 : i32
    %c0_i32_1 = arith.constant 0 : i32
    return %c0_i32, %c0_i32_0 : i32, i32
  }
  func.func @transform_3(%arg0: i32) -> (i32, i32, i32) {
    %c0_i32 = arith.constant 0 : i32
    %c0_i32_0 = arith.constant 0 : i32
    %c0_i32_1 = arith.constant 0 : i32
    %c0_i32_2 = arith.constant 0 : i32
    return %c0_i32, %c0_i32_0, %c0_i32_1 : i32, i32, i32
  }
  func.func @transform_4(%arg0: i32) -> (i32, i32) {
    %c0_i32 = arith.constant 0 : i32
    %c0_i32_0 = arith.constant 0 : i32
    %c0_i32_1 = arith.constant 0 : i32
    return %c0_i32, %c0_i32_0 : i32, i32
  }
  func.func @transform_5(%arg0: i32) -> (i32, i32) {
    %c0_i32 = arith.constant 0 : i32
    %c0_i32_0 = arith.constant 0 : i32
    %c0_i32_1 = arith.constant 0 : i32
    return %c0_i32, %c0_i32_0 : i32, i32
  }
  func.func @transform_6(%arg0: i32) -> (i32, i32) {
    %c0_i32 = arith.constant 0 : i32
    %c0_i32_0 = arith.constant 0 : i32
    %c0_i32_1 = arith.constant 0 : i32
    return %c0_i32, %c0_i32_0 : i32, i32
  }
  func.func @transform_7(%arg0: i32) -> (i32, i32) {
    %c0_i32 = arith.constant 0 : i32
    %c0_i32_0 = arith.constant 0 : i32
    %c0_i32_1 = arith.constant 0 : i32
    return %c0_i32, %c0_i32_0 : i32, i32
  }
  func.func @transform_8(%arg0: i32) -> (i32, i32) {
    %c0_i32 = arith.constant 0 : i32
    %c0_i32_0 = arith.constant 0 : i32
    %c0_i32_1 = arith.constant 0 : i32
    return %c0_i32, %c0_i32_0 : i32, i32
  }
  func.func @transform_9(%arg0: i32) -> (i32, i32) {
    %c0_i32 = arith.constant 0 : i32
    %c0_i32_0 = arith.constant 0 : i32
    %c0_i32_1 = arith.constant 0 : i32
    return %c0_i32, %c0_i32_0 : i32, i32
  }
  func.func @transform_10(%arg0: i32) -> (i32, i32) {
    %c0_i32 = arith.constant 0 : i32
    %c0_i32_0 = arith.constant 0 : i32
    %c0_i32_1 = arith.constant 0 : i32
    return %c0_i32, %c0_i32_0 : i32, i32
  }
  func.func @transform_11(%arg0: i32) -> (i32, i32) {
    %c0_i32 = arith.constant 0 : i32
    %c0_i32_0 = arith.constant 0 : i32
    %c0_i32_1 = arith.constant 0 : i32
    return %c0_i32, %c0_i32_0 : i32, i32
  }
  func.func @transform_12(%arg0: i32) -> (i32, i32, i32) {
    %c0_i32 = arith.constant 0 : i32
    %c0_i32_0 = arith.constant 0 : i32
    %c0_i32_1 = arith.constant 0 : i32
    return %arg0, %c0_i32, %c0_i32_0 : i32, i32, i32
  }
}

</mosaic_0001>

<bundles_post_ra>
// kernel: tpu_custom_call.1
= control target key start
LH: loop header
LB: loop body
LE: loop exit
PB: predicated region body
PF: predicated region fallthrough
CT: control target
= control target key end

     0   :  { %s5706_s21 = smov 0   ;;  %s7600_s0 = inlined_call_operand.vmem [shape: f32[2,256,16], index: 0, kind: input, shape index: {}]   ;;  %s7601_s1 = inlined_call_operand.vmem [shape: bf16[16,4], index: 1, kind: input, shape index: {}]   ;;  %s7602_s2 = inlined_call_operand.vmem [shape: f32[1,4], index: 2, kind: input, shape index: {}]   ;;  %s7603_s3 = inlined_call_operand.vmem [shape: bf16[9,4,4], index: 3, kind: input, shape index: {}]   ;;  %s7604_s4 = inlined_call_operand.vmem [shape: f32[1,4], index: 4, kind: input, shape index: {}]   ;;  %s7605_s5 = inlined_call_operand.vmem [shape: bf16[4,16], index: 5, kind: input, shape index: {}]   ;;  %s7606_s6 = inlined_call_operand.vmem [shape: f32[1,16], index: 6, kind: input, shape index: {}]   ;;  %s7607_s7 = inlined_call_operand.vmem [shape: f32[256,1], index: 7, kind: input, shape index: {}]   ;;  %s7608_s8 = inlined_call_operand.vmem [shape: f32[256,1], index: 8, kind: input, shape index: {}]   ;;  %s7609_s9 = inlined_call_operand.vmem [shape: f32[256,1], index: 9, kind: input, shape index: {}]   ;;  %s7610_s10 = inlined_call_operand.vmem [shape: f32[256,1], index: 10, kind: input, shape index: {}]   ;;  %s7611_s11 = inlined_call_operand.vmem [shape: f32[256,1], index: 11, kind: input, shape index: {}]   ;;  %s7612_s12 = inlined_call_operand.vmem [shape: f32[2,256,16], index: 12, kind: output, shape index: {}]  }
   0x1 LB: > { %s4619_s22 = sadd.s32 4294967295, %s5637_s21   ;;  %p4623_p0 = scmp.ge.s32.totalorder %s5637_s21, 1  ;;  %s5637_s21 = sphi %s5706_s21, %s22_s21  }
   0x2   : > { %p362_p1 = scmp.lt.s32.totalorder %s5637_s21, 3 }
   0x4   : > { %p363_p2 = pnand %p4623_p0, %p362_p1 }
   0x6   : > { %366 = sbr.rel (%p363_p2) target bundleno = 1082 (0x43a), region = 68 }
   0xd   : > { %v706_v0 = vld [vmem:[%s7607_s7 + $0x90] sm:$0xff]  ;;  %v704_v1 = vld [vmem:[%s7607_s7 + $0x80] sm:$0xff]  ;;  %p404_p3 = scmp.lt.s32.totalorder %s4619_s22, 1  ;;  %v5639_v2 = vmov 0   ;;  %v707_v4 = vld [vmem:[%s7607_s7 + $0x98] sm:$0xff]  ;;  %vm478_vm0 = vcmask 130048  }
   0xe   : > { %5597 = vset.pattern.permute.xlu1 %v5639_v2  ;;  %5596 = vset.pattern.permute.xlu0 %v5639_v2  ;;  %v5598_v3 = vld [vmem:[%s7601_s1] sm:$0xff]   ;;  %v705_v5 = vld [vmem:[%s7607_s7 + $0x88] sm:$0xff]  ;;  %v711_v17 = vld [vmem:[%s7607_s7 + $0xb8] sm:$0xff]  ;;  %vm944_vm1 = vcmask 31744   ;;  %vm1120_vm2 = vcmask 1041408  }
   0xf   : > { %812 = vperm.xlu1 %5597, %v706_v0   ;;  %802 = vperm.xlu0 %5596, %v704_v1   ;;  %s7680_s22 = smov (!%p404_p3, %s4619_s22), 1  ;;  %v709_v6 = vld [vmem:[%s7607_s7 + $0xa8] sm:$0xff]  ;;  %v708_v7 = vld [vmem:[%s7607_s7 + $0xa0] sm:$0xff]  ;;  %v710_v18 = vld [vmem:[%s7607_s7 + $0xb0] sm:$0xff] }
  0x10   : > { %5007 = vmatprep.subr.bf16.mxu0 %v5598_v3  ;;  %s4818_s15 = sshll.u32 %s7680_s22, 8  ;;  %v713_v23 = vld [vmem:[%s7607_s7 + $0xc8] sm:$0xff]  ;;  %v712_v24 = vld [vmem:[%s7607_s7 + $0xc0] sm:$0xff]  ;;  %v715_v27 = vld [vmem:[%s7607_s7 + $0xd8] sm:$0xff] }
  0x11   : > { %5008 = vmatpush3.bf16.msra.mxu0 %v5598_v3  ;;  %s5737_s18 = scalar_lea.vmem %s7600_s0, %s4818_s15  ;;  %v714_v28 = vld [vmem:[%s7607_s7 + $0xd0] sm:$0xff]  ;;  %v717_v33 = vld [vmem:[%s7607_s7 + $0xe8] sm:$0xff]  ;;  %v716_v34 = vld [vmem:[%s7607_s7 + $0xe0] sm:$0xff]  ;;  %s7446_s25 = scalar_lea.vmem %s7612_s12, %s4818_s15 }
  0x12   : > { %v415_v8 = vld [vmem:[%s5737_s18] sm:$0xff]  ;;  %v416_v9 = vld [vmem:[%s5737_s18 + $0x8] sm:$0xff]  ;;  %v417_v10 = vld [vmem:[%s5737_s18 + $0x10] sm:$0xff] }
  0x13   : > { %817 = vperm.xlu1 %5597, %v707_v4   ;;  %807 = vperm.xlu0 %5596, %v705_v5   ;;  %v447_v11 = vpack.c.bf16 %v416_v9, %v415_v8  ;;  %v418_v12 = vld [vmem:[%s5737_s18 + $0x18] sm:$0xff]  ;;  %v419_v13 = vld [vmem:[%s5737_s18 + $0x20] sm:$0xff]  ;;  %v420_v14 = vld [vmem:[%s5737_s18 + $0x28] sm:$0xff] }
  0x14   : > { %v448_v15 = vpack.c.bf16 %v418_v12, %v417_v10  ;;  %v449_v16 = vpack.c.bf16 %v420_v14, %v419_v13  ;;  %v421_v19 = vld [vmem:[%s5737_s18 + $0x30] sm:$0xff]  ;;  %v422_v20 = vld [vmem:[%s5737_s18 + $0x38] sm:$0xff]  ;;  %v423_v21 = vld [vmem:[%s5737_s18 + $0x40] sm:$0xff] }
  0x15   : > { %5009 = vmatprep.mubr.msk.bf16.mxu0 %vm478_vm0, %v447_v11  ;;  %v424_v22 = vld [vmem:[%s5737_s18 + $0x48] sm:$0xff]  ;;  %v450_v25 = vpack.c.bf16 %v422_v20, %v421_v19  ;;  %v425_v29 = vld [vmem:[%s5737_s18 + $0x50] sm:$0xff]  ;;  %v426_v30 = vld [vmem:[%s5737_s18 + $0x58] sm:$0xff] }
  0x16   : > { %5010 = vmatmul.mubr.msk.bf16.vlgmr.msra.gmra.mrb[0].mxu0 %vm478_vm0, %v448_v15  ;;  %v451_v26 = vpack.c.bf16 %v424_v22, %v423_v21  ;;  %v427_v31 = vld [vmem:[%s5737_s18 + $0x60] sm:$0xff]  ;;  %v428_v32 = vld [vmem:[%s5737_s18 + $0x68] sm:$0xff]  ;;  %v452_v35 = vpack.c.bf16 %v426_v30, %v425_v29  ;;  %v719_v37 = vld [vmem:[%s7607_s7 + $0xf8] sm:$0xff] }
  0x17   : > { %827 = vperm.xlu1 %5597, %v709_v6   ;;  %822 = vperm.xlu0 %5596, %v708_v7   ;;  %v453_v36 = vpack.c.bf16 %v428_v32, %v427_v31  ;;  %v718_v38 = vld [vmem:[%s7607_s7 + $0xf0] sm:$0xff]  ;;  %v430_v40 = vld [vmem:[%s5737_s18 + $0x78] sm:$0xff]  ;;  %v431_v41 = vld [vmem:[%s5737_s18 + $0x80] sm:$0xff] }
  0x18   : > { %5013 = vmatprep.mubr.msk.bf16.mxu0 %vm478_vm0, %v449_v16  ;;  %v429_v39 = vld [vmem:[%s5737_s18 + $0x70] sm:$0xff]  ;;  %v432_v42 = vld [vmem:[%s5737_s18 + $0x88] sm:$0xff]  ;;  %v688_v44 = vld [vmem:[%s7607_s7] sm:$0xff] }
  0x19   : > { %v689_v43 = vld [vmem:[%s7607_s7 + $0x8] sm:$0xff]  ;;  %v454_v45 = vpack.c.bf16 %v430_v40, %v429_v39  ;;  %v455_v46 = vpack.c.bf16 %v432_v42, %v431_v41  ;;  %v691_v47 = vld [vmem:[%s7607_s7 + $0x18] sm:$0xff]  ;;  %v690_v48 = vld [vmem:[%s7607_s7 + $0x10] sm:$0xff] }
  0x1a   : > { %v433_v49 = vld [vmem:[%s5737_s18 + $0x90] sm:$0xff]  ;;  %v434_v50 = vld [vmem:[%s5737_s18 + $0x98] sm:$0xff]  ;;  %v435_v51 = vld [vmem:[%s5737_s18 + $0xa0] sm:$0xff] }
  0x1b   : > { %837 = vperm.xlu1 %5597, %v711_v17   ;;  %832 = vperm.xlu0 %5596, %v710_v18   ;;  %v436_v52 = vld [vmem:[%s5737_s18 + $0xa8] sm:$0xff]  ;;  %v692_v54 = vld [vmem:[%s7607_s7 + $0x20] sm:$0xff]  ;;  %v456_v55 = vpack.c.bf16 %v434_v50, %v433_v49  ;;  %v695_v57 = vld [vmem:[%s7607_s7 + $0x38] sm:$0xff] }
  0x1c   : > { %v693_v53 = vld [vmem:[%s7607_s7 + $0x28] sm:$0xff]  ;;  %v457_v56 = vpack.c.bf16 %v436_v52, %v435_v51  ;;  %v694_v58 = vld [vmem:[%s7607_s7 + $0x30] sm:$0xff]  ;;  %v438_v60 = vld [vmem:[%s5737_s18 + $0xb8] sm:$0xff] }
  0x1d   : > { %v437_v59 = vld [vmem:[%s5737_s18 + $0xb0] sm:$0xff]  ;;  %v439_v61 = vld [vmem:[%s5737_s18 + $0xc0] sm:$0xff]  ;;  %v440_v62 = vld [vmem:[%s5737_s18 + $0xc8] sm:$0xff] }
  0x1e   : > { %5014 = vmatmul.mubr.msk.bf16.gmra.mrb[4].mxu0 %vm478_vm0, %v450_v25  ;;  %v697_v63 = vld [vmem:[%s7607_s7 + $0x48] sm:$0xff]  ;;  %v696_v0 = vld [vmem:[%s7607_s7 + $0x40] sm:$0xff]  ;;  %v458_v1 = vpack.c.bf16 %v438_v60, %v437_v59  ;;  %v459_v2 = vpack.c.bf16 %v440_v62, %v439_v61  ;;  %v699_v3 = vld [vmem:[%s7607_s7 + $0x58] sm:$0xff] }
  0x1f   : > { %847 = vperm.xlu1 %5597, %v713_v23   ;;  %842 = vperm.xlu0 %5596, %v712_v24   ;;  %v698_v4 = vld [vmem:[%s7607_s7 + $0x50] sm:$0xff]  ;;  %v442_v6 = vld [vmem:[%s5737_s18 + $0xd8] sm:$0xff]  ;;  %v443_v7 = vld [vmem:[%s5737_s18 + $0xe0] sm:$0xff] }
  0x20   : > { %5017 = vmatprep.mubr.msk.bf16.mxu0 %vm478_vm0, %v451_v26  ;;  %v441_v5 = vld [vmem:[%s5737_s18 + $0xd0] sm:$0xff]  ;;  %v444_v8 = vld [vmem:[%s5737_s18 + $0xe8] sm:$0xff]  ;;  %v700_v10 = vld [vmem:[%s7607_s7 + $0x60] sm:$0xff] }
  0x21   : > { %v701_v9 = vld [vmem:[%s7607_s7 + $0x68] sm:$0xff]  ;;  %v460_v11 = vpack.c.bf16 %v442_v6, %v441_v5  ;;  %v461_v12 = vpack.c.bf16 %v444_v8, %v443_v7  ;;  %v703_v13 = vld [vmem:[%s7607_s7 + $0x78] sm:$0xff]  ;;  %v702_v14 = vld [vmem:[%s7607_s7 + $0x70] sm:$0xff] }
  0x22   : > { %v445_v15 = vld [vmem:[%s5737_s18 + $0xf0] sm:$0xff]  ;;  %v446_v16 = vld [vmem:[%s5737_s18 + $0xf8] sm:$0xff]  ;;  %v1747_v17 = vld [vmem:[%s7610_s10 + $0x8] sm:$0xff] }
  0x23   : > { %857 = vperm.xlu1 %5597, %v715_v27   ;;  %852 = vperm.xlu0 %5596, %v714_v28   ;;  %v1746_v18 = vld [vmem:[%s7610_s10] sm:$0xff]  ;;  %v462_v19 = vpack.c.bf16 %v446_v16, %v445_v15  ;;  %v1749_v20 = vld [vmem:[%s7610_s10 + $0x18] sm:$0xff]  ;;  %v1748_v21 = vld [vmem:[%s7610_s10 + $0x10] sm:$0xff] }
  0x24   : > { %v1751_v22 = vld [vmem:[%s7610_s10 + $0x28] sm:$0xff]  ;;  %v1750_v23 = vld [vmem:[%s7610_s10 + $0x20] sm:$0xff]  ;;  %v1753_v24 = vld [vmem:[%s7610_s10 + $0x38] sm:$0xff] }
  0x25   : > { %v1752_v25 = vld [vmem:[%s7610_s10 + $0x30] sm:$0xff]  ;;  %v1755_v26 = vld [vmem:[%s7610_s10 + $0x48] sm:$0xff]  ;;  %v1754_v27 = vld [vmem:[%s7610_s10 + $0x40] sm:$0xff] }
  0x26   : > { %5018 = vmatmul.mubr.msk.bf16.gmra.mrb[8].mxu0 %vm478_vm0, %v452_v35  ;;  %v1757_v28 = vld [vmem:[%s7610_s10 + $0x58] sm:$0xff]  ;;  %v1756_v29 = vld [vmem:[%s7610_s10 + $0x50] sm:$0xff]  ;;  %v1759_v30 = vld [vmem:[%s7610_s10 + $0x68] sm:$0xff] }
  0x27   : > { %867 = vperm.xlu1 %5597, %v717_v33   ;;  %862 = vperm.xlu0 %5596, %v716_v34   ;;  %v1758_v31 = vld [vmem:[%s7610_s10 + $0x60] sm:$0xff]  ;;  %v1761_v32 = vld [vmem:[%s7610_s10 + $0x78] sm:$0xff]  ;;  %v1760_v33 = vld [vmem:[%s7610_s10 + $0x70] sm:$0xff] }
  0x28   : > { %5021 = vmatprep.mubr.msk.bf16.mxu0 %vm478_vm0, %v453_v36  ;;  %v1763_v34 = vld [vmem:[%s7610_s10 + $0x88] sm:$0xff]  ;;  %v1762_v35 = vld [vmem:[%s7610_s10 + $0x80] sm:$0xff]  ;;  %v1765_v36 = vld [vmem:[%s7610_s10 + $0x98] sm:$0xff] }
  0x29   : > { %v1767_v39 = vld [vmem:[%s7610_s10 + $0xa8] sm:$0xff]  ;;  %v1766_v40 = vld [vmem:[%s7610_s10 + $0xa0] sm:$0xff]  ;;  %v1769_v41 = vld [vmem:[%s7610_s10 + $0xb8] sm:$0xff] }
  0x2a   : > { %v1768_v42 = vld [vmem:[%s7610_s10 + $0xb0] sm:$0xff]  ;;  %v1775_v49 = vld [vmem:[%s7610_s10 + $0xe8] sm:$0xff]  ;;  %v1774_v50 = vld [vmem:[%s7610_s10 + $0xe0] sm:$0xff] }
  0x2b   : > { %877 = vperm.xlu1 %5597, %v719_v37   ;;  %872 = vperm.xlu0 %5596, %v718_v38   ;;  %v1764_v37 = vld [vmem:[%s7610_s10 + $0x90] sm:$0xff]  ;;  %v5640_v38 = vmov 0.0   ;;  %v1777_v51 = vld [vmem:[%s7610_s10 + $0xf8] sm:$0xff]  ;;  %v3753_v5 = vld [vmem:[%s7608_s8 + $0x8] sm:$0xff] }
  0x2c   : > { %951 = vst.msk [vmem:[#allocation2 + $0x30] sm:$0xff] %vm944_vm1, %v5640_v38  ;;  %946 = vst.msk [vmem:[#allocation2 + $0x8] sm:$0xff] %vm944_vm1, %v5640_v38  ;;  %v1776_v52 = vld [vmem:[%s7610_s10 + $0xf0] sm:$0xff]  ;;  %v2736_v61 = vld [vmem:[%s7611_s11 + $0x38] sm:$0xff] }
  0x2d   : > { %947 = vst.msk [vmem:[#allocation2 + $0x10] sm:$0xff] %vm944_vm1, %v5640_v38  ;;  %948 = vst.msk [vmem:[#allocation2 + $0x18] sm:$0xff] %vm944_vm1, %v5640_v38  ;;  %v2735_v62 = vld [vmem:[%s7611_s11 + $0x30] sm:$0xff]  ;;  %v3756_v8 = vld [vmem:[%s7608_s8 + $0x20] sm:$0xff] }
  0x2e   : > { %5022 = vmatmul.mubr.msk.bf16.gmra.mrb[12].mxu0 %vm478_vm0, %v454_v45  ;;  %949 = vst.msk [vmem:[#allocation2 + $0x20] sm:$0xff] %vm944_vm1, %v5640_v38  ;;  %950 = vst.msk [vmem:[#allocation2 + $0x28] sm:$0xff] %vm944_vm1, %v5640_v38  ;;  %v1770_v45 = vld [vmem:[%s7610_s10 + $0xc0] sm:$0xff]  ;;  %v2738_v15 = vld [vmem:[%s7611_s11 + $0x48] sm:$0xff] }
  0x2f   : > { %727 = vperm.xlu1 %5597, %v689_v43   ;;  %722 = vperm.xlu0 %5596, %v688_v44   ;;  %952 = vst.msk [vmem:[#allocation2 + $0x38] sm:$0xff] %vm944_vm1, %v5640_v38  ;;  %953 = vst.msk [vmem:[#allocation2 + $0x40] sm:$0xff] %vm944_vm1, %v5640_v38  ;;  %v4647_v43 = vld [vmem:[%s7603_s3 + $0x8] sm:$0x3]  ;;  %v3759_v16 = vld [vmem:[%s7608_s8 + $0x38] sm:$0xff] }
  0x30   : > { %5025 = vmatprep.mubr.msk.bf16.mxu0 %vm478_vm0, %v455_v46  ;;  %954 = vst.msk [vmem:[#allocation2 + $0x48] sm:$0xff] %vm944_vm1, %v5640_v38  ;;  %955 = vst.msk [vmem:[#allocation2 + $0x50] sm:$0xff] %vm944_vm1, %v5640_v38  ;;  %v1771_v44 = vld [vmem:[%s7610_s10 + $0xc8] sm:$0xff]  ;;  %5575 = vmatprep.subr.msk.bf16.mxu0 %vm1120_vm2, %v4647_v43  ;;  %v1122_v46 = vsel %vm1120_vm2, %v4647_v43, 0 }
  0x31   : > { %956 = vst.msk [vmem:[#allocation2 + $0x58] sm:$0xff] %vm944_vm1, %v5640_v38  ;;  %957 = vst.msk [vmem:[#allocation2 + $0x60] sm:$0xff] %vm944_vm1, %v5640_v38  ;;  %5576 = vmatprep.subr.msk.bf16.mxu1 %vm1120_vm2, %v4647_v43  ;;  %5042 = vmatpush3.bf16.msra.mxu0 %v1122_v46 }
  0x32   : > { %958 = vst.msk [vmem:[#allocation2 + $0x68] sm:$0xff] %vm944_vm1, %v5640_v38  ;;  %959 = vst.msk [vmem:[#allocation2 + $0x70] sm:$0xff] %vm944_vm1, %v5640_v38  ;;  %5382 = vmatpush3.bf16.msra.mxu1 %v1122_v46  ;;  %v2747_v46 = vld [vmem:[%s7611_s11 + $0x90] sm:$0xff] }
  0x33   : > { %737 = vperm.xlu1 %5597, %v691_v47   ;;  %732 = vperm.xlu0 %5596, %v690_v48   ;;  %960 = vst.msk [vmem:[#allocation2 + $0x78] sm:$0xff] %vm944_vm1, %v5640_v38  ;;  %961 = vst.msk [vmem:[#allocation2 + $0x80] sm:$0xff] %vm944_vm1, %v5640_v38  ;;  %v1773_v47 = vld [vmem:[%s7610_s10 + $0xd8] sm:$0xff]  ;;  %v1772_v48 = vld [vmem:[%s7610_s10 + $0xd0] sm:$0xff] }
  0x34   : > { %962 = vst.msk [vmem:[#allocation2 + $0x88] sm:$0xff] %vm944_vm1, %v5640_v38  ;;  %963 = vst.msk [vmem:[#allocation2 + $0x90] sm:$0xff] %vm944_vm1, %v5640_v38 }
  0x35   : > { %964 = vst.msk [vmem:[#allocation2 + $0x98] sm:$0xff] %vm944_vm1, %v5640_v38  ;;  %965 = vst.msk [vmem:[#allocation2 + $0xa0] sm:$0xff] %vm944_vm1, %v5640_v38 }
  0x36   : > { %5026 = vmatmul.mubr.msk.bf16.gmra.mrb[16].mxu0 %vm478_vm0, %v456_v55  ;;  %966 = vst.msk [vmem:[#allocation2 + $0xa8] sm:$0xff] %vm944_vm1, %v5640_v38  ;;  %967 = vst.msk [vmem:[#allocation2 + $0xb0] sm:$0xff] %vm944_vm1, %v5640_v38  ;;  %v2732_v55 = vld [vmem:[%s7611_s11 + $0x18] sm:$0xff] }
  0x37   : > { %747 = vperm.xlu1 %5597, %v693_v53   ;;  %742 = vperm.xlu0 %5596, %v692_v54   ;;  %968 = vst.msk [vmem:[#allocation2 + $0xb8] sm:$0xff] %vm944_vm1, %v5640_v38  ;;  %969 = vst.msk [vmem:[#allocation2 + $0xc0] sm:$0xff] %vm944_vm1, %v5640_v38  ;;  %v2730_v53 = vld [vmem:[%s7611_s11 + $0x8] sm:$0xff]  ;;  %v2729_v54 = vld [vmem:[%s7611_s11] sm:$0xff] }
  0x38   : > { %5029 = vmatprep.mubr.msk.bf16.mxu0 %vm478_vm0, %v457_v56  ;;  %970 = vst.msk [vmem:[#allocation2 + $0xc8] sm:$0xff] %vm944_vm1, %v5640_v38  ;;  %971 = vst.msk [vmem:[#allocation2 + $0xd0] sm:$0xff] %vm944_vm1, %v5640_v38  ;;  %v2731_v56 = vld [vmem:[%s7611_s11 + $0x10] sm:$0xff] }
  0x39   : > { %972 = vst.msk [vmem:[#allocation2 + $0xd8] sm:$0xff] %vm944_vm1, %v5640_v38  ;;  %973 = vst.msk [vmem:[#allocation2 + $0xe0] sm:$0xff] %vm944_vm1, %v5640_v38 }
  0x3a   : > { %974 = vst.msk [vmem:[#allocation2 + $0xe8] sm:$0xff] %vm944_vm1, %v5640_v38  ;;  %975 = vst.msk [vmem:[#allocation2 + $0xf0] sm:$0xff] %vm944_vm1, %v5640_v38 }
  0x3b   : > { %757 = vperm.xlu1 %5597, %v695_v57   ;;  %752 = vperm.xlu0 %5596, %v694_v58   ;;  %976 = vst.msk [vmem:[#allocation2 + $0xf8] sm:$0xff] %vm944_vm1, %v5640_v38  ;;  %977 = vst.msk [vmem:[#allocation2 + $0x100] sm:$0xff] %vm944_vm1, %v5640_v38  ;;  %v2734_v57 = vld [vmem:[%s7611_s11 + $0x28] sm:$0xff]  ;;  %v2733_v58 = vld [vmem:[%s7611_s11 + $0x20] sm:$0xff] }
  0x3c   : > { %978 = vst.msk [vmem:[#allocation2 + $0x108] sm:$0xff] %vm944_vm1, %v5640_v38  ;;  %979 = vst.msk [vmem:[#allocation2 + $0x110] sm:$0xff] %vm944_vm1, %v5640_v38 }
  0x3d   : > { %980 = vst.msk [vmem:[#allocation2 + $0x118] sm:$0xff] %vm944_vm1, %v5640_v38  ;;  %981 = vst.msk [vmem:[#allocation2 + $0x120] sm:$0xff] %vm944_vm1, %v5640_v38 }
  0x3e   : > { %5030 = vmatmul.mubr.msk.bf16.gmra.mrb[20].mxu0 %vm478_vm0, %v458_v1  ;;  %982 = vst.msk [vmem:[#allocation2 + $0x128] sm:$0xff] %vm944_vm1, %v5640_v38  ;;  %983 = vst.msk [vmem:[#allocation2 + $0x130] sm:$0xff] %vm944_vm1, %v5640_v38  ;;  %v2737_v1 = vld [vmem:[%s7611_s11 + $0x40] sm:$0xff] }
  0x3f   : > { %767 = vperm.xlu1 %5597, %v697_v63   ;;  %762 = vperm.xlu0 %5596, %v696_v0   ;;  %v6042_v63 = vld [vmem:[%s7603_s3 + $0x6] sm:$0x3] }
  0x40   : > { %5033 = vmatprep.mubr.msk.bf16.mxu0 %vm478_vm0, %v459_v2  ;;  %v3752_v0 = vld [vmem:[%s7608_s8] sm:$0xff]  ;;  %5579 = vmatprep.subr.msk.bf16.mxu0 %vm1120_vm2, %v6042_v63 }
  0x43   : > { %777 = vperm.xlu1 %5597, %v699_v3   ;;  %772 = vperm.xlu0 %5596, %v698_v4   ;;  %v3754_v4 = vld [vmem:[%s7608_s8 + $0x10] sm:$0xff] }
  0x46   : > { %5034 = vmatmul.mubr.msk.bf16.gmra.mrb[24].mxu0 %vm478_vm0, %v460_v11  ;;  %v3758_v11 = vld [vmem:[%s7608_s8 + $0x30] sm:$0xff] }
  0x47   : > { %787 = vperm.xlu1 %5597, %v701_v9   ;;  %782 = vperm.xlu0 %5596, %v700_v10   ;;  %v3755_v9 = vld [vmem:[%s7608_s8 + $0x18] sm:$0xff]  ;;  %v6075_v10 = vld [vmem:[%s7603_s3 + $0x2] sm:$0x3] }
  0x48   : > { %5037 = vmatprep.mubr.msk.bf16.mxu0 %vm478_vm0, %v461_v12  ;;  %5577 = vmatprep.subr.msk.bf16.mxu1 %vm1120_vm2, %v6075_v10  ;;  %v3757_v12 = vld [vmem:[%s7608_s8 + $0x28] sm:$0xff] }
  0x4b   : > { %797 = vperm.xlu1 %5597, %v703_v13   ;;  %792 = vperm.xlu0 %5596, %v702_v14  }
  0x4e   : > { %5038 = vmatmul.mubr.msk.bf16.gmra.mrb[28].mxu0 %vm478_vm0, %v462_v19  ;;  %v2740_v19 = vld [vmem:[%s7611_s11 + $0x58] sm:$0xff] }
  0x4f   : > { %2512 = vperm.xlu1 %5597, %v1747_v17   ;;  %2507 = vperm.xlu0 %5596, %v1746_v18  }
  0x53   : > { %2522 = vperm.xlu1 %5597, %v1749_v20   ;;  %2517 = vperm.xlu0 %5596, %v1748_v21   ;;  %v2739_v20 = vld [vmem:[%s7611_s11 + $0x50] sm:$0xff]  ;;  %v3761_v21 = vld [vmem:[%s7608_s8 + $0x48] sm:$0xff] }
  0x57   : > { %2532 = vperm.xlu1 %5597, %v1751_v22   ;;  %2527 = vperm.xlu0 %5596, %v1750_v23   ;;  %v3760_v22 = vld [vmem:[%s7608_s8 + $0x40] sm:$0xff] }
  0x5b   : > { %2542 = vperm.xlu1 %5597, %v1753_v24   ;;  %2537 = vperm.xlu0 %5596, %v1752_v25   ;;  %v3763_v25 = vld [vmem:[%s7608_s8 + $0x58] sm:$0xff] }
  0x5f   : > { %2552 = vperm.xlu1 %5597, %v1755_v26   ;;  %2547 = vperm.xlu0 %5596, %v1754_v27   ;;  %v3762_v26 = vld [vmem:[%s7608_s8 + $0x50] sm:$0xff] }
  0x63   : > { %2562 = vperm.xlu1 %5597, %v1757_v28   ;;  %2557 = vperm.xlu0 %5596, %v1756_v29   ;;  %v2742_v29 = vld [vmem:[%s7611_s11 + $0x68] sm:$0xff] }
  0x67   : > { %2572 = vperm.xlu1 %5597, %v1759_v30   ;;  %2567 = vperm.xlu0 %5596, %v1758_v31   ;;  %v2741_v30 = vld [vmem:[%s7611_s11 + $0x60] sm:$0xff]  ;;  %v2744_v31 = vld [vmem:[%s7611_s11 + $0x78] sm:$0xff] }
  0x6b   : > { %2582 = vperm.xlu1 %5597, %v1761_v32   ;;  %2577 = vperm.xlu0 %5596, %v1760_v33   ;;  %v2743_v32 = vld [vmem:[%s7611_s11 + $0x70] sm:$0xff] }
  0x6f   : > { %2592 = vperm.xlu1 %5597, %v1763_v34   ;;  %2587 = vperm.xlu0 %5596, %v1762_v35   ;;  %v3765_v35 = vld [vmem:[%s7608_s8 + $0x68] sm:$0xff] }
  0x73   : > { %2602 = vperm.xlu1 %5597, %v1765_v36   ;;  %2597 = vperm.xlu0 %5596, %v1764_v37   ;;  %v3764_v36 = vld [vmem:[%s7608_s8 + $0x60] sm:$0xff] }
  0x77   : > { %2612 = vperm.xlu1 %5597, %v1767_v39   ;;  %2607 = vperm.xlu0 %5596, %v1766_v40   ;;  %v3767_v39 = vld [vmem:[%s7608_s8 + $0x78] sm:$0xff]  ;;  %v3766_v40 = vld [vmem:[%s7608_s8 + $0x70] sm:$0xff] }
  0x7b   : > { %2622 = vperm.xlu1 %5597, %v1769_v41   ;;  %2617 = vperm.xlu0 %5596, %v1768_v42   ;;  %v2746_v41 = vld [vmem:[%s7611_s11 + $0x88] sm:$0xff]  ;;  %v2745_v42 = vld [vmem:[%s7611_s11 + $0x80] sm:$0xff] }
  0x7f   : > { %2632 = vperm.xlu1 %5597, %v1771_v44   ;;  %2627 = vperm.xlu0 %5596, %v1770_v45   ;;  %v2748_v45 = vld [vmem:[%s7611_s11 + $0x98] sm:$0xff] }
  0x83   : > { %2642 = vperm.xlu1 %5597, %v1773_v47   ;;  %2637 = vperm.xlu0 %5596, %v1772_v48  }
  0x87   : > { %2652 = vperm.xlu1 %5597, %v1775_v49   ;;  %2647 = vperm.xlu0 %5596, %v1774_v50   ;;  %v3769_v49 = vld [vmem:[%s7608_s8 + $0x88] sm:$0xff]  ;;  %v3768_v50 = vld [vmem:[%s7608_s8 + $0x80] sm:$0xff] }
  0x8b   : > { %2662 = vperm.xlu1 %5597, %v1777_v51   ;;  %2657 = vperm.xlu0 %5596, %v1776_v52   ;;  %v3771_v51 = vld [vmem:[%s7608_s8 + $0x98] sm:$0xff]  ;;  %v3770_v52 = vld [vmem:[%s7608_s8 + $0x90] sm:$0xff] }
  0x8e   : > { %v6029_v59 = vpop.permute.xlu1 %812  ;;  %v6031_v60 = vpop.permute.xlu0 %802 }
  0x8f   : > { %3496 = vperm.xlu1 %5597, %v2730_v53   ;;  %3491 = vperm.xlu0 %5596, %v2729_v54  }
  0x92   : > { %v6052_v2 = vpop.permute.xlu1 %817  ;;  %v6054_v3 = vpop.permute.xlu0 %807 }
  0x93   : > { %3506 = vperm.xlu1 %5597, %v2732_v55   ;;  %3501 = vperm.xlu0 %5596, %v2731_v56   ;;  %v2750_v55 = vld [vmem:[%s7611_s11 + $0xa8] sm:$0xff]  ;;  %v2749_v56 = vld [vmem:[%s7611_s11 + $0xa0] sm:$0xff] }
  0x96   : > { %v6062_v6 = vpop.permute.xlu1 %827  ;;  %v6064_v7 = vpop.permute.xlu0 %822 }
  0x97   : > { %3516 = vperm.xlu1 %5597, %v2734_v57   ;;  %3511 = vperm.xlu0 %5596, %v2733_v58  }
  0x9a   : > { %v6085_v13 = vpop.permute.xlu1 %837  ;;  %v6087_v14 = vpop.permute.xlu0 %832 }
  0x9b   : > { %3526 = vperm.xlu1 %5597, %v2736_v61   ;;  %3521 = vperm.xlu0 %5596, %v2735_v62   ;;  %v2752_v61 = vld [vmem:[%s7611_s11 + $0xb8] sm:$0xff]  ;;  %v2751_v62 = vld [vmem:[%s7611_s11 + $0xb0] sm:$0xff] }
  0x9e   : > { %v6095_v17 = vpop.permute.xlu1 %847  ;;  %v6097_v18 = vpop.permute.xlu0 %842 }
  0x9f   : > { %3786 = vperm.xlu1 %5597, %v3752_v0   ;;  %3531 = vperm.xlu0 %5596, %v2737_v1   ;;  %v3773_v0 = vld [vmem:[%s7608_s8 + $0xa8] sm:$0xff]  ;;  %v3772_v1 = vld [vmem:[%s7608_s8 + $0xa0] sm:$0xff] }
  0xa2   : > { %v6111_v23 = vpop.permute.xlu1 %857  ;;  %v6113_v24 = vpop.permute.xlu0 %852 }
  0xa3   : > { %3796 = vperm.xlu1 %5597, %v3754_v4   ;;  %3791 = vperm.xlu0 %5596, %v3753_v5  }
  0xa6   : > { %v6121_v27 = vpop.permute.xlu1 %867  ;;  %v6123_v28 = vpop.permute.xlu0 %862 }
  0xa7   : > { %3806 = vperm.xlu1 %5597, %v3756_v8   ;;  %3801 = vperm.xlu0 %5596, %v3755_v9   ;;  %v3775_v8 = vld [vmem:[%s7608_s8 + $0xb8] sm:$0xff]  ;;  %v3774_v9 = vld [vmem:[%s7608_s8 + $0xb0] sm:$0xff] }
  0xaa   : > { %v6137_v33 = vpop.permute.xlu1 %877  ;;  %v6139_v34 = vpop.permute.xlu0 %872 }
  0xab   : > { %3816 = vperm.xlu1 %5597, %v3758_v11   ;;  %3811 = vperm.xlu0 %5596, %v3757_v12   ;;  %v6222_v11 = vld [vmem:[%s7602_s2] ss:$0 sm:$0xff] }
  0xae   : > { %v6147_v37 = vpop.permute.xlu1 %727  ;;  %v723_v38 = vpop.permute.xlu0 %722 }
  0xaf   : > { %3536 = vperm.xlu1 %5597, %v2738_v15   ;;  %3821 = vperm.xlu0 %5596, %v3759_v16  }
  0xb2   : > { %v738_v43 = vpop.permute.xlu1 %737  ;;  %v733_v44 = vpop.permute.xlu0 %732 }
  0xb3   : > { %3546 = vperm.xlu1 %5597, %v2740_v19   ;;  %3541 = vperm.xlu0 %5596, %v2739_v20  }
  0xb6   : > { %v6167_v47 = vpop.permute.xlu1 %747  ;;  %v6169_v48 = vpop.permute.xlu0 %742 }
  0xb7   : > { %3831 = vperm.xlu1 %5597, %v3761_v21   ;;  %3826 = vperm.xlu0 %5596, %v3760_v22   ;;  %v2754_v21 = vld [vmem:[%s7611_s11 + $0xc8] sm:$0xff]  ;;  %v2753_v22 = vld [vmem:[%s7611_s11 + $0xc0] sm:$0xff] }
  0xba   : > { %v6183_v53 = vpop.permute.xlu1 %757  ;;  %v6185_v54 = vpop.permute.xlu0 %752 }
  0xbb   : > { %3841 = vperm.xlu1 %5597, %v3763_v25   ;;  %3836 = vperm.xlu0 %5596, %v3762_v26  }
  0xbe   : > { %v6193_v57 = vpop.permute.xlu1 %767  ;;  %v6195_v58 = vpop.permute.xlu0 %762 }
  0xbf   : > { %3556 = vperm.xlu1 %5597, %v2742_v29   ;;  %3551 = vperm.xlu0 %5596, %v2741_v30  }
  0xc2   : > { %v6209_v4 = vpop.permute.xlu1 %777  ;;  %v6211_v5 = vpop.permute.xlu0 %772 }
  0xc3   : > { %3566 = vperm.xlu1 %5597, %v2744_v31   ;;  %3561 = vperm.xlu0 %5596, %v2743_v32  }
  0xc6   : > { %v6224_v12 = vpop.permute.xlu1 %787  ;;  %v6226_v16 = vpop.permute.xlu0 %782 }
  0xc7   : > { %3851 = vperm.xlu1 %5597, %v3765_v35   ;;  %3846 = vperm.xlu0 %5596, %v3764_v36  }
  0xcb   : > { %3861 = vperm.xlu1 %5597, %v3767_v39   ;;  %3856 = vperm.xlu0 %5596, %v3766_v40   ;;  %v2756_v40 = vld [vmem:[%s7611_s11 + $0xd8] sm:$0xff] }
  0xcf   : > { %3576 = vperm.xlu1 %5597, %v2746_v41   ;;  %3571 = vperm.xlu0 %5596, %v2745_v42   ;;  %v2755_v41 = vld [vmem:[%s7611_s11 + $0xd0] sm:$0xff]  ;;  %v6244_v42 = vpop.permute.xlu1 %797 }
  0xd3   : > { %3586 = vperm.xlu1 %5597, %v2748_v45   ;;  %3581 = vperm.xlu0 %5596, %v2747_v46  }
  0xd7   : > { %3871 = vperm.xlu1 %5597, %v3769_v49   ;;  %3866 = vperm.xlu0 %5596, %v3768_v50  }
  0xdb   : > { %3881 = vperm.xlu1 %5597, %v3771_v51   ;;  %3876 = vperm.xlu0 %5596, %v3770_v52   ;;  %v3776_v52 = vld [vmem:[%s7608_s8 + $0xc0] sm:$0xff] }
  0xdf   : > { %3596 = vperm.xlu1 %5597, %v2750_v55   ;;  %3591 = vperm.xlu0 %5596, %v2749_v56  }
  0xe3   : > { %3606 = vperm.xlu1 %5597, %v2752_v61   ;;  %3601 = vperm.xlu0 %5596, %v2751_v62  }
  0xe7   : > { %3891 = vperm.xlu1 %5597, %v3773_v0   ;;  %3886 = vperm.xlu0 %5596, %v3772_v1   ;;  %v6263_v1 = vpop.permute.xlu1 %2512 }
  0xe9   : > { %v5011_v15 = vpop.f32.mrb[0].mxu0 }
  0xea   : > { %v570_v19 = vadd.f32 %v5011_v15, %v6222_v11  ;;  %v561_v20 = vpop.f32.mrb[1].mxu0 }
  0xeb   : > { %3901 = vperm.xlu1 %5597, %v3775_v8   ;;  %3896 = vperm.xlu0 %5596, %v3774_v9   ;;  %v562_v25 = vadd.f32 %v6222_v11, %v561_v20  ;;  %v5012_v26 = vpop.f32.mrb[2].mxu0 }
  0xec   : > { %v882_v29 = vmul.f32 %v733_v44, %v570_v19  ;;  %v573_v30 = vadd.f32 %v5012_v26, %v6222_v11  ;;  %v564_v31 = vpop.f32.mrb[3].mxu0 }
  0xed   : > { %v880_v32 = vmul.f32 %v723_v38, %v562_v25  ;;  %v565_v35 = vadd.f32 %v6222_v11, %v564_v31  ;;  %v6247_v38 = vpop.permute.xlu0 %792 }
  0xee   : > { %v914_v36 = vmax.f32 %v882_v29, 0.0  ;;  %v883_v39 = vmul.f32 %v738_v43, %v573_v30 }
  0xef   : > { %3616 = vperm.xlu1 %5597, %v2754_v21   ;;  %3611 = vperm.xlu0 %5596, %v2753_v22   ;;  %v912_v44 = vmax.f32 %v880_v32, 0.0  ;;  %v881_v45 = vmul.f32 %v6147_v37, %v565_v35  ;;  %v3777_v37 = vld [vmem:[%s7608_s8 + $0xc8] sm:$0xff]  ;;  %v3778_v21 = vld [vmem:[%s7608_s8 + $0xd0] sm:$0xff] }
  0xf0   : > { %987 = vst.msk [vmem:[#allocation2 + $0x30] sm:$0xff] %vm944_vm1, %v914_v36  ;;  %v915_v46 = vmax.f32 %v883_v39, 0.0  ;;  %v6284_v36 = vpop.permute.xlu1 %2522 }
  0xf1   : > { %985 = vst.msk [vmem:[#allocation2 + $0x20] sm:$0xff] %vm944_vm1, %v912_v44  ;;  %v913_v43 = vmax.f32 %v881_v45, 0.0  ;;  %v5015_v49 = vpop.f32.mrb[4].mxu0  ;;  %v6267_v15 = vpop.permute.xlu0 %2507  ;;  %v2757_v44 = vld [vmem:[%s7611_s11 + $0xe0] sm:$0xff] }
  0xf2   : > { %988 = vst.msk [vmem:[#allocation2 + $0x38] sm:$0xff] %vm944_vm1, %v915_v46  ;;  %v586_v50 = vadd.f32 %v5015_v49, %v6222_v11  ;;  %v577_v51 = vpop.f32.mrb[5].mxu0 }
  0xf3   : > { %3626 = vperm.xlu1 %5597, %v2756_v40   ;;  %3621 = vperm.xlu0 %5596, %v2755_v41   ;;  %986 = vst.msk [vmem:[#allocation2 + $0x28] sm:$0xff] %vm944_vm1, %v913_v43  ;;  %v578_v55 = vadd.f32 %v6222_v11, %v577_v51  ;;  %v5016_v56 = vpop.f32.mrb[6].mxu0 }
  0xf4   : > { %v886_v61 = vmul.f32 %v6185_v54, %v586_v50  ;;  %v589_v62 = vadd.f32 %v5016_v56, %v6222_v11  ;;  %v580_v0 = vpop.f32.mrb[7].mxu0  ;;  %v3779_v54 = vld [vmem:[%s7608_s8 + $0xd8] sm:$0xff] }
  0xf5   : > { %v884_v8 = vmul.f32 %v6169_v48, %v578_v55  ;;  %v581_v9 = vadd.f32 %v6222_v11, %v580_v0  ;;  %v6293_v46 = vpop.permute.xlu0 %2517  ;;  %v2759_v0 = vld [vmem:[%s7611_s11 + $0xf0] sm:$0xff] }
  0xf6   : > { %v918_v19 = vmax.f32 %v886_v61, 0.0  ;;  %v887_v20 = vmul.f32 %v6183_v53, %v589_v62 }
  0xf7   : > { %3911 = vperm.xlu1 %5597, %v3777_v37   ;;  %3906 = vperm.xlu0 %5596, %v3776_v52   ;;  %v916_v22 = vmax.f32 %v884_v8, 0.0  ;;  %v885_v48 = vmul.f32 %v6167_v47, %v581_v9  ;;  %v2758_v47 = vld [vmem:[%s7611_s11 + $0xe8] sm:$0xff]  ;;  %v1021_v45 = vld [vmem:[#allocation2 + $0x30] sm:$0xff]  ;;  %v1881_v37 = vsel %vm1120_vm2, %v6042_v63, 0  ;;  %v2760_v63 = vld [vmem:[%s7611_s11 + $0xf8] sm:$0xff] }
  0xf8   : > { %991 = vst.msk [vmem:[#allocation2 + $0x50] sm:$0xff] %vm944_vm1, %v918_v19  ;;  %v919_v25 = vmax.f32 %v887_v20, 0.0  ;;  %v1019_v32 = vld [vmem:[#allocation2 + $0x20] sm:$0xff] }
  0xf9   : > { %989 = vst.msk [vmem:[#allocation2 + $0x40] sm:$0xff] %vm944_vm1, %v916_v22  ;;  %v917_v26 = vmax.f32 %v885_v48, 0.0  ;;  %v5019_v29 = vpop.f32.mrb[8].mxu0  ;;  %v1022_v53 = vld [vmem:[#allocation2 + $0x38] sm:$0xff] }
  0xfa   : > { %992 = vst.msk [vmem:[#allocation2 + $0x58] sm:$0xff] %vm944_vm1, %v919_v25  ;;  %v602_v30 = vadd.f32 %v5019_v29, %v6222_v11  ;;  %v593_v31 = vpop.f32.mrb[9].mxu0  ;;  %v1020_v35 = vld [vmem:[#allocation2 + $0x28] sm:$0xff]  ;;  %v6297_v51 = vpack.c.bf16 %v1022_v53, %v1021_v45 }
  0xfb   : > { %3921 = vperm.xlu1 %5597, %v3779_v54   ;;  %3916 = vperm.xlu0 %5596, %v3778_v21   ;;  %990 = vst.msk [vmem:[#allocation2 + $0x48] sm:$0xff] %vm944_vm1, %v917_v26  ;;  %v594_v39 = vadd.f32 %v6222_v11, %v593_v31  ;;  %v5020_v40 = vpop.f32.mrb[10].mxu0  ;;  %v6288_v41 = vpack.c.bf16 %v1020_v35, %v1019_v32  ;;  %v3781_v25 = vld [vmem:[%s7608_s8 + $0xe8] sm:$0xff] }
  0xfc   : > { %v890_v43 = vmul.f32 %v6211_v5, %v602_v30  ;;  %v605_v49 = vadd.f32 %v5020_v40, %v6222_v11  ;;  %v596_v50 = vpop.f32.mrb[11].mxu0  ;;  %v6308_v5 = vld [vmem:[%s7603_s3] sm:$0x3] }
  0xfd   : > { %v888_v52 = vmul.f32 %v6195_v58, %v594_v39  ;;  %v597_v55 = vadd.f32 %v6222_v11, %v596_v50  ;;  %5043 = vmatprep.mubr.msk.bf16.mxu0 %vm944_vm1, %v6288_v41  ;;  %v3780_v30 = vld [vmem:[%s7608_s8 + $0xe0] sm:$0xff] }
  0xfe   : > { %v922_v56 = vmax.f32 %v890_v43, 0.0  ;;  %v891_v61 = vmul.f32 %v6209_v4, %v605_v49  ;;  %5044 = vmatmul.mubr.msk.bf16.vlgmr.msra.gmra.mrb[32].mxu0 %vm944_vm1, %v6297_v51  ;;  %v6323_v4 = vpop.permute.xlu1 %2532 }
  0xff   : > { %3636 = vperm.xlu1 %5597, %v2758_v47   ;;  %3631 = vperm.xlu0 %5596, %v2757_v44   ;;  %v920_v58 = vmax.f32 %v888_v52, 0.0  ;;  %v889_v62 = vmul.f32 %v6193_v57, %v597_v55  ;;  %v6326_v57 = vpop.permute.xlu0 %2527  ;;  %v1025_v31 = vld [vmem:[#allocation2 + $0x50] sm:$0xff] }
 0x100   : > { %5144 = vmatpush3.bf16.msra.mxu0 %v1881_v37  ;;  %995 = vst.msk [vmem:[#allocation2 + $0x70] sm:$0xff] %vm944_vm1, %v922_v56  ;;  %v923_v8 = vmax.f32 %v891_v61, 0.0  ;;  %v1023_v22 = vld [vmem:[#allocation2 + $0x40] sm:$0xff]  ;;  %v3782_v37 = vld [vmem:[%s7608_s8 + $0xf0] sm:$0xff] }
 0x101   : > { %5580 = vmatprep.subr.msk.bf16.mxu0 %vm1120_vm2, %v6308_v5  ;;  %993 = vst.msk [vmem:[#allocation2 + $0x60] sm:$0xff] %vm944_vm1, %v920_v58  ;;  %v921_v9 = vmax.f32 %v889_v62, 0.0  ;;  %v5023_v19 = vpop.f32.mrb[12].mxu0  ;;  %v1026_v20 = vld [vmem:[#allocation2 + $0x58] sm:$0xff] }
 0x102   : > { %996 = vst.msk [vmem:[#allocation2 + $0x78] sm:$0xff] %vm944_vm1, %v923_v8  ;;  %v618_v54 = vadd.f32 %v5023_v19, %v6222_v11  ;;  %v609_v21 = vpop.f32.mrb[13].mxu0  ;;  %v1024_v48 = vld [vmem:[#allocation2 + $0x48] sm:$0xff]  ;;  %v6342_v39 = vpack.c.bf16 %v1026_v20, %v1025_v31  ;;  %v6354_v49 = vpop.permute.xlu1 %2542  ;;  %v4244_v20 = vld [vmem:[%s7609_s9] sm:$0xff] }
 0x103   : > { %3646 = vperm.xlu1 %5597, %v2760_v63   ;;  %3641 = vperm.xlu0 %5596, %v2759_v0   ;;  %994 = vst.msk [vmem:[#allocation2 + $0x68] sm:$0xff] %vm944_vm1, %v921_v9  ;;  %v610_v26 = vadd.f32 %v6222_v11, %v609_v21  ;;  %v5024_v29 = vpop.f32.mrb[14].mxu0  ;;  %v6335_v53 = vpack.c.bf16 %v1024_v48, %v1023_v22  ;;  %v6360_v52 = vpop.permute.xlu0 %2537  ;;  %v4245_v0 = vld [vmem:[%s7609_s9 + $0x8] sm:$0xff] }
 0x104   : > { %v894_v32 = vmul.f32 %v6247_v38, %v618_v54  ;;  %v621_v35 = vadd.f32 %v5024_v29, %v6222_v11  ;;  %v612_v47 = vpop.f32.mrb[15].mxu0  ;;  %v3783_v38 = vld [vmem:[%s7608_s8 + $0xf8] sm:$0xff] }
 0x105   : > { %v892_v40 = vmul.f32 %v6226_v16, %v610_v26  ;;  %v613_v44 = vadd.f32 %v6222_v11, %v612_v47  ;;  %5047 = vmatprep.mubr.msk.bf16.mxu0 %vm944_vm1, %v6335_v53 }
 0x106   : > { %v926_v45 = vmax.f32 %v894_v32, 0.0  ;;  %v895_v43 = vmul.f32 %v6244_v42, %v621_v35  ;;  %5048 = vmatmul.mubr.msk.bf16.gmra.mrb[36].mxu0 %vm944_vm1, %v6342_v39  ;;  %v6380_v26 = vpop.permute.xlu1 %2552  ;;  %v4247_v35 = vld [vmem:[%s7609_s9 + $0x18] sm:$0xff] }
 0x107   : > { %3931 = vperm.xlu1 %5597, %v3781_v25   ;;  %3926 = vperm.xlu0 %5596, %v3780_v30   ;;  %v924_v16 = vmax.f32 %v892_v40, 0.0  ;;  %v893_v50 = vmul.f32 %v6224_v12, %v613_v44  ;;  %v1029_v54 = vld [vmem:[#allocation2 + $0x70] sm:$0xff]  ;;  %v6386_v31 = vpop.permute.xlu0 %2547 }
 0x108   : > { %999 = vst.msk [vmem:[#allocation2 + $0x90] sm:$0xff] %vm944_vm1, %v926_v45  ;;  %v927_v42 = vmax.f32 %v895_v43, 0.0  ;;  %v1027_v58 = vld [vmem:[#allocation2 + $0x60] sm:$0xff]  ;;  %v4246_v40 = vld [vmem:[%s7609_s9 + $0x10] sm:$0xff]  ;;  %v4249_v43 = vld [vmem:[%s7609_s9 + $0x28] sm:$0xff] }
 0x109   : > { %997 = vst.msk [vmem:[#allocation2 + $0x80] sm:$0xff] %vm944_vm1, %v924_v16  ;;  %v925_v55 = vmax.f32 %v893_v50, 0.0  ;;  %v5027_v56 = vpop.f32.mrb[16].mxu0  ;;  %v1030_v61 = vld [vmem:[#allocation2 + $0x78] sm:$0xff] }
 0x10a   : > { %1000 = vst.msk [vmem:[#allocation2 + $0x98] sm:$0xff] %vm944_vm1, %v927_v42  ;;  %v634_v63 = vadd.f32 %v5027_v56, %v6222_v11  ;;  %v625_v12 = vpop.f32.mrb[17].mxu0  ;;  %v1028_v62 = vld [vmem:[#allocation2 + $0x68] sm:$0xff]  ;;  %v6378_v25 = vpack.c.bf16 %v1030_v61, %v1029_v54  ;;  %v1780_v54 = vld [vmem:[#allocation2 + $0x1f] sm:$0xff] }
 0x10b   : > { %3941 = vperm.xlu1 %5597, %v3783_v38   ;;  %3936 = vperm.xlu0 %5596, %v3782_v37   ;;  %998 = vst.msk [vmem:[#allocation2 + $0x88] sm:$0xff] %vm944_vm1, %v925_v55  ;;  %v626_v8 = vadd.f32 %v6222_v11, %v625_v12  ;;  %v5028_v9 = vpop.f32.mrb[18].mxu0  ;;  %v6371_v19 = vpack.c.bf16 %v1028_v62, %v1027_v58  ;;  %v1781_v42 = vld [vmem:[#allocation2 + $0x27] sm:$0xff]  ;;  %v6405_v55 = vpop.permute.xlu1 %2562 }
 0x10c   : > { %v898_v21 = vmul.f32 %v6029_v59, %v634_v63  ;;  %v637_v22 = vadd.f32 %v5028_v9, %v6222_v11  ;;  %v628_v48 = vpop.f32.mrb[19].mxu0  ;;  %v4248_v12 = vld [vmem:[%s7609_s9 + $0x20] sm:$0xff]  ;;  %v6414_v62 = vpop.permute.xlu0 %2557 }
 0x10d   : > { %v896_v29 = vmul.f32 %v6031_v60, %v626_v8  ;;  %v629_v30 = vadd.f32 %v6222_v11, %v628_v48  ;;  %5051 = vmatprep.mubr.msk.bf16.mxu0 %vm944_vm1, %v6371_v19  ;;  %v6424_v48 = vpack.c.bf16 %v1781_v42, %v1780_v54  ;;  %v1289_v54 = vsel %vm1120_vm2, %v6075_v10, 0 }
 0x10e   : > { %v930_v32 = vmax.f32 %v898_v21, 0.0  ;;  %v899_v59 = vmul.f32 %v6052_v2, %v637_v22  ;;  %5052 = vmatmul.mubr.msk.bf16.gmra.mrb[40].mxu0 %vm944_vm1, %v6378_v25 }
 0x10f   : > { %4283 = vperm.xlu1 %5597, %v4245_v0   ;;  %4278 = vperm.xlu0 %5596, %v4244_v20   ;;  %v928_v60 = vmax.f32 %v896_v29, 0.0  ;;  %v897_v47 = vmul.f32 %v6054_v3, %v629_v30  ;;  %v1033_v58 = vld [vmem:[#allocation2 + $0x90] sm:$0xff] }
 0x110   : > { %1003 = vst.msk [vmem:[#allocation2 + $0xb0] sm:$0xff] %vm944_vm1, %v930_v32  ;;  %v931_v44 = vmax.f32 %v899_v59, 0.0  ;;  %v1031_v50 = vld [vmem:[#allocation2 + $0x80] sm:$0xff]  ;;  %v4250_v59 = vld [vmem:[%s7609_s9 + $0x30] sm:$0xff] }
 0x111   : > { %1001 = vst.msk [vmem:[#allocation2 + $0xa0] sm:$0xff] %vm944_vm1, %v928_v60  ;;  %v929_v2 = vmax.f32 %v897_v47, 0.0  ;;  %v5031_v45 = vpop.f32.mrb[20].mxu0  ;;  %v1034_v38 = vld [vmem:[#allocation2 + $0x98] sm:$0xff] }
 0x112   : > { %1004 = vst.msk [vmem:[#allocation2 + $0xb8] sm:$0xff] %vm944_vm1, %v931_v44  ;;  %v650_v3 = vadd.f32 %v5031_v45, %v6222_v11  ;;  %v641_v16 = vpop.f32.mrb[21].mxu0  ;;  %v1032_v37 = vld [vmem:[#allocation2 + $0x88] sm:$0xff]  ;;  %v6418_v20 = vpack.c.bf16 %v1034_v38, %v1033_v58  ;;  %v1783_v44 = vld [vmem:[#allocation2 + $0x37] sm:$0xff] }
 0x113   : > { %4293 = vperm.xlu1 %5597, %v4247_v35   ;;  %4288 = vperm.xlu0 %5596, %v4246_v40   ;;  %1002 = vst.msk [vmem:[#allocation2 + $0xa8] sm:$0xff] %vm944_vm1, %v929_v2  ;;  %v642_v56 = vadd.f32 %v6222_v11, %v641_v16  ;;  %v5032_v61 = vpop.f32.mrb[22].mxu0  ;;  %v6409_v63 = vpack.c.bf16 %v1032_v37, %v1031_v50  ;;  %v6439_v35 = vpop.permute.xlu1 %2572  ;;  %v1782_v16 = vld [vmem:[#allocation2 + $0x2f] sm:$0xff] }
 0x114   : > { %v902_v0 = vmul.f32 %v6087_v14, %v650_v3  ;;  %v653_v8 = vadd.f32 %v5032_v61, %v6222_v11  ;;  %v644_v9 = vpop.f32.mrb[23].mxu0  ;;  %v4251_v14 = vld [vmem:[%s7609_s9 + $0x38] sm:$0xff]  ;;  %v6445_v2 = vpop.permute.xlu0 %2567 }
 0x115   : > { %v900_v21 = vmul.f32 %v6064_v7, %v642_v56  ;;  %v645_v22 = vadd.f32 %v6222_v11, %v644_v9  ;;  %5055 = vmatprep.mubr.msk.bf16.mxu0 %vm944_vm1, %v6409_v63  ;;  %v4252_v56 = vld [vmem:[%s7609_s9 + $0x40] sm:$0xff] }
 0x116   : > { %v934_v29 = vmax.f32 %v902_v0, 0.0  ;;  %v903_v30 = vmul.f32 %v6085_v13, %v653_v8  ;;  %5056 = vmatmul.mubr.msk.bf16.gmra.mrb[44].mxu0 %vm944_vm1, %v6418_v20 }
 0x117   : > { %4303 = vperm.xlu1 %5597, %v4249_v43   ;;  %4298 = vperm.xlu0 %5596, %v4248_v12   ;;  %v932_v7 = vmax.f32 %v900_v21, 0.0  ;;  %v901_v32 = vmul.f32 %v6062_v6, %v645_v22  ;;  %v4253_v6 = vld [vmem:[%s7609_s9 + $0x48] sm:$0xff]  ;;  %v1037_v61 = vld [vmem:[#allocation2 + $0xb0] sm:$0xff] }
 0x118   : > { %5145 = vmatprep.mubr.msk.bf16.mxu0 %vm944_vm1, %v6424_v48  ;;  %1007 = vst.msk [vmem:[#allocation2 + $0xd0] sm:$0xff] %vm944_vm1, %v934_v29  ;;  %v935_v13 = vmax.f32 %v903_v30, 0.0  ;;  %v1035_v38 = vld [vmem:[#allocation2 + $0xa0] sm:$0xff]  ;;  %v6466_v29 = vpack.c.bf16 %v1783_v44, %v1782_v16  ;;  %v4257_v44 = vld [vmem:[%s7609_s9 + $0x68] sm:$0xff] }
 0x119   : > { %1005 = vst.msk [vmem:[#allocation2 + $0xc0] sm:$0xff] %vm944_vm1, %v932_v7  ;;  %v933_v60 = vmax.f32 %v901_v32, 0.0  ;;  %v5035_v47 = vpop.f32.mrb[24].mxu0  ;;  %v1038_v40 = vld [vmem:[#allocation2 + $0xb8] sm:$0xff]  ;;  %v1785_v12 = vld [vmem:[#allocation2 + $0x47] sm:$0xff]  ;;  %v2048_v32 = vsel %vm1120_vm2, %v6308_v5, 0 }
 0x11a   : > { %1008 = vst.msk [vmem:[#allocation2 + $0xd8] sm:$0xff] %vm944_vm1, %v935_v13  ;;  %v666_v45 = vadd.f32 %v5035_v47, %v6222_v11  ;;  %v657_v43 = vpop.f32.mrb[25].mxu0  ;;  %v1036_v3 = vld [vmem:[#allocation2 + $0xa8] sm:$0xff]  ;;  %v6458_v9 = vpack.c.bf16 %v1038_v40, %v1037_v61  ;;  %v1784_v30 = vld [vmem:[#allocation2 + $0x3f] sm:$0xff] }
 0x11b   : > { %4313 = vperm.xlu1 %5597, %v4251_v14   ;;  %4308 = vperm.xlu0 %5596, %v4250_v59   ;;  %1006 = vst.msk [vmem:[#allocation2 + $0xc8] sm:$0xff] %vm944_vm1, %v933_v60  ;;  %v658_v50 = vadd.f32 %v6222_v11, %v657_v43  ;;  %v5036_v37 = vpop.f32.mrb[26].mxu0  ;;  %v6451_v42 = vpack.c.bf16 %v1036_v3, %v1035_v38  ;;  %v6483_v59 = vpop.permute.xlu1 %2582  ;;  %v6494_v47 = vld [vmem:[%s7603_s3 + $0xc] sm:$0x3]  ;;  %v1787_v43 = vld [vmem:[#allocation2 + $0x57] sm:$0xff] }
 0x11c   : > { %v906_v58 = vmul.f32 %v6113_v24, %v666_v45  ;;  %v669_v0 = vadd.f32 %v5036_v37, %v6222_v11  ;;  %v660_v8 = vpop.f32.mrb[27].mxu0  ;;  %v6471_v24 = vld [vmem:[%s7603_s3 + $0xe] sm:$0x3]  ;;  %v6476_v10 = vpack.c.bf16 %v1785_v12, %v1784_v30 }
 0x11d   : > { %v904_v21 = vmul.f32 %v6097_v18, %v658_v50  ;;  %v661_v22 = vadd.f32 %v6222_v11, %v660_v8  ;;  %5059 = vmatprep.mubr.msk.bf16.mxu1 %vm944_vm1, %v6451_v42  ;;  %v4255_v18 = vld [vmem:[%s7609_s9 + $0x58] sm:$0xff]  ;;  %v1786_v37 = vld [vmem:[#allocation2 + $0x4f] sm:$0xff]  ;;  %v1789_v8 = vld [vmem:[#allocation2 + $0x67] sm:$0xff] }
 0x11e   : > { %v938_v14 = vmax.f32 %v906_v58, 0.0  ;;  %v907_v7 = vmul.f32 %v6111_v23, %v669_v0  ;;  %5060 = vmatmul.mubr.msk.bf16.vlgmr.msra.gmra.mrb[0].mxu1 %vm944_vm1, %v6458_v9  ;;  %5146 = vmatmul.mubr.msk.bf16.vlgmr.msra.gmra.mrb[48].mxu0 %vm944_vm1, %v6466_v29  ;;  %v4254_v23 = vld [vmem:[%s7609_s9 + $0x50] sm:$0xff]  ;;  %v4256_v58 = vld [vmem:[%s7609_s9 + $0x60] sm:$0xff] }
 0x11f   : > { %4323 = vperm.xlu1 %5597, %v4253_v6   ;;  %4318 = vperm.xlu0 %5596, %v4252_v56   ;;  %v936_v13 = vmax.f32 %v904_v21, 0.0  ;;  %v905_v60 = vmul.f32 %v6095_v17, %v661_v22  ;;  %v6496_v6 = vpop.permute.xlu0 %2577  ;;  %v1041_v0 = vld [vmem:[#allocation2 + $0xd0] sm:$0xff] }
 0x120   : > { %5076 = vmatpush3.bf16.msra.mxu1 %v1289_v54  ;;  %1011 = vst.msk [vmem:[#allocation2 + $0xf0] sm:$0xff] %vm944_vm1, %v938_v14  ;;  %v939_v5 = vmax.f32 %v907_v7, 0.0  ;;  %5149 = vmatprep.mubr.msk.bf16.mxu0 %vm944_vm1, %v6476_v10  ;;  %v1039_v16 = vld [vmem:[#allocation2 + $0xc0] sm:$0xff]  ;;  %v6522_v14 = vpop.permute.xlu1 %2592 }
 0x121   : > { %5578 = vmatprep.subr.msk.bf16.mxu1 %vm1120_vm2, %v6471_v24  ;;  %1009 = vst.msk [vmem:[#allocation2 + $0xe0] sm:$0xff] %vm944_vm1, %v936_v13  ;;  %v937_v17 = vmax.f32 %v905_v60, 0.0  ;;  %v5039_v40 = vpop.f32.mrb[28].mxu0  ;;  %v1042_v45 = vld [vmem:[#allocation2 + $0xd8] sm:$0xff]  ;;  %5178 = vmatpush3.bf16.msra.mxu0 %v2048_v32  ;;  %v6528_v32 = vpack.c.bf16 %v1787_v43, %v1786_v37 }
 0x122   : > { %1012 = vst.msk [vmem:[#allocation2 + $0xf8] sm:$0xff] %vm944_vm1, %v939_v5  ;;  %v682_v38 = vadd.f32 %v5039_v40, %v6222_v11  ;;  %v673_v3 = vpop.f32.mrb[29].mxu0  ;;  %v1040_v50 = vld [vmem:[#allocation2 + $0xc8] sm:$0xff]  ;;  %5581 = vmatprep.subr.msk.bf16.mxu0 %vm1120_vm2, %v6494_v47  ;;  %v6520_v30 = vpack.c.bf16 %v1042_v45, %v1041_v0  ;;  %v1788_v13 = vld [vmem:[#allocation2 + $0x5f] sm:$0xff]  ;;  %v1791_v43 = vld [vmem:[#allocation2 + $0x77] sm:$0xff] }
 0x123   : > { %4333 = vperm.xlu1 %5597, %v4255_v18   ;;  %4328 = vperm.xlu0 %5596, %v4254_v23   ;;  %1010 = vst.msk [vmem:[#allocation2 + $0xe8] sm:$0xff] %vm944_vm1, %v937_v17  ;;  %v674_v56 = vadd.f32 %v6222_v11, %v673_v3  ;;  %v5040_v61 = vpop.f32.mrb[30].mxu0  ;;  %v6513_v12 = vpack.c.bf16 %v1040_v50, %v1039_v16  ;;  %v6530_v60 = vpop.permute.xlu0 %2587  ;;  %v1790_v16 = vld [vmem:[#allocation2 + $0x6f] sm:$0xff] }
 0x124   : > { %v910_v54 = vmul.f32 %v6139_v34, %v682_v38  ;;  %v685_v21 = vadd.f32 %v5040_v61, %v6222_v11  ;;  %v676_v22 = vpop.f32.mrb[31].mxu0  ;;  %v6535_v5 = vpack.c.bf16 %v1789_v8, %v1788_v13  ;;  %v6554_v50 = vpop.permute.xlu1 %2602  ;;  %v1017_v13 = vld [vmem:[#allocation2 + $0x10] sm:$0xff] }
 0x125   : > { %v908_v7 = vmul.f32 %v6123_v28, %v674_v56  ;;  %v677_v18 = vadd.f32 %v6222_v11, %v676_v22  ;;  %5063 = vmatprep.mubr.msk.bf16.mxu1 %vm944_vm1, %v6513_v12  ;;  %v4259_v28 = vld [vmem:[%s7609_s9 + $0x78] sm:$0xff]  ;;  %v4260_v56 = vld [vmem:[%s7609_s9 + $0x80] sm:$0xff] }
 0x126   : > { %v942_v34 = vmax.f32 %v910_v54, 0.0  ;;  %v911_v23 = vmul.f32 %v6137_v33, %v685_v21  ;;  %5064 = vmatmul.mubr.msk.bf16.gmra.mrb[4].mxu1 %vm944_vm1, %v6520_v30  ;;  %5150 = vmatmul.mubr.msk.bf16.gmra.mrb[52].mxu0 %vm944_vm1, %v6528_v32  ;;  %v4258_v33 = vld [vmem:[%s7609_s9 + $0x70] sm:$0xff]  ;;  %v6568_v54 = vpack.c.bf16 %v1791_v43, %v1790_v16  ;;  %v1792_v21 = vld [vmem:[#allocation2 + $0x7f] sm:$0xff] }
 0x127   : > { %4343 = vperm.xlu1 %5597, %v4257_v44   ;;  %4338 = vperm.xlu0 %5596, %v4256_v58   ;;  %v940_v11 = vmax.f32 %v908_v7, 0.0  ;;  %v909_v17 = vmul.f32 %v6121_v27, %v677_v18  ;;  %v4261_v27 = vld [vmem:[%s7609_s9 + $0x88] sm:$0xff]  ;;  %v1045_v61 = vld [vmem:[#allocation2 + $0xf0] sm:$0xff]  ;;  %v6562_v0 = vpop.permute.xlu0 %2597  ;;  %v4263_v7 = vld [vmem:[%s7609_s9 + $0x98] sm:$0xff] }
 0x128   : > { %1015 = vst.msk [vmem:[#allocation2 + $0x110] sm:$0xff] %vm944_vm1, %v942_v34  ;;  %v943_v40 = vmax.f32 %v911_v23, 0.0  ;;  %5153 = vmatprep.mubr.msk.bf16.mxu0 %vm944_vm1, %v6535_v5  ;;  %v1043_v38 = vld [vmem:[#allocation2 + $0xe0] sm:$0xff]  ;;  %v4262_v18 = vld [vmem:[%s7609_s9 + $0x90] sm:$0xff]  ;;  %v1018_v34 = vld [vmem:[#allocation2 + $0x18] sm:$0xff]  ;;  %v6584_v23 = vpop.permute.xlu1 %2612 }
 0x129   : > { %1013 = vst.msk [vmem:[#allocation2 + $0x100] sm:$0xff] %vm944_vm1, %v940_v11  ;;  %v941_v44 = vmax.f32 %v909_v17, 0.0  ;;  %v1046_v45 = vld [vmem:[#allocation2 + $0xf8] sm:$0xff]  ;;  %v1793_v58 = vld [vmem:[#allocation2 + $0x87] sm:$0xff]  ;;  %7613 = vst [vmem:[#allocation3_spill] sm:$0xff] %v6584_v23  ;;  %v1049_v16 = vpack.c.bf16 %v1018_v34, %v1017_v13 }
 0x12a   : > { %1016 = vst.msk [vmem:[#allocation2 + $0x118] sm:$0xff] %vm944_vm1, %v943_v40  ;;  %v1044_v3 = vld [vmem:[#allocation2 + $0xe8] sm:$0xff]  ;;  %v6564_v8 = vpack.c.bf16 %v1046_v45, %v1045_v61  ;;  %v6572_v22 = vpack.c.bf16 %v1793_v58, %v1792_v21  ;;  %v1795_v17 = vld [vmem:[#allocation2 + $0x97] sm:$0xff]  ;;  %v4264_v43 = vld [vmem:[%s7609_s9 + $0xa0] sm:$0xff] }
 0x12b   : > { %4353 = vperm.xlu1 %5597, %v4259_v28   ;;  %4348 = vperm.xlu0 %5596, %v4258_v33   ;;  %1014 = vst.msk [vmem:[#allocation2 + $0x108] sm:$0xff] %vm944_vm1, %v941_v44  ;;  %v6557_v37 = vpack.c.bf16 %v1044_v3, %v1043_v38  ;;  %v4265_v28 = vld [vmem:[%s7609_s9 + $0xa8] sm:$0xff]  ;;  %v6589_v33 = vpop.permute.xlu0 %2607  ;;  %v1796_v58 = vld [vmem:[#allocation2 + $0x9f] sm:$0xff]  ;;  %v4266_v13 = vld [vmem:[%s7609_s9 + $0xb0] sm:$0xff] }
 0x12c   : > { %v1797_v3 = vld [vmem:[#allocation2 + $0xa7] sm:$0xff] }
 0x12d   : > { %5067 = vmatprep.mubr.msk.bf16.mxu1 %vm944_vm1, %v6557_v37  ;;  %v6604_v21 = vpack.c.bf16 %v1797_v3, %v1796_v58  ;;  %v1800_v3 = vld [vmem:[#allocation2 + $0xbf] sm:$0xff] }
 0x12e   : > { %5068 = vmatmul.mubr.msk.bf16.gmra.mrb[8].mxu1 %vm944_vm1, %v6564_v8  ;;  %5154 = vmatmul.mubr.msk.bf16.gmra.mrb[56].mxu0 %vm944_vm1, %v6568_v54 }
 0x12f   : > { %4363 = vperm.xlu1 %5597, %v4261_v27   ;;  %4358 = vperm.xlu0 %5596, %v4260_v56   ;;  %v1794_v27 = vld [vmem:[#allocation2 + $0x8f] sm:$0xff]  ;;  %v6617_v34 = vpop.permute.xlu0 %2617 }
 0x130   : > { %5157 = vmatprep.mubr.msk.bf16.mxu0 %vm944_vm1, %v6572_v22  ;;  %v1047_v40 = vld [vmem:[#allocation2 + $0x100] sm:$0xff]  ;;  %v1067_v38 = vld [vmem:[#allocation2 + $0x110] sm:$0xff]  ;;  %v6600_v61 = vpack.c.bf16 %v1795_v17, %v1794_v27  ;;  %v1551_v27 = vsel %vm1120_vm2, %v6471_v24, 0  ;;  %v6645_v24 = vld [vmem:[%s7603_s3 + $0xa] sm:$0x3] }
 0x131   : > { %v1068_v11 = vld [vmem:[#allocation2 + $0x118] sm:$0xff] }
 0x132   : > { %v1048_v44 = vld [vmem:[#allocation2 + $0x108] sm:$0xff]  ;;  %v6596_v56 = vpack.c.bf16 %v1068_v11, %v1067_v38  ;;  %v1799_v17 = vld [vmem:[#allocation2 + $0xb7] sm:$0xff] }
 0x133   : > { %4373 = vperm.xlu1 %5597, %v4263_v7   ;;  %4368 = vperm.xlu0 %5596, %v4262_v18   ;;  %v6591_v45 = vpack.c.bf16 %v1048_v44, %v1047_v40  ;;  %v4267_v7 = vld [vmem:[%s7609_s9 + $0xb8] sm:$0xff]  ;;  %v6609_v18 = vpop.permute.xlu1 %2622  ;;  %v1798_v11 = vld [vmem:[#allocation2 + $0xaf] sm:$0xff]  ;;  %v4268_v40 = vld [vmem:[%s7609_s9 + $0xc0] sm:$0xff] }
 0x134   : > { %7614 = vst [vmem:[#allocation4_spill] sm:$0xff] %v6609_v18  ;;  %v1801_v44 = vld [vmem:[#allocation2 + $0xc7] sm:$0xff]  ;;  %v6631_v38 = vpack.c.bf16 %v1799_v17, %v1798_v11  ;;  %v1803_v11 = vld [vmem:[#allocation2 + $0xd7] sm:$0xff] }
 0x135   : > { %5071 = vmatprep.mubr.msk.bf16.mxu1 %vm944_vm1, %v6591_v45  ;;  %v6637_v58 = vpack.c.bf16 %v1801_v44, %v1800_v3  ;;  %v1805_v44 = vld [vmem:[#allocation2 + $0xe7] sm:$0xff] }
 0x136   : > { %5072 = vmatmul.mubr.msk.bf16.gmra.mrb[12].mxu1 %vm944_vm1, %v6596_v56  ;;  %5158 = vmatmul.mubr.msk.bf16.gmra.mrb[60].mxu0 %vm944_vm1, %v6600_v61 }
 0x137   : > { %4383 = vperm.xlu1 %5597, %v4265_v28   ;;  %4378 = vperm.xlu0 %5596, %v4264_v43   ;;  %v4269_v28 = vld [vmem:[%s7609_s9 + $0xc8] sm:$0xff]  ;;  %v6629_v43 = vpop.permute.xlu1 %2632 }
 0x138   : > { %5077 = vmatprep.mubr.msk.bf16.mxu1 %vm944_vm1, %v1049_v16  ;;  %5161 = vmatprep.mubr.msk.bf16.mxu0 %vm944_vm1, %v6604_v21  ;;  %7615 = vst [vmem:[#allocation5_spill] sm:$0xff] %v6629_v43  ;;  %v6633_v16 = vpop.permute.xlu0 %2627  ;;  %v4275_v43 = vld [vmem:[%s7609_s9 + $0xf8] sm:$0xff] }
 0x139   : > { %7616 = vst [vmem:[#allocation6_spill] sm:$0xff] %v6633_v16  ;;  %v1808_v16 = vld [vmem:[#allocation2 + $0xff] sm:$0xff] }
 0x13b   : > { %4393 = vperm.xlu1 %5597, %v4267_v7   ;;  %4388 = vperm.xlu0 %5596, %v4266_v13   ;;  %v4271_v7 = vld [vmem:[%s7609_s9 + $0xd8] sm:$0xff]  ;;  %v4270_v13 = vld [vmem:[%s7609_s9 + $0xd0] sm:$0xff]  ;;  %v6661_v17 = vpop.permute.xlu1 %2642 }
 0x13c   : > { %7617 = vst [vmem:[#allocation7_spill] sm:$0xff] %v6661_v17 }
 0x13e   : > { %5078 = vmatmul.mubr.msk.bf16.vlgmr.msra.gmra.mrb[16].mxu1 %vm944_vm1, %v6288_v41  ;;  %5162 = vmatmul.mubr.msk.bf16.gmra.mrb[64].mxu0 %vm944_vm1, %v6631_v38  ;;  %v4273_v41 = vld [vmem:[%s7609_s9 + $0xe8] sm:$0xff] }
 0x13f   : > { %4403 = vperm.xlu1 %5597, %v4269_v28   ;;  %4398 = vperm.xlu0 %5596, %v4268_v40   ;;  %v1802_v28 = vld [vmem:[#allocation2 + $0xcf] sm:$0xff]  ;;  %v4272_v40 = vld [vmem:[%s7609_s9 + $0xe0] sm:$0xff] }
 0x140   : > { %5110 = vmatpush3.bf16.msra.mxu1 %v1551_v27  ;;  %5081 = vmatprep.mubr.msk.bf16.mxu1 %vm944_vm1, %v6297_v51  ;;  %v6666_v27 = vpop.permute.xlu0 %2637  ;;  %v6668_v3 = vpack.c.bf16 %v1803_v11, %v1802_v28  ;;  %v6686_v28 = vpop.permute.xlu1 %2652 }
 0x141   : > { %5165 = vmatprep.mubr.msk.bf16.mxu0 %vm944_vm1, %v6637_v58  ;;  %5582 = vmatprep.subr.msk.bf16.mxu1 %vm1120_vm2, %v6645_v24  ;;  %7618 = vst [vmem:[#allocation8_spill] sm:$0xff] %v6666_v27  ;;  %7619 = vst [vmem:[#allocation9_spill] sm:$0xff] %v6686_v28  ;;  %v1827_v28 = vld [vmem:[#allocation2 + $0x10f] sm:$0xff] }
 0x143   : > { %4413 = vperm.xlu1 %5597, %v4271_v7   ;;  %4408 = vperm.xlu0 %5596, %v4270_v13   ;;  %v1804_v7 = vld [vmem:[#allocation2 + $0xdf] sm:$0xff] }
 0x144   : > { %v6672_v13 = vpack.c.bf16 %v1805_v44, %v1804_v7  ;;  %v6688_v11 = vpop.permute.xlu0 %2647  ;;  %v1807_v44 = vld [vmem:[#allocation2 + $0xf7] sm:$0xff]  ;;  %v1809_v7 = vld [vmem:[#allocation2 + $0x107] sm:$0xff] }
 0x145   : > { %7620 = vst [vmem:[#allocation10_spill] sm:$0xff] %v6688_v11  ;;  %v6694_v27 = vpack.c.bf16 %v1809_v7, %v1808_v16  ;;  %v2310_v16 = vsel %vm1120_vm2, %v6494_v47, 0  ;;  %v4747_v47 = vld [vmem:[%s7603_s3 + $0x4] sm:$0x3] }
 0x146   : > { %5082 = vmatmul.mubr.msk.bf16.gmra.mrb[20].mxu1 %vm944_vm1, %v6335_v53  ;;  %5166 = vmatmul.mubr.msk.bf16.gmra.mrb[68].mxu0 %vm944_vm1, %v6668_v3  ;;  %v2241_v7 = vld [vmem:[#allocation2 + $0x11f] sm:$0xff] }
 0x147   : > { %4423 = vperm.xlu1 %5597, %v4273_v41   ;;  %4418 = vperm.xlu0 %5596, %v4272_v40   ;;  %v4274_v41 = vld [vmem:[%s7609_s9 + $0xf0] sm:$0xff] }
 0x148   : > { %5085 = vmatprep.mubr.msk.bf16.mxu1 %vm944_vm1, %v6342_v39  ;;  %5169 = vmatprep.mubr.msk.bf16.mxu0 %vm944_vm1, %v6672_v13  ;;  %v1806_v40 = vld [vmem:[#allocation2 + $0xef] sm:$0xff] }
 0x149   : > { %v6690_v17 = vpack.c.bf16 %v1807_v44, %v1806_v40  ;;  %v1828_v40 = vld [vmem:[#allocation2 + $0x117] sm:$0xff] }
 0x14a   : > { %v6702_v11 = vpack.c.bf16 %v1828_v40, %v1827_v28 }
 0x14b   : > { %4433 = vperm.xlu1 %5597, %v4275_v43   ;;  %4428 = vperm.xlu0 %5596, %v4274_v41   ;;  %v1778_v43 = vld [vmem:[#allocation2 + $0xf] sm:$0xff]  ;;  %v1779_v41 = vld [vmem:[#allocation2 + $0x17] sm:$0xff] }
 0x14c   : > { %v1810_v44 = vpack.c.bf16 %v1779_v41, %v1778_v43  ;;  %v2779_v43 = vld [vmem:[#allocation2 + $0xa1] sm:$0xff]  ;;  %v2780_v41 = vld [vmem:[#allocation2 + $0xa9] sm:$0xff] }
 0x14e   : > { %5086 = vmatmul.mubr.msk.bf16.gmra.mrb[24].mxu1 %vm944_vm1, %v6371_v19  ;;  %5170 = vmatmul.mubr.msk.bf16.gmra.mrb[72].mxu0 %vm944_vm1, %v6690_v17 }
 0x14f   : > { %5089 = vmatprep.mubr.msk.bf16.mxu1 %vm944_vm1, %v6378_v25  ;;  %5173 = vmatprep.mubr.msk.bf16.mxu0 %vm944_vm1, %v6694_v27 }
 0x156   : > { %5090 = vmatmul.mubr.msk.bf16.gmra.mrb[28].mxu1 %vm944_vm1, %v6409_v63  ;;  %5174 = vmatmul.mubr.msk.bf16.gmra.mrb[76].mxu0 %vm944_vm1, %v6702_v11 }
 0x157   : > { %5093 = vmatprep.mubr.msk.bf16.mxu1 %vm944_vm1, %v6418_v20  ;;  %5179 = vmatprep.mubr.msk.bf16.mxu0 %vm944_vm1, %v1810_v44  ;;  %v2777_v44 = vld [vmem:[#allocation2 + $0x91] sm:$0xff] }
 0x15e   : > { %5094 = vmatmul.mubr.msk.bf16.gmra.mrb[0].mxu1 %vm944_vm1, %v6451_v42  ;;  %5180 = vmatmul.mubr.msk.bf16.vlgmr.msra.gmra.mrb[48].mxu0 %vm944_vm1, %v6424_v48  ;;  %v2865_v48 = vsel %vm1120_vm2, %v6645_v24, 0 }
 0x15f   : > { %5097 = vmatprep.mubr.msk.bf16.mxu1 %vm944_vm1, %v6458_v9  ;;  %5183 = vmatprep.mubr.msk.bf16.mxu0 %vm944_vm1, %v6466_v29 }
 0x160   : > { %5212 = vmatpush3.bf16.msra.mxu0 %v2310_v16 }
 0x166   : > { %5098 = vmatmul.mubr.msk.bf16.gmra.mrb[4].mxu1 %vm944_vm1, %v6513_v12  ;;  %5184 = vmatmul.mubr.msk.bf16.gmra.mrb[52].mxu0 %vm944_vm1, %v6476_v10 }
 0x167   : > { %5101 = vmatprep.mubr.msk.bf16.mxu1 %vm944_vm1, %v6520_v30  ;;  %5187 = vmatprep.mubr.msk.bf16.mxu0 %vm944_vm1, %v6528_v32 }
 0x16e   : > { %5102 = vmatmul.mubr.msk.bf16.gmra.mrb[8].mxu1 %vm944_vm1, %v6557_v37  ;;  %5188 = vmatmul.mubr.msk.bf16.gmra.mrb[56].mxu0 %vm944_vm1, %v6535_v5 }
 0x16f   : > { %5105 = vmatprep.mubr.msk.bf16.mxu1 %vm944_vm1, %v6564_v8  ;;  %5191 = vmatprep.mubr.msk.bf16.mxu0 %vm944_vm1, %v6568_v54 }
 0x176   : > { %5106 = vmatmul.mubr.msk.bf16.gmra.mrb[12].mxu1 %vm944_vm1, %v6591_v45  ;;  %5192 = vmatmul.mubr.msk.bf16.gmra.mrb[60].mxu0 %vm944_vm1, %v6572_v22 }
 0x177   : > { %5111 = vmatprep.mubr.msk.bf16.mxu1 %vm944_vm1, %v6297_v51  ;;  %5195 = vmatprep.mubr.msk.bf16.mxu0 %vm944_vm1, %v6600_v61  ;;  %v1482_v51 = vld [vmem:[#allocation2 + $0x120] sm:$0xff] }
 0x17e   : > { %5112 = vmatmul.mubr.msk.bf16.vlgmr.msra.gmra.mrb[16].mxu1 %vm944_vm1, %v6335_v53  ;;  %5196 = vmatmul.mubr.msk.bf16.gmra.mrb[64].mxu0 %vm944_vm1, %v6604_v21  ;;  %v1483_v53 = vld [vmem:[#allocation2 + $0x128] sm:$0xff] }
 0x17f   : > { %5246 = vmatpush3.bf16.msra.mxu1 %v2865_v48  ;;  %5115 = vmatprep.mubr.msk.bf16.mxu1 %vm944_vm1, %v6342_v39  ;;  %v1499_v39 = vpack.c.bf16 %v1483_v53, %v1482_v51  ;;  %v2782_v51 = vld [vmem:[#allocation2 + $0xb9] sm:$0xff] }
 0x180   : > { %5199 = vmatprep.mubr.msk.bf16.mxu0 %vm944_vm1, %v6631_v38  ;;  %5583 = vmatprep.subr.msk.bf16.mxu1 %vm1120_vm2, %v4747_v47 }
 0x186   : > { %5116 = vmatmul.mubr.msk.bf16.gmra.mrb[20].mxu1 %vm944_vm1, %v6371_v19  ;;  %5200 = vmatmul.mubr.msk.bf16.gmra.mrb[68].mxu0 %vm944_vm1, %v6637_v58  ;;  %v2763_v19 = vld [vmem:[#allocation2 + $0x21] sm:$0xff] }
 0x187   : > { %5119 = vmatprep.mubr.msk.bf16.mxu1 %vm944_vm1, %v6378_v25  ;;  %5203 = vmatprep.mubr.msk.bf16.mxu0 %vm944_vm1, %v6668_v3  ;;  %v2764_v25 = vld [vmem:[#allocation2 + $0x29] sm:$0xff] }
 0x18e   : > { %5120 = vmatmul.mubr.msk.bf16.gmra.mrb[24].mxu1 %vm944_vm1, %v6409_v63  ;;  %5204 = vmatmul.mubr.msk.bf16.gmra.mrb[72].mxu0 %vm944_vm1, %v6672_v13  ;;  %v6807_v63 = vpack.c.bf16 %v2764_v25, %v2763_v19  ;;  %v2784_v19 = vld [vmem:[#allocation2 + $0xc9] sm:$0xff] }
 0x18f   : > { %5123 = vmatprep.mubr.msk.bf16.mxu1 %vm944_vm1, %v6418_v20  ;;  %5207 = vmatprep.mubr.msk.bf16.mxu0 %vm944_vm1, %v6690_v17  ;;  %v2766_v20 = vld [vmem:[#allocation2 + $0x39] sm:$0xff] }
 0x196   : > { %5124 = vmatmul.mubr.msk.bf16.gmra.mrb[28].mxu1 %vm944_vm1, %v6451_v42  ;;  %5208 = vmatmul.mubr.msk.bf16.gmra.mrb[76].mxu0 %vm944_vm1, %v6694_v27  ;;  %v2765_v42 = vld [vmem:[#allocation2 + $0x31] sm:$0xff] }
 0x197   : > { %5127 = vmatprep.mubr.msk.bf16.mxu1 %vm944_vm1, %v6458_v9  ;;  %5213 = vmatprep.mubr.msk.bf16.mxu0 %vm944_vm1, %v6466_v29  ;;  %v2767_v9 = vld [vmem:[#allocation2 + $0x41] sm:$0xff]  ;;  %v2768_v29 = vld [vmem:[#allocation2 + $0x49] sm:$0xff] }
 0x19e   : > { %5128 = vmatmul.mubr.msk.bf16.gmra.mrb[0].mxu1 %vm944_vm1, %v6513_v12  ;;  %5214 = vmatmul.mubr.msk.bf16.vlgmr.msra.gmra.mrb[48].mxu0 %vm944_vm1, %v6476_v10  ;;  %v6816_v10 = vpack.c.bf16 %v2766_v20, %v2765_v42  ;;  %v3032_v12 = vsel %vm1120_vm2, %v4747_v47, 0  ;;  %v6870_v47 = vpack.c.bf16 %v2780_v41, %v2779_v43  ;;  %v2781_v20 = vld [vmem:[#allocation2 + $0xb1] sm:$0xff]  ;;  %v2791_v41 = vld [vmem:[#allocation2 + $0x101] sm:$0xff] }
 0x19f   : > { %5131 = vmatprep.mubr.msk.bf16.mxu1 %vm944_vm1, %v6520_v30  ;;  %5217 = vmatprep.mubr.msk.bf16.mxu0 %vm944_vm1, %v6528_v32  ;;  %v6821_v30 = vpack.c.bf16 %v2768_v29, %v2767_v9  ;;  %v6826_v32 = vld [vmem:[%s7603_s3 + $0x10] sm:$0x3]  ;;  %v6885_v9 = vpack.c.bf16 %v2782_v51, %v2781_v20 }
 0x1a0   : > { %v2789_v51 = vld [vmem:[#allocation2 + $0xf1] sm:$0xff] }
 0x1a6   : > { %5132 = vmatmul.mubr.msk.bf16.gmra.mrb[4].mxu1 %vm944_vm1, %v6557_v37  ;;  %5218 = vmatmul.mubr.msk.bf16.gmra.mrb[52].mxu0 %vm944_vm1, %v6535_v5  ;;  %v2770_v5 = vld [vmem:[#allocation2 + $0x59] sm:$0xff]  ;;  %v2771_v37 = vld [vmem:[#allocation2 + $0x61] sm:$0xff] }
 0x1a7   : > { %5135 = vmatprep.mubr.msk.bf16.mxu1 %vm944_vm1, %v6564_v8  ;;  %5221 = vmatprep.mubr.msk.bf16.mxu0 %vm944_vm1, %v6568_v54  ;;  %v2772_v8 = vld [vmem:[#allocation2 + $0x69] sm:$0xff]  ;;  %v2769_v54 = vld [vmem:[#allocation2 + $0x51] sm:$0xff] }
 0x1ae   : > { %5136 = vmatmul.mubr.msk.bf16.gmra.mrb[8].mxu1 %vm944_vm1, %v6591_v45  ;;  %5222 = vmatmul.mubr.msk.bf16.gmra.mrb[56].mxu0 %vm944_vm1, %v6572_v22  ;;  %v6836_v22 = vpack.c.bf16 %v2770_v5, %v2769_v54  ;;  %v6838_v45 = vpack.c.bf16 %v2772_v8, %v2771_v37  ;;  %v2786_v5 = vld [vmem:[#allocation2 + $0xd9] sm:$0xff]  ;;  %v2787_v8 = vld [vmem:[#allocation2 + $0xe1] sm:$0xff]  ;;  %v2788_v54 = vld [vmem:[#allocation2 + $0xe9] sm:$0xff] }
 0x1af   : > { %5139 = vmatprep.mubr.msk.bf16.mxu1 %vm944_vm1, %v6596_v56  ;;  %5225 = vmatprep.mubr.msk.bf16.mxu0 %vm944_vm1, %v6600_v61  ;;  %v2774_v56 = vld [vmem:[#allocation2 + $0x79] sm:$0xff]  ;;  %v2775_v61 = vld [vmem:[#allocation2 + $0x81] sm:$0xff] }
 0x1b6   : > { %5140 = vmatmul.mubr.msk.bf16.gmra.mrb[12].mxu1 %vm944_vm1, %v1499_v39  ;;  %5226 = vmatmul.mubr.msk.bf16.gmra.mrb[60].mxu0 %vm944_vm1, %v6604_v21  ;;  %v2776_v21 = vld [vmem:[#allocation2 + $0x89] sm:$0xff]  ;;  %v2783_v39 = vld [vmem:[#allocation2 + $0xc1] sm:$0xff] }
 0x1b7   : > { %5247 = vmatprep.mubr.msk.bf16.mxu1 %vm944_vm1, %v6807_v63  ;;  %5229 = vmatprep.mubr.msk.bf16.mxu0 %vm944_vm1, %v6631_v38  ;;  %v2773_v38 = vld [vmem:[#allocation2 + $0x71] sm:$0xff]  ;;  %v6850_v24 = vpack.c.bf16 %v2776_v21, %v2775_v61  ;;  %v6887_v29 = vpack.c.bf16 %v2784_v19, %v2783_v39 }
 0x1b8   : > { %v2785_v61 = vld [vmem:[#allocation2 + $0xd1] sm:$0xff] }
 0x1be   : > { %5248 = vmatmul.mubr.msk.bf16.vlgmr.msra.gmra.mrb[32].mxu1 %vm944_vm1, %v6816_v10  ;;  %5230 = vmatmul.mubr.msk.bf16.gmra.mrb[64].mxu0 %vm944_vm1, %v6637_v58  ;;  %v6848_v58 = vpack.c.bf16 %v2774_v56, %v2773_v38  ;;  %v6901_v38 = vpack.c.bf16 %v2786_v5, %v2785_v61  ;;  %v2811_v5 = vld [vmem:[#allocation2 + $0x111] sm:$0xff]  ;;  %v2762_v61 = vld [vmem:[#allocation2 + $0x19] sm:$0xff] }
 0x1bf   : > { %5280 = vmatpush3.bf16.msra.mxu1 %v3032_v12  ;;  %5233 = vmatprep.mubr.msk.bf16.mxu0 %vm944_vm1, %v6668_v3  ;;  %v2242_v3 = vld [vmem:[#allocation2 + $0x127] sm:$0xff] }
 0x1c0   : > { %5251 = vmatprep.mubr.msk.bf16.mxu1 %vm944_vm1, %v6821_v30  ;;  %5584 = vmatprep.subr.msk.bf16.mxu1 %vm1120_vm2, %v6826_v32  ;;  %v2258_v48 = vpack.c.bf16 %v2242_v3, %v2241_v7  ;;  %v6903_v3 = vpack.c.bf16 %v2788_v54, %v2787_v8  ;;  %v2790_v7 = vld [vmem:[#allocation2 + $0xf9] sm:$0xff]  ;;  %v2761_v54 = vld [vmem:[#allocation2 + $0x11] sm:$0xff] }
 0x1c1   : > { %v6917_v19 = vpack.c.bf16 %v2790_v7, %v2789_v51  ;;  %v2812_v8 = vld [vmem:[#allocation2 + $0x119] sm:$0xff]  ;;  %v2793_v18 = vpack.c.bf16 %v2762_v61, %v2761_v54  ;;  %v3294_v7 = vsel %vm1120_vm2, %v6826_v32, 0 }
 0x1c2   : > { %v6925_v23 = vpack.c.bf16 %v2812_v8, %v2811_v5 }
 0x1c6   : > { %5252 = vmatmul.mubr.msk.bf16.gmra.mrb[36].mxu1 %vm944_vm1, %v6836_v22  ;;  %5234 = vmatmul.mubr.msk.bf16.gmra.mrb[68].mxu0 %vm944_vm1, %v6672_v13  ;;  %v2778_v13 = vld [vmem:[#allocation2 + $0x99] sm:$0xff] }
 0x1c7   : > { %5255 = vmatprep.mubr.msk.bf16.mxu1 %vm944_vm1, %v6838_v45  ;;  %5237 = vmatprep.mubr.msk.bf16.mxu0 %vm944_vm1, %v6690_v17 }
 0x1ce   : > { %5256 = vmatmul.mubr.msk.bf16.gmra.mrb[40].mxu1 %vm944_vm1, %v6848_v58  ;;  %5238 = vmatmul.mubr.msk.bf16.gmra.mrb[72].mxu0 %vm944_vm1, %v6694_v27  ;;  %v6868_v27 = vpack.c.bf16 %v2778_v13, %v2777_v44  ;;  %v2792_v44 = vld [vmem:[#allocation2 + $0x109] sm:$0xff] }
 0x1cf   : > { %5259 = vmatprep.mubr.msk.bf16.mxu1 %vm944_vm1, %v6850_v24  ;;  %5241 = vmatprep.mubr.msk.bf16.mxu0 %vm944_vm1, %v6702_v11  ;;  %v6919_v20 = vpack.c.bf16 %v2792_v44, %v2791_v41 }
 0x1d1   : > { %v6860_v17 = vpop.f32.mrb[32].mxu0 }
 0x1d2   : > { %v6862_v28 = vpop.f32.mrb[33].mxu0 }
 0x1d3   : > { %v6864_v40 = vpop.f32.mrb[34].mxu0 }
 0x1d4   : > { %v6866_v16 = vpop.f32.mrb[35].mxu0 }
 0x1d6   : > { %5260 = vmatmul.mubr.msk.bf16.gmra.mrb[44].mxu1 %vm944_vm1, %v6868_v27  ;;  %5242 = vmatmul.mubr.msk.bf16.gmra.mrb[76].mxu0 %vm944_vm1, %v2258_v48 }
 0x1d7   : > { %5263 = vmatprep.mubr.msk.bf16.mxu1 %vm944_vm1, %v6870_v47 }
 0x1d9   : > { %v6877_v11 = vpop.f32.mrb[36].mxu0 }
 0x1da   : > { %v6879_v53 = vpop.f32.mrb[37].mxu0 }
 0x1db   : > { %v6881_v25 = vpop.f32.mrb[38].mxu0 }
 0x1dc   : > { %v6883_v42 = vpop.f32.mrb[39].mxu0 }
 0x1de   : > { %5264 = vmatmul.mubr.msk.bf16.gmra.mrb[48].mxu1 %vm944_vm1, %v6885_v9 }
 0x1df   : > { %5267 = vmatprep.mubr.msk.bf16.mxu1 %vm944_vm1, %v6887_v29 }
 0x1e1   : > { %v6893_v12 = vpop.f32.mrb[40].mxu0 }
 0x1e2   : > { %v6895_v37 = vpop.f32.mrb[41].mxu0 }
 0x1e3   : > { %v6897_v56 = vpop.f32.mrb[42].mxu0 }
 0x1e4   : > { %v6899_v21 = vpop.f32.mrb[43].mxu0 }
 0x1e6   : > { %5268 = vmatmul.mubr.msk.bf16.gmra.mrb[52].mxu1 %vm944_vm1, %v6901_v38 }
 0x1e7   : > { %5271 = vmatprep.mubr.msk.bf16.mxu1 %vm944_vm1, %v6903_v3 }
 0x1e9   : > { %v6909_v13 = vpop.f32.mrb[44].mxu0 }
 0x1ea   : > { %v6911_v43 = vpop.f32.mrb[45].mxu0 }
 0x1eb   : > { %v6913_v48 = vpop.f32.mrb[46].mxu0 }
 0x1ec   : > { %v6915_v39 = vpop.f32.mrb[47].mxu0 }
 0x1ee   : > { %5272 = vmatmul.mubr.msk.bf16.gmra.mrb[56].mxu1 %vm944_vm1, %v6917_v19 }
 0x1ef   : > { %5275 = vmatprep.mubr.msk.bf16.mxu1 %vm944_vm1, %v6919_v20 }
 0x1f6   : > { %5276 = vmatmul.mubr.msk.bf16.gmra.mrb[60].mxu1 %vm944_vm1, %v6925_v23 }
 0x1f7   : > { %5281 = vmatprep.mubr.msk.bf16.mxu1 %vm944_vm1, %v2793_v18  ;;  %v4024_v18 = vld [vmem:[%s7605_s5] sm:$0x3] }
 0x1f8   : > { %5585 = vmatprep.subr.msk.bf16.mxu0 %vm1120_vm2, %v4024_v18 }
 0x1fe   : > { %5282 = vmatmul.mubr.msk.bf16.vlgmr.msra.gmra.mrb[32].mxu1 %vm944_vm1, %v6807_v63  ;;  %v4081_v63 = vsel %vm1120_vm2, %v4024_v18, 0 }
 0x1ff   : > { %5314 = vmatpush3.bf16.msra.mxu1 %v3294_v7  ;;  %5285 = vmatprep.mubr.msk.bf16.mxu1 %vm944_vm1, %v6816_v10 }
 0x200   : > { %5348 = vmatpush3.bf16.msra.mxu0 %v4081_v63 }
 0x206   : > { %5286 = vmatmul.mubr.msk.bf16.gmra.mrb[36].mxu1 %vm944_vm1, %v6821_v30 }
 0x207   : > { %5289 = vmatprep.mubr.msk.bf16.mxu1 %vm944_vm1, %v6836_v22 }
 0x20e   : > { %5290 = vmatmul.mubr.msk.bf16.gmra.mrb[40].mxu1 %vm944_vm1, %v6838_v45 }
 0x20f   : > { %5293 = vmatprep.mubr.msk.bf16.mxu1 %vm944_vm1, %v6848_v58 }
 0x216   : > { %5294 = vmatmul.mubr.msk.bf16.gmra.mrb[44].mxu1 %vm944_vm1, %v6850_v24 }
 0x217   : > { %5297 = vmatprep.mubr.msk.bf16.mxu1 %vm944_vm1, %v6868_v27 }
 0x21e   : > { %5298 = vmatmul.mubr.msk.bf16.gmra.mrb[48].mxu1 %vm944_vm1, %v6870_v47 }
 0x21f   : > { %5301 = vmatprep.mubr.msk.bf16.mxu1 %vm944_vm1, %v6885_v9 }
 0x226   : > { %5302 = vmatmul.mubr.msk.bf16.gmra.mrb[52].mxu1 %vm944_vm1, %v6887_v29 }
 0x227   : > { %5305 = vmatprep.mubr.msk.bf16.mxu1 %vm944_vm1, %v6901_v38 }
 0x22e   : > { %5306 = vmatmul.mubr.msk.bf16.gmra.mrb[56].mxu1 %vm944_vm1, %v6903_v3 }
 0x22f   : > { %5309 = vmatprep.mubr.msk.bf16.mxu1 %vm944_vm1, %v6917_v19 }
 0x236   : > { %5310 = vmatmul.mubr.msk.bf16.gmra.mrb[60].mxu1 %vm944_vm1, %v6919_v20 }
 0x237   : > { %5315 = vmatprep.mubr.msk.bf16.mxu1 %vm944_vm1, %v6816_v10 }
 0x23e   : > { %5316 = vmatmul.mubr.msk.bf16.vlgmr.msra.gmra.mrb[32].mxu1 %vm944_vm1, %v6821_v30 }
 0x23f   : > { %5319 = vmatprep.mubr.msk.bf16.mxu1 %vm944_vm1, %v6836_v22 }
 0x246   : > { %5320 = vmatmul.mubr.msk.bf16.gmra.mrb[36].mxu1 %vm944_vm1, %v6838_v45 }
 0x247   : > { %5323 = vmatprep.mubr.msk.bf16.mxu1 %vm944_vm1, %v6848_v58 }
 0x24e   : > { %5324 = vmatmul.mubr.msk.bf16.gmra.mrb[40].mxu1 %vm944_vm1, %v6850_v24 }
 0x24f   : > { %5327 = vmatprep.mubr.msk.bf16.mxu1 %vm944_vm1, %v6868_v27 }
 0x251   : > { %v5113_v32 = vpop.f32.mrb[16].mxu1 }
 0x252   : > { %v5383_v10 = vadd.f32 %v5113_v32, %v6860_v17  ;;  %v1587_v41 = vpop.f32.mrb[17].mxu1 }
 0x253   : > { %v5384_v30 = vadd.f32 %v1587_v41, %v6862_v28  ;;  %v5114_v44 = vpop.f32.mrb[18].mxu1 }
 0x254   : > { %v5385_v22 = vadd.f32 %v5114_v44, %v6864_v40  ;;  %v1590_v51 = vpop.f32.mrb[19].mxu1 }
 0x255   : > { %v5386_v45 = vadd.f32 %v1590_v51, %v6866_v16 }
 0x256   : > { %5328 = vmatmul.mubr.msk.bf16.gmra.mrb[44].mxu1 %vm944_vm1, %v6870_v47 }
 0x257   : > { %5331 = vmatprep.mubr.msk.bf16.mxu1 %vm944_vm1, %v6885_v9 }
 0x259   : > { %v5117_v58 = vpop.f32.mrb[20].mxu1 }
 0x25a   : > { %v5387_v24 = vadd.f32 %v5117_v58, %v6877_v11  ;;  %v1603_v27 = vpop.f32.mrb[21].mxu1 }
 0x25b   : > { %v5388_v17 = vadd.f32 %v1603_v27, %v6879_v53  ;;  %v5118_v5 = vpop.f32.mrb[22].mxu1 }
 0x25c   : > { %v5389_v28 = vadd.f32 %v5118_v5, %v6881_v25  ;;  %v1606_v8 = vpop.f32.mrb[23].mxu1 }
 0x25d   : > { %v5390_v40 = vadd.f32 %v1606_v8, %v6883_v42 }
 0x25e   : > { %5332 = vmatmul.mubr.msk.bf16.gmra.mrb[48].mxu1 %vm944_vm1, %v6887_v29 }
 0x25f   : > { %5335 = vmatprep.mubr.msk.bf16.mxu1 %vm944_vm1, %v6901_v38 }
 0x261   : > { %v5121_v16 = vpop.f32.mrb[24].mxu1 }
 0x262   : > { %v6998_v47 = vadd.f32 %v5121_v16, %v6893_v12  ;;  %v1619_v11 = vpop.f32.mrb[25].mxu1 }
 0x263   : > { %v7001_v9 = vadd.f32 %v1619_v11, %v6895_v37  ;;  %v5122_v53 = vpop.f32.mrb[26].mxu1 }
 0x264   : > { %v7004_v25 = vadd.f32 %v5122_v53, %v6897_v56  ;;  %v1622_v54 = vpop.f32.mrb[27].mxu1 }
 0x265   : > { %v7007_v42 = vadd.f32 %v1622_v54, %v6899_v21 }
 0x266   : > { %5336 = vmatmul.mubr.msk.bf16.gmra.mrb[52].mxu1 %vm944_vm1, %v6903_v3  ;;  %v3225_v3 = vld [vmem:[#allocation2 + $0x121] sm:$0xff] }
 0x267   : > { %5339 = vmatprep.mubr.msk.bf16.mxu1 %vm944_vm1, %v6917_v19 }
 0x269   : > { %v5125_v29 = vpop.f32.mrb[28].mxu1 }
 0x26a   : > { %v7014_v12 = vadd.f32 %v5125_v29, %v6909_v13  ;;  %v1635_v37 = vpop.f32.mrb[29].mxu1  ;;  %v3226_v13 = vld [vmem:[#allocation2 + $0x129] sm:$0xff] }
 0x26b   : > { %v7017_v38 = vadd.f32 %v1635_v37, %v6911_v43  ;;  %v5126_v56 = vpop.f32.mrb[30].mxu1  ;;  %v3242_v63 = vpack.c.bf16 %v3226_v13, %v3225_v3 }
 0x26c   : > { %v7020_v61 = vadd.f32 %v5126_v56, %v6913_v48  ;;  %v1638_v21 = vpop.f32.mrb[31].mxu1 }
 0x26d   : > { %v7023_v7 = vadd.f32 %v1638_v21, %v6915_v39 }
 0x26e   : > { %5340 = vmatmul.mubr.msk.bf16.gmra.mrb[56].mxu1 %vm944_vm1, %v6919_v20 }
 0x26f   : > { %5343 = vmatprep.mubr.msk.bf16.mxu1 %vm944_vm1, %v6925_v23 }
 0x271   : > { %v7029_v19 = vpop.f32.mrb[0].mxu1  ;;  %v5215_v43 = vpop.f32.mrb[48].mxu0 }
 0x272   : > { %v7031_v18 = vpop.f32.mrb[1].mxu1  ;;  %v2667_v48 = vmul.f32 %v5215_v43, %v6293_v46  ;;  %v2346_v32 = vpop.f32.mrb[49].mxu0 }
 0x273   : > { %v7034_v41 = vpop.f32.mrb[2].mxu1  ;;  %v2665_v39 = vmul.f32 %v6267_v15, %v2346_v32  ;;  %v5216_v44 = vpop.f32.mrb[50].mxu0 }
 0x274   : > { %v7037_v20 = vpop.f32.mrb[3].mxu1  ;;  %v7039_v51 = vadd.f32 %v5383_v10, %v2667_v48  ;;  %v2668_v23 = vmul.f32 %v5216_v44, %v6284_v36  ;;  %v2349_v58 = vpop.f32.mrb[51].mxu0 }
 0x275   : > { %v7042_v27 = vadd.f32 %v5384_v30, %v2665_v39  ;;  %v2666_v5 = vmul.f32 %v6263_v1, %v2349_v58 }
 0x276   : > { %5344 = vmatmul.mubr.msk.bf16.gmra.mrb[60].mxu1 %vm944_vm1, %v3242_v63  ;;  %v7046_v46 = vadd.f32 %v5385_v22, %v2668_v23 }
 0x277   : > { %v7048_v8 = vadd.f32 %v5386_v45, %v2666_v5 }
 0x279   : > { %v7050_v16 = vpop.f32.mrb[4].mxu1  ;;  %v5219_v15 = vpop.f32.mrb[52].mxu0 }
 0x27a   : > { %v7052_v11 = vpop.f32.mrb[5].mxu1  ;;  %v2671_v10 = vmul.f32 %v5219_v15, %v6360_v52  ;;  %v2362_v53 = vpop.f32.mrb[53].mxu0 }
 0x27b   : > { %v7055_v36 = vpop.f32.mrb[6].mxu1  ;;  %v2669_v30 = vmul.f32 %v6326_v57, %v2362_v53  ;;  %v5220_v54 = vpop.f32.mrb[54].mxu0 }
 0x27c   : > { %v7058_v1 = vpop.f32.mrb[7].mxu1  ;;  %v7060_v29 = vadd.f32 %v5387_v24, %v2671_v10  ;;  %v2672_v22 = vmul.f32 %v5220_v54, %v6354_v49  ;;  %v2365_v45 = vpop.f32.mrb[55].mxu0 }
 0x27d   : > { %v7063_v37 = vadd.f32 %v5388_v17, %v2669_v30  ;;  %v2670_v56 = vmul.f32 %v6323_v4, %v2365_v45 }
 0x27e   : > { %v7066_v21 = vadd.f32 %v5389_v28, %v2672_v22  ;;  %v2663_v22 = vpop.permute.xlu1 %2662 }
 0x27f   : > { %v7068_v52 = vadd.f32 %v5390_v40, %v2670_v56 }
 0x281   : > { %v7070_v3 = vpop.f32.mrb[8].mxu1  ;;  %v5223_v13 = vpop.f32.mrb[56].mxu0 }
 0x282   : > { %v7072_v57 = vpop.f32.mrb[9].mxu1  ;;  %v2675_v43 = vmul.f32 %v5223_v13, %v6414_v62  ;;  %v2378_v24 = vpop.f32.mrb[57].mxu0 }
 0x283   : > { %v7075_v63 = vpop.f32.mrb[10].mxu1  ;;  %v2673_v49 = vmul.f32 %v6386_v31, %v2378_v24  ;;  %v5224_v17 = vpop.f32.mrb[58].mxu0 }
 0x284   : > { %v7078_v48 = vpop.f32.mrb[11].mxu1  ;;  %v7081_v4 = vadd.f32 %v6998_v47, %v2675_v43  ;;  %v2676_v28 = vmul.f32 %v5224_v17, %v6405_v55  ;;  %v2381_v40 = vpop.f32.mrb[59].mxu0 }
 0x285   : > { %v7085_v32 = vadd.f32 %v7001_v9, %v2673_v49  ;;  %v2674_v39 = vmul.f32 %v6380_v26, %v2381_v40  ;;  %v7130_v49 = vpop.permute.xlu1 %3496 }
 0x286   : > { %v7089_v62 = vadd.f32 %v7004_v25, %v2676_v28 }
 0x287   : > { %v7092_v44 = vadd.f32 %v7007_v42, %v2674_v39 }
 0x289   : > { %v7094_v31 = vpop.f32.mrb[12].mxu1  ;;  %v5227_v23 = vpop.f32.mrb[60].mxu0 }
 0x28a   : > { %v7096_v58 = vpop.f32.mrb[13].mxu1  ;;  %v2679_v47 = vmul.f32 %v5227_v23, %v6496_v6  ;;  %v2394_v55 = vpop.f32.mrb[61].mxu0  ;;  %v7625_v23 = vld [vmem:[#allocation4_spill] sm:$0xff] }
 0x28b   : > { %v7099_v5 = vpop.f32.mrb[14].mxu1  ;;  %v2677_v9 = vmul.f32 %v6445_v2, %v2394_v55  ;;  %v5228_v15 = vpop.f32.mrb[62].mxu0  ;;  %v7627_v55 = vld [vmem:[#allocation3_spill] sm:$0xff] }
 0x28c   : > { %v7102_v26 = vpop.f32.mrb[15].mxu1  ;;  %v7105_v25 = vadd.f32 %v7014_v12, %v2679_v47  ;;  %v2680_v42 = vmul.f32 %v5228_v15, %v6483_v59  ;;  %v2397_v10 = vpop.f32.mrb[63].mxu0 }
 0x28d   : > { %v7109_v53 = vadd.f32 %v7017_v38, %v2677_v9  ;;  %v2678_v30 = vmul.f32 %v6439_v35, %v2397_v10  ;;  %v2658_v6 = vpop.permute.xlu0 %2657  ;;  %v7142_v39 = vpop.permute.xlu1 %3506 }
 0x28e   : > { %v7113_v54 = vadd.f32 %v7020_v61, %v2680_v42 }
 0x28f   : > { %v7116_v2 = vadd.f32 %v7023_v7, %v2678_v30 }
 0x291   : > { %v5231_v45 = vpop.f32.mrb[64].mxu0  ;;  %v7120_v43 = vpop.permute.xlu0 %3491 }
 0x292   : > { %v2683_v12 = vmul.f32 %v5231_v45, %v6562_v0  ;;  %v2410_v56 = vpop.f32.mrb[65].mxu0  ;;  %v7160_v10 = vpop.permute.xlu1 %3516 }
 0x293   : > { %v2681_v59 = vmul.f32 %v6530_v60, %v2410_v56  ;;  %v5232_v13 = vpop.f32.mrb[66].mxu0 }
 0x294   : > { %v7123_v38 = vadd.f32 %v7029_v19, %v2683_v12  ;;  %v2684_v35 = vmul.f32 %v5232_v13, %v6554_v50  ;;  %v2413_v61 = vpop.f32.mrb[67].mxu0  ;;  %v7631_v12 = vld [vmem:[#allocation6_spill] sm:$0xff]  ;;  %v7633_v13 = vld [vmem:[#allocation7_spill] sm:$0xff] }
 0x295   : > { %v7127_v24 = vadd.f32 %v2681_v59, %v7031_v18  ;;  %v2682_v7 = vmul.f32 %v6522_v14, %v2413_v61  ;;  %v7138_v28 = vpop.permute.xlu0 %3501  ;;  %v7635_v61 = vld [vmem:[#allocation5_spill] sm:$0xff] }
 0x296   : > { %v7133_v0 = vadd.f32 %v7034_v41, %v2684_v35 }
 0x297   : > { %7621 = vst [vmem:[#allocation11_spill] sm:$0xff] %v7127_v24  ;;  %v7136_v60 = vadd.f32 %v2682_v7, %v7037_v20 }
 0x298   : > { %7622 = vst [vmem:[#allocation12_spill] sm:$0xff] %v7133_v0 }
 0x299   : > { %7623 = vst [vmem:[#allocation13_spill] sm:$0xff] %v7136_v60  ;;  %v5235_v17 = vpop.f32.mrb[68].mxu0 }
 0x29a   : > { %v2687_v19 = vmul.f32 %v5235_v17, %v6617_v34  ;;  %v2426_v50 = vpop.f32.mrb[69].mxu0 }
 0x29b   : > { %v2685_v40 = vmul.f32 %v6589_v33, %v2426_v50  ;;  %v5236_v18 = vpop.f32.mrb[70].mxu0  ;;  %v7158_v33 = vpop.permute.xlu0 %3511 }
 0x29c   : > { %v7145_v14 = vadd.f32 %v7050_v16, %v2687_v19  ;;  %v2688_v41 = vmul.f32 %v5236_v18, %v7625_v23  ;;  %v2429_v47 = vpop.f32.mrb[71].mxu0  ;;  %v7630_v16 = vld [vmem:[#allocation8_spill] sm:$0xff] }
 0x29d   : > { %v7149_v20 = vadd.f32 %v2685_v40, %v7052_v11  ;;  %v2686_v9 = vmul.f32 %v7627_v55, %v2429_v47  ;;  %v7180_v40 = vpop.permute.xlu1 %3526 }
 0x29e   : > { %7624 = vst [vmem:[#allocation14_spill] sm:$0xff] %v7145_v14  ;;  %v7153_v15 = vadd.f32 %v7055_v36, %v2688_v41  ;;  %v7638_v41 = vld [vmem:[#allocation10_spill] sm:$0xff] }
 0x29f   : > { %7626 = vst [vmem:[#allocation4_spill] sm:$0xff] %v7149_v20  ;;  %v7156_v34 = vadd.f32 %v2686_v9, %v7058_v1  ;;  %v7172_v17 = vpop.permute.xlu0 %3521 }
 0x2a0   : > { %7628 = vst [vmem:[#allocation3_spill] sm:$0xff] %v7153_v15 }
 0x2a1   : > { %7629 = vst [vmem:[#allocation15_spill] sm:$0xff] %v7156_v34  ;;  %v5239_v42 = vpop.f32.mrb[72].mxu0 }
 0x2a2   : > { %v2691_v30 = vmul.f32 %v5239_v42, %v7630_v16  ;;  %v2442_v45 = vpop.f32.mrb[73].mxu0 }
 0x2a3   : > { %v2689_v56 = vmul.f32 %v7631_v12, %v2442_v45  ;;  %v5240_v11 = vpop.f32.mrb[74].mxu0  ;;  %v3787_v45 = vpop.permute.xlu1 %3786 }
 0x2a4   : > { %v7165_v59 = vadd.f32 %v7070_v3, %v2691_v30  ;;  %v2692_v36 = vmul.f32 %v5240_v11, %v7633_v13  ;;  %v2445_v35 = vpop.f32.mrb[75].mxu0 }
 0x2a5   : > { %v7169_v1 = vadd.f32 %v2689_v56, %v7072_v57  ;;  %v2690_v7 = vmul.f32 %v7635_v61, %v2445_v35  ;;  %v7183_v57 = vpop.permute.xlu0 %3531 }
 0x2a6   : > { %7632 = vst [vmem:[#allocation8_spill] sm:$0xff] %v7165_v59  ;;  %v7175_v19 = vadd.f32 %v7075_v63, %v2692_v36 }
 0x2a7   : > { %7634 = vst [vmem:[#allocation6_spill] sm:$0xff] %v7169_v1  ;;  %v7178_v50 = vadd.f32 %v2690_v7, %v7078_v48  ;;  %v7641_v48 = vld [vmem:[#allocation9_spill] sm:$0xff]  ;;  %v3797_v11 = vpop.permute.xlu1 %3796 }
 0x2a8   : > { %7636 = vst [vmem:[#allocation7_spill] sm:$0xff] %v7175_v19 }
 0x2a9   : > { %7637 = vst [vmem:[#allocation5_spill] sm:$0xff] %v7178_v50  ;;  %v5243_v3 = vpop.f32.mrb[76].mxu0  ;;  %v3792_v56 = vpop.permute.xlu0 %3791 }
 0x2aa   : > { %v2695_v18 = vmul.f32 %v5243_v3, %v2658_v6  ;;  %v2458_v23 = vpop.f32.mrb[77].mxu0 }
 0x2ab   : > { %v2693_v47 = vmul.f32 %v7638_v41, %v2458_v23  ;;  %v5244_v55 = vpop.f32.mrb[78].mxu0  ;;  %v7198_v36 = vpop.permute.xlu1 %3806 }
 0x2ac   : > { %v7186_v9 = vadd.f32 %v7094_v31, %v2695_v18  ;;  %v2696_v42 = vmul.f32 %v5244_v55, %v2663_v22  ;;  %v2461_v16 = vpop.f32.mrb[79].mxu0 }
 0x2ad   : > { %v7189_v63 = vadd.f32 %v2693_v47, %v7096_v58  ;;  %v2694_v30 = vmul.f32 %v7641_v48, %v2461_v16  ;;  %v3802_v13 = vpop.permute.xlu0 %3801 }
 0x2ae   : > { %7639 = vst [vmem:[#allocation10_spill] sm:$0xff] %v7186_v9  ;;  %v7193_v12 = vadd.f32 %v7099_v5, %v2696_v42 }
 0x2af   : > { %7640 = vst [vmem:[#allocation16_spill] sm:$0xff] %v7189_v63  ;;  %v7196_v6 = vadd.f32 %v2694_v30, %v7102_v26  ;;  %v7202_v22 = vpop.permute.xlu1 %3816 }
 0x2b0   : > { %7642 = vst [vmem:[#allocation9_spill] sm:$0xff] %v7193_v12 }
 0x2b1   : > { %7643 = vst [vmem:[#allocation17_spill] sm:$0xff] %v7196_v6  ;;  %v7200_v31 = vpop.permute.xlu0 %3811 }
 0x2b3   : > { %v7206_v35 = vpop.permute.xlu1 %3536 }
 0x2b5   : > { %v7204_v58 = vpop.permute.xlu0 %3821 }
 0x2b7   : > { %v7210_v5 = vpop.permute.xlu1 %3546 }
 0x2b9   : > { %v7208_v61 = vpop.permute.xlu0 %3541 }
 0x2bb   : > { %v7214_v26 = vpop.permute.xlu1 %3831 }
 0x2bd   : > { %v7212_v7 = vpop.permute.xlu0 %3826 }
 0x2bf   : > { %v7218_v18 = vpop.permute.xlu1 %3841 }
 0x2c1   : > { %v7216_v3 = vpop.permute.xlu0 %3836 }
 0x2c3   : > { %v7222_v41 = vpop.permute.xlu1 %3556 }
 0x2c5   : > { %v7220_v23 = vpop.permute.xlu0 %3551 }
 0x2c7   : > { %v7226_v55 = vpop.permute.xlu1 %3566 }
 0x2c9   : > { %v7224_v47 = vpop.permute.xlu0 %3561 }
 0x2cb   : > { %v7230_v16 = vpop.permute.xlu1 %3851 }
 0x2cd   : > { %v7228_v42 = vpop.permute.xlu0 %3846 }
 0x2cf   : > { %v7234_v30 = vpop.permute.xlu1 %3861 }
 0x2d1   : > { %v7232_v48 = vpop.permute.xlu0 %3856 }
 0x2d3   : > { %v7238_v12 = vpop.permute.xlu1 %3576 }
 0x2d4   : > { %7644 = vst [vmem:[#allocation18_spill] sm:$0xff] %v7238_v12 }
 0x2d5   : > { %v7236_v6 = vpop.permute.xlu0 %3571 }
 0x2d7   : > { %v7242_v9 = vpop.permute.xlu1 %3586 }
 0x2d8   : > { %7645 = vst [vmem:[#allocation19_spill] sm:$0xff] %v7242_v9 }
 0x2d9   : > { %v7240_v63 = vpop.permute.xlu0 %3581 }
 0x2db   : > { %v7246_v19 = vpop.permute.xlu1 %3871 }
 0x2dc   : > { %7647 = vst [vmem:[#allocation21_spill] sm:$0xff] %v7246_v19 }
 0x2dd   : > { %v7244_v50 = vpop.permute.xlu0 %3866 }
 0x2de   : > { %7646 = vst [vmem:[#allocation20_spill] sm:$0xff] %v7244_v50  ;;  %v7262_v50 = vld [vmem:[%s7604_s4] ss:$0 sm:$0xff] }
 0x2df   : > { %v7250_v59 = vpop.permute.xlu1 %3881 }
 0x2e0   : > { %7649 = vst [vmem:[#allocation23_spill] sm:$0xff] %v7250_v59 }
 0x2e1   : > { %v7248_v1 = vpop.permute.xlu0 %3876 }
 0x2e2   : > { %7648 = vst [vmem:[#allocation22_spill] sm:$0xff] %v7248_v1 }
 0x2e3   : > { %v7254_v15 = vpop.permute.xlu1 %3596 }
 0x2e4   : > { %7651 = vst [vmem:[#allocation25_spill] sm:$0xff] %v7254_v15 }
 0x2e5   : > { %v7252_v34 = vpop.permute.xlu0 %3591 }
 0x2e6   : > { %7650 = vst [vmem:[#allocation24_spill] sm:$0xff] %v7252_v34 }
 0x2e7   : > { %v7267_v15 = vpop.permute.xlu1 %3606 }
 0x2e8   : > { %7653 = vst [vmem:[#allocation27_spill] sm:$0xff] %v7267_v15 }
 0x2e9   : > { %v7257_v0 = vpop.permute.xlu0 %3601 }
 0x2ea   : > { %7652 = vst [vmem:[#allocation26_spill] sm:$0xff] %v7257_v0 }
 0x311   : > { %v5317_v20 = vpop.f32.mrb[32].mxu1 }
 0x312   : > { %v3651_v14 = vmul.f32 %v5317_v20, %v7138_v28  ;;  %v3330_v60 = vpop.f32.mrb[33].mxu1 }
 0x313   : > { %v3649_v19 = vmul.f32 %v7120_v43, %v3330_v60  ;;  %v5318_v1 = vpop.f32.mrb[34].mxu1 }
 0x314   : > { %v3683_v59 = vadd.f32 %v3651_v14, %v7039_v51  ;;  %v3652_v34 = vmul.f32 %v5318_v1, %v7142_v39  ;;  %v3333_v12 = vpop.f32.mrb[35].mxu1  ;;  %v7276_v14 = vpop.permute.xlu0 %3886 }
 0x315   : > { %v3681_v28 = vadd.f32 %v3649_v19, %v7042_v27  ;;  %v3650_v20 = vmul.f32 %v7130_v49, %v3333_v12 }
 0x316   : > { %v3722_v0 = vadd.f32 %v7262_v50, %v3683_v59  ;;  %v3684_v24 = vadd.f32 %v3652_v34, %v7046_v46  ;;  %v7280_v59 = vpop.permute.xlu1 %3891 }
 0x317   : > { %v3720_v9 = vadd.f32 %v7262_v50, %v3681_v28  ;;  %v3682_v43 = vadd.f32 %v3650_v20, %v7048_v8 }
 0x318   : > { %v3946_v60 = vmul.f32 %v3797_v11, %v3722_v0  ;;  %v3723_v51 = vadd.f32 %v7262_v50, %v3684_v24 }
 0x319   : > { %v3944_v39 = vmul.f32 %v3787_v45, %v3720_v9  ;;  %v3721_v1 = vadd.f32 %v7262_v50, %v3682_v43  ;;  %v5321_v15 = vpop.f32.mrb[36].mxu1 }
 0x31a   : > { %v3947_v27 = vmul.f32 %v3802_v13, %v3723_v51  ;;  %v3655_v49 = vmul.f32 %v5321_v15, %v7172_v17  ;;  %v3346_v19 = vpop.f32.mrb[37].mxu1  ;;  %v3978_v8 = vmax.f32 %v3946_v60, 0.0 }
 0x31b   : > { %v3945_v46 = vmul.f32 %v3792_v56, %v3721_v1  ;;  %v3653_v34 = vmul.f32 %v7158_v33, %v3346_v19  ;;  %v5322_v12 = vpop.f32.mrb[38].mxu1  ;;  %v3976_v45 = vmax.f32 %v3944_v39, 0.0  ;;  %v7289_v33 = vpop.permute.xlu0 %3896 }
 0x31c   : > { %v3979_v0 = vmax.f32 %v3947_v27, 0.0  ;;  %v3687_v24 = vadd.f32 %v3655_v49, %v7060_v29  ;;  %v3656_v11 = vmul.f32 %v5322_v12, %v7180_v40  ;;  %v3349_v9 = vpop.f32.mrb[39].mxu1  ;;  %v7295_v39 = vpop.permute.xlu1 %3901 }
 0x31d   : > { %v3977_v28 = vmax.f32 %v3945_v46, 0.0  ;;  %v3685_v13 = vadd.f32 %v3653_v34, %v7063_v37  ;;  %v3654_v15 = vmul.f32 %v7160_v10, %v3349_v9 }
 0x31e   : > { %v4009_v17 = vpack.c.bf16 %v3979_v0, %v3978_v8  ;;  %v3726_v20 = vadd.f32 %v7262_v50, %v3687_v24  ;;  %v3688_v56 = vadd.f32 %v3656_v11, %v7066_v21 }
 0x31f   : > { %v3724_v43 = vadd.f32 %v7262_v50, %v3685_v13  ;;  %v3686_v29 = vadd.f32 %v3654_v15, %v7068_v52  ;;  %v4008_v60 = vpack.c.bf16 %v3977_v28, %v3976_v45  ;;  %v7307_v0 = vpop.permute.xlu0 %3611 }
 0x320   : > { %v3950_v40 = vmul.f32 %v7202_v22, %v3726_v20  ;;  %v3727_v51 = vadd.f32 %v7262_v50, %v3688_v56  ;;  %v7313_v45 = vpop.permute.xlu1 %3616 }
 0x321   : > { %v3948_v37 = vmul.f32 %v7198_v36, %v3724_v43  ;;  %v3725_v10 = vadd.f32 %v7262_v50, %v3686_v29  ;;  %v5325_v1 = vpop.f32.mrb[40].mxu1  ;;  %5349 = vmatprep.mubr.msk.bf16.mxu0 %vm944_vm1, %v4008_v60 }
 0x322   : > { %v3951_v21 = vmul.f32 %v7204_v58, %v3727_v51  ;;  %v3659_v27 = vmul.f32 %v5325_v1, %v7208_v61  ;;  %v3362_v49 = vpop.f32.mrb[41].mxu1  ;;  %5350 = vmatmul.mubr.msk.bf16.vlgmr.msra.gmra.mrb[80].mxu0 %vm944_vm1, %v4009_v17  ;;  %v3982_v46 = vmax.f32 %v3950_v40, 0.0 }
 0x323   : > { %v3949_v52 = vmul.f32 %v7200_v31, %v3725_v10  ;;  %v3657_v22 = vmul.f32 %v7183_v57, %v3362_v49  ;;  %v5326_v19 = vpop.f32.mrb[42].mxu1  ;;  %v3980_v58 = vmax.f32 %v3948_v37, 0.0 }
 0x324   : > { %v3983_v34 = vmax.f32 %v3951_v21, 0.0  ;;  %v3691_v36 = vadd.f32 %v3659_v27, %v7081_v4  ;;  %v3660_v12 = vmul.f32 %v5326_v19, %v7210_v5  ;;  %v3365_v8 = vpop.f32.mrb[43].mxu1 }
 0x325   : > { %v3981_v24 = vmax.f32 %v3949_v52, 0.0  ;;  %v3689_v61 = vadd.f32 %v3657_v22, %v7085_v32  ;;  %v3658_v11 = vmul.f32 %v7206_v35, %v3365_v8 }
 0x326   : > { %v3730_v31 = vadd.f32 %v7262_v50, %v3691_v36  ;;  %v3692_v57 = vadd.f32 %v3660_v12, %v7089_v62  ;;  %v4011_v9 = vpack.c.bf16 %v3983_v34, %v3982_v46 }
 0x327   : > { %v3728_v4 = vadd.f32 %v7262_v50, %v3689_v61  ;;  %v3690_v5 = vadd.f32 %v3658_v11, %v7092_v44  ;;  %v4010_v28 = vpack.c.bf16 %v3981_v24, %v3980_v58  ;;  %v7325_v44 = vpop.permute.xlu0 %3621  ;;  %v7654_v61 = vld [vmem:[#allocation19_spill] sm:$0xff] }
 0x328   : > { %v3954_v13 = vmul.f32 %v7216_v3, %v3730_v31  ;;  %v3731_v15 = vadd.f32 %v7262_v50, %v3692_v57 }
 0x329   : > { %v3952_v32 = vmul.f32 %v7212_v7, %v3728_v4  ;;  %v3729_v35 = vadd.f32 %v7262_v50, %v3690_v5  ;;  %v5329_v17 = vpop.f32.mrb[44].mxu1  ;;  %5353 = vmatprep.mubr.msk.bf16.mxu0 %vm944_vm1, %v4010_v28  ;;  %v7656_v4 = vld [vmem:[#allocation18_spill] sm:$0xff] }
 0x32a   : > { %v3955_v62 = vmul.f32 %v7218_v18, %v3731_v15  ;;  %v3663_v20 = vmul.f32 %v5329_v17, %v7224_v47  ;;  %v3378_v56 = vpop.f32.mrb[45].mxu1  ;;  %5354 = vmatmul.mubr.msk.bf16.gmra.mrb[84].mxu0 %vm944_vm1, %v4011_v9  ;;  %v3986_v7 = vmax.f32 %v3954_v13, 0.0  ;;  %v7331_v18 = vpop.permute.xlu1 %3626  ;;  %v7657_v13 = vld [vmem:[#allocation12_spill] sm:$0xff] }
 0x32b   : > { %v3953_v3 = vmul.f32 %v7214_v26, %v3729_v35  ;;  %v3661_v43 = vmul.f32 %v7220_v23, %v3378_v56  ;;  %v5330_v29 = vpop.f32.mrb[46].mxu1  ;;  %v3984_v47 = vmax.f32 %v3952_v32, 0.0  ;;  %v7341_v19 = vpop.permute.xlu0 %3906  ;;  %v7658_v35 = vld [vmem:[#allocation13_spill] sm:$0xff] }
 0x32c   : > { %v3987_v60 = vmax.f32 %v3955_v62, 0.0  ;;  %v3695_v40 = vadd.f32 %v3663_v20, %v7105_v25  ;;  %v3664_v51 = vmul.f32 %v5330_v29, %v7226_v55  ;;  %v3381_v37 = vpop.f32.mrb[47].mxu1  ;;  %v7659_v62 = vld [vmem:[#allocation22_spill] sm:$0xff] }
 0x32d   : > { %v3985_v10 = vmax.f32 %v3953_v3, 0.0  ;;  %v3693_v1 = vadd.f32 %v3661_v43, %v7109_v53  ;;  %v3662_v21 = vmul.f32 %v7222_v41, %v3381_v37  ;;  %v7660_v43 = vld [vmem:[#allocation20_spill] sm:$0xff]  ;;  %v7662_v37 = vld [vmem:[#allocation26_spill] sm:$0xff] }
 0x32e   : > { %v3734_v26 = vadd.f32 %v7262_v50, %v3695_v40  ;;  %v3696_v23 = vadd.f32 %v3664_v51, %v7113_v54  ;;  %v4013_v27 = vpack.c.bf16 %v3987_v60, %v3986_v7  ;;  %v7661_v40 = vld [vmem:[#allocation23_spill] sm:$0xff] }
 0x32f   : > { %v3732_v49 = vadd.f32 %v7262_v50, %v3693_v1  ;;  %v3694_v25 = vadd.f32 %v3662_v21, %v7116_v2  ;;  %v4012_v52 = vpack.c.bf16 %v3985_v10, %v3984_v47  ;;  %v7349_v2 = vpop.permute.xlu1 %3911  ;;  %v7663_v1 = vld [vmem:[#allocation21_spill] sm:$0xff] }
 0x330   : > { %v3958_v55 = vmul.f32 %v7232_v48, %v3734_v26  ;;  %v3735_v22 = vadd.f32 %v7262_v50, %v3696_v23  ;;  %v7664_v26 = vld [vmem:[#allocation24_spill] sm:$0xff] }
 0x331   : > { %v3956_v53 = vmul.f32 %v7228_v42, %v3732_v49  ;;  %v3733_v41 = vadd.f32 %v7262_v50, %v3694_v25  ;;  %v5333_v46 = vpop.f32.mrb[48].mxu1  ;;  %5357 = vmatprep.mubr.msk.bf16.mxu0 %vm944_vm1, %v4012_v52  ;;  %v7665_v52 = vld [vmem:[#allocation14_spill] sm:$0xff] }
 0x332   : > { %v3959_v54 = vmul.f32 %v7234_v30, %v3735_v22  ;;  %v3667_v34 = vmul.f32 %v5333_v46, %v7240_v63  ;;  %v3394_v36 = vpop.f32.mrb[49].mxu1  ;;  %5358 = vmatmul.mubr.msk.bf16.gmra.mrb[88].mxu0 %vm944_vm1, %v4013_v27  ;;  %v3990_v42 = vmax.f32 %v3958_v55, 0.0  ;;  %v7655_v63 = vld [vmem:[#allocation11_spill] sm:$0xff] }
 0x333   : > { %v3957_v48 = vmul.f32 %v7230_v16, %v3733_v41  ;;  %v3665_v12 = vmul.f32 %v7236_v6, %v3394_v36  ;;  %v5334_v8 = vpop.f32.mrb[50].mxu1  ;;  %v3988_v30 = vmax.f32 %v3956_v53, 0.0  ;;  %v7359_v6 = vpop.permute.xlu0 %3916  ;;  %v7666_v22 = vld [vmem:[#allocation27_spill] sm:$0xff]  ;;  %v7667_v36 = vld [vmem:[#allocation4_spill] sm:$0xff] }
 0x334   : > { %v3991_v58 = vmax.f32 %v3959_v54, 0.0  ;;  %v3699_v24 = vadd.f32 %v3667_v34, %v7123_v38  ;;  %v3668_v11 = vmul.f32 %v5334_v8, %v7654_v61  ;;  %v3397_v31 = vpop.f32.mrb[51].mxu1  ;;  %v7365_v3 = vpop.permute.xlu1 %3921 }
 0x335   : > { %v3989_v57 = vmax.f32 %v3957_v48, 0.0  ;;  %v3697_v9 = vadd.f32 %v3665_v12, %v7655_v63  ;;  %v3666_v5 = vmul.f32 %v7656_v4, %v3397_v31  ;;  %v7668_v12 = vld [vmem:[#allocation25_spill] sm:$0xff] }
 0x336   : > { %v3738_v28 = vadd.f32 %v7262_v50, %v3699_v24  ;;  %v3700_v16 = vadd.f32 %v3668_v11, %v7657_v13  ;;  %v4015_v15 = vpack.c.bf16 %v3991_v58, %v3990_v42  ;;  %v7669_v58 = vld [vmem:[#allocation3_spill] sm:$0xff] }
 0x337   : > { %v3736_v32 = vadd.f32 %v7262_v50, %v3697_v9  ;;  %v3698_v38 = vadd.f32 %v3666_v5, %v7658_v35  ;;  %v4014_v17 = vpack.c.bf16 %v3989_v57, %v3988_v30  ;;  %v3632_v46 = vpop.permute.xlu0 %3631  ;;  %v7670_v30 = vld [vmem:[#allocation15_spill] sm:$0xff] }
 0x338   : > { %v3962_v20 = vmul.f32 %v7659_v62, %v3738_v28  ;;  %v3739_v56 = vadd.f32 %v7262_v50, %v3700_v16  ;;  %v3637_v11 = vpop.permute.xlu1 %3636 }
 0x339   : > { %v3960_v29 = vmul.f32 %v7660_v43, %v3736_v32  ;;  %v3737_v7 = vadd.f32 %v7262_v50, %v3698_v38  ;;  %v5337_v60 = vpop.f32.mrb[52].mxu1  ;;  %5361 = vmatprep.mubr.msk.bf16.mxu0 %vm944_vm1, %v4014_v17 }
 0x33a   : > { %v3963_v51 = vmul.f32 %v7661_v40, %v3739_v56  ;;  %v3671_v47 = vmul.f32 %v5337_v60, %v7662_v37  ;;  %v3410_v10 = vpop.f32.mrb[53].mxu1  ;;  %5362 = vmatmul.mubr.msk.bf16.gmra.mrb[92].mxu0 %vm944_vm1, %v4015_v15  ;;  %v3994_v49 = vmax.f32 %v3962_v20, 0.0  ;;  %v7671_v20 = vld [vmem:[#allocation8_spill] sm:$0xff] }
 0x33b   : > { %v3961_v21 = vmul.f32 %v7663_v1, %v3737_v7  ;;  %v3669_v23 = vmul.f32 %v7664_v26, %v3410_v10  ;;  %v5338_v27 = vpop.f32.mrb[54].mxu1  ;;  %v3992_v54 = vmax.f32 %v3960_v29, 0.0  ;;  %v3642_v35 = vpop.permute.xlu0 %3641  ;;  %v7674_v1 = vld [vmem:[#allocation5_spill] sm:$0xff] }
 0x33c   : > { %v3995_v25 = vmax.f32 %v3963_v51, 0.0  ;;  %v3703_v55 = vadd.f32 %v3671_v47, %v7665_v52  ;;  %v3672_v53 = vmul.f32 %v5338_v27, %v7666_v22  ;;  %v3413_v41 = vpop.f32.mrb[55].mxu1  ;;  %v3647_v7 = vpop.permute.xlu1 %3646 }
 0x33d   : > { %v3993_v34 = vmax.f32 %v3961_v21, 0.0  ;;  %v3701_v48 = vadd.f32 %v3669_v23, %v7667_v36  ;;  %v3670_v8 = vmul.f32 %v7668_v12, %v3413_v41 }
 0x33e   : > { %v3742_v42 = vadd.f32 %v7262_v50, %v3703_v55  ;;  %v3704_v24 = vadd.f32 %v3672_v53, %v7669_v58  ;;  %v4017_v61 = vpack.c.bf16 %v3995_v25, %v3994_v49 }
 0x33f   : > { %v3740_v31 = vadd.f32 %v7262_v50, %v3701_v48  ;;  %v3702_v57 = vadd.f32 %v3670_v8, %v7670_v30  ;;  %v4016_v63 = vpack.c.bf16 %v3993_v34, %v3992_v54  ;;  %v3927_v27 = vpop.permute.xlu0 %3926  ;;  %v7675_v48 = vld [vmem:[#allocation10_spill] sm:$0xff]  ;;  %v7677_v30 = vld [vmem:[#allocation9_spill] sm:$0xff] }
 0x340   : > { %v3966_v9 = vmul.f32 %v7289_v33, %v3742_v42  ;;  %v3743_v4 = vadd.f32 %v7262_v50, %v3704_v24  ;;  %v3932_v53 = vpop.permute.xlu1 %3931  ;;  %v7676_v24 = vld [vmem:[#allocation16_spill] sm:$0xff] }
 0x341   : > { %v3964_v5 = vmul.f32 %v7276_v14, %v3740_v31  ;;  %v3741_v28 = vadd.f32 %v7262_v50, %v3702_v57  ;;  %v5341_v13 = vpop.f32.mrb[56].mxu1  ;;  %5365 = vmatprep.mubr.msk.bf16.mxu0 %vm944_vm1, %v4016_v63 }
 0x342   : > { %v3967_v16 = vmul.f32 %v7295_v39, %v3743_v4  ;;  %v3675_v15 = vmul.f32 %v5341_v13, %v7325_v44  ;;  %v3426_v32 = vpop.f32.mrb[57].mxu1  ;;  %5366 = vmatmul.mubr.msk.bf16.gmra.mrb[96].mxu0 %vm944_vm1, %v4017_v61  ;;  %v3998_v62 = vmax.f32 %v3966_v9, 0.0  ;;  %v7672_v44 = vld [vmem:[#allocation6_spill] sm:$0xff] }
 0x343   : > { %v3965_v38 = vmul.f32 %v7280_v59, %v3741_v28  ;;  %v3673_v33 = vmul.f32 %v7307_v0, %v3426_v32  ;;  %v5342_v17 = vpop.f32.mrb[58].mxu1  ;;  %v3996_v39 = vmax.f32 %v3964_v5, 0.0  ;;  %v7673_v59 = vld [vmem:[#allocation7_spill] sm:$0xff]  ;;  %v3937_v9 = vpop.permute.xlu0 %3936 }
 0x344   : > { %v3999_v14 = vmax.f32 %v3967_v16, 0.0  ;;  %v3707_v56 = vadd.f32 %v3675_v15, %v7671_v20  ;;  %v3676_v43 = vmul.f32 %v5342_v17, %v7331_v18  ;;  %v3429_v29 = vpop.f32.mrb[59].mxu1  ;;  %v3942_v16 = vpop.permute.xlu1 %3941 }
 0x345   : > { %v3997_v60 = vmax.f32 %v3965_v38, 0.0  ;;  %v3705_v40 = vadd.f32 %v3673_v33, %v7672_v44  ;;  %v3674_v51 = vmul.f32 %v7313_v45, %v3429_v29 }
 0x346   : > { %v3746_v37 = vadd.f32 %v7262_v50, %v3707_v56  ;;  %v3708_v47 = vadd.f32 %v3676_v43, %v7673_v59  ;;  %v4019_v0 = vpack.c.bf16 %v3999_v14, %v3998_v62  ;;  %v7430_v59 = vld [vmem:[%s7606_s6] ss:$0 sm:$0xff] }
 0x347   : > { %v3744_v10 = vadd.f32 %v7262_v50, %v3705_v40  ;;  %v3706_v21 = vadd.f32 %v3674_v51, %v7674_v1  ;;  %v4018_v26 = vpack.c.bf16 %v3997_v60, %v3996_v39  ;;  %v4279_v56 = vpop.permute.xlu0 %4278 }
 0x348   : > { %v3970_v18 = vmul.f32 %v7359_v6, %v3746_v37  ;;  %v3747_v23 = vadd.f32 %v7262_v50, %v3708_v47  ;;  %v4284_v43 = vpop.permute.xlu1 %4283 }
 0x349   : > { %v3968_v49 = vmul.f32 %v7341_v19, %v3744_v10  ;;  %v3745_v25 = vadd.f32 %v7262_v50, %v3706_v21  ;;  %v5345_v45 = vpop.f32.mrb[60].mxu1  ;;  %5369 = vmatprep.mubr.msk.bf16.mxu0 %vm944_vm1, %v4018_v26 }
 0x34a   : > { %v3971_v52 = vmul.f32 %v7365_v3, %v3747_v23  ;;  %v3679_v55 = vmul.f32 %v5345_v45, %v3642_v35  ;;  %v3442_v22 = vpop.f32.mrb[61].mxu1  ;;  %5370 = vmatmul.mubr.msk.bf16.gmra.mrb[100].mxu0 %vm944_vm1, %v4019_v0  ;;  %v4002_v34 = vmax.f32 %v3970_v18, 0.0 }
 0x34b   : > { %v3969_v41 = vmul.f32 %v7349_v2, %v3745_v25  ;;  %v3677_v6 = vmul.f32 %v3632_v46, %v3442_v22  ;;  %v5346_v54 = vpop.f32.mrb[62].mxu1  ;;  %v4000_v42 = vmax.f32 %v3968_v49, 0.0  ;;  %v7678_v46 = vld [vmem:[#allocation17_spill] sm:$0xff]  ;;  %v4289_v29 = vpop.permute.xlu0 %4288 }
 0x34c   : > { %v4003_v36 = vmax.f32 %v3971_v52, 0.0  ;;  %v3711_v19 = vadd.f32 %v3679_v55, %v7675_v48  ;;  %v3680_v12 = vmul.f32 %v5346_v54, %v3647_v7  ;;  %v3445_v8 = vpop.f32.mrb[63].mxu1  ;;  %v5599_v52 = vld [vmem:[%s5737_s18 + $0x10] sm:$0xff] }
 0x34d   : > { %v4001_v58 = vmax.f32 %v3969_v41, 0.0  ;;  %v3709_v61 = vadd.f32 %v3677_v6, %v7676_v24  ;;  %v3678_v3 = vmul.f32 %v3637_v11, %v3445_v8  ;;  %v5600_v41 = vld [vmem:[%s5737_s18] sm:$0xff] }
 0x34e   : > { %v3750_v31 = vadd.f32 %v7262_v50, %v3711_v19  ;;  %v3712_v57 = vadd.f32 %v3680_v12, %v7677_v30  ;;  %v4021_v63 = vpack.c.bf16 %v4003_v36, %v4002_v34  ;;  %v5601_v36 = vld [vmem:[%s5737_s18 + $0x18] sm:$0xff]  ;;  %v5602_v12 = vld [vmem:[%s5737_s18 + $0x8] sm:$0xff] }
 0x34f   : > { %v3748_v2 = vadd.f32 %v7262_v50, %v3709_v61  ;;  %v3710_v4 = vadd.f32 %v3678_v3, %v7678_v46  ;;  %v4020_v5 = vpack.c.bf16 %v4001_v58, %v4000_v42  ;;  %v4299_v7 = vpop.permute.xlu0 %4298 }
 0x350   : > { %v3974_v28 = vmul.f32 %v3937_v9, %v3750_v31  ;;  %v3751_v13 = vadd.f32 %v7262_v50, %v3712_v57 }
 0x351   : > { %v3972_v15 = vmul.f32 %v3927_v27, %v3748_v2  ;;  %v3749_v32 = vadd.f32 %v7262_v50, %v3710_v4  ;;  %5373 = vmatprep.mubr.msk.bf16.mxu0 %vm944_vm1, %v4020_v5  ;;  %v4294_v50 = vpop.permute.xlu1 %4293 }
 0x352   : > { %v3975_v11 = vmul.f32 %v3942_v16, %v3751_v13  ;;  %5374 = vmatmul.mubr.msk.bf16.gmra.mrb[104].mxu0 %vm944_vm1, %v4021_v63  ;;  %v4006_v38 = vmax.f32 %v3974_v28, 0.0  ;;  %v5603_v28 = vld [vmem:[%s5737_s18 + $0x30] sm:$0xff] }
 0x353   : > { %v3973_v35 = vmul.f32 %v3932_v53, %v3749_v32  ;;  %v4004_v17 = vmax.f32 %v3972_v15, 0.0  ;;  %v4309_v60 = vpop.permute.xlu0 %4308  ;;  %v5604_v15 = vld [vmem:[%s5737_s18 + $0x20] sm:$0xff] }
 0x354   : > { %v4007_v33 = vmax.f32 %v3975_v11, 0.0 }
 0x355   : > { %v4005_v62 = vmax.f32 %v3973_v35, 0.0  ;;  %v4304_v39 = vpop.permute.xlu1 %4303 }
 0x356   : > { %v4023_v14 = vpack.c.bf16 %v4007_v33, %v4006_v38  ;;  %v5605_v38 = vld [vmem:[%s5737_s18 + $0x38] sm:$0xff] }
 0x357   : > { %v4022_v20 = vpack.c.bf16 %v4005_v62, %v4004_v17  ;;  %v7421_v40 = vpop.permute.xlu0 %4318 }
 0x359   : > { %5377 = vmatprep.mubr.msk.bf16.mxu0 %vm944_vm1, %v4022_v20  ;;  %v4314_v44 = vpop.permute.xlu1 %4313 }
 0x35a   : > { %5378 = vmatmul.mubr.msk.bf16.gmra.mrb[108].mxu0 %vm944_vm1, %v4023_v14  ;;  %v5606_v14 = vld [vmem:[%s5737_s18 + $0x28] sm:$0xff] }
 0x35b   : > { %v7425_v37 = vpop.permute.xlu0 %4328 }
 0x35d   : > { %v7423_v51 = vpop.permute.xlu1 %4323 }
 0x35f   : > { %v7437_v49 = vpop.permute.xlu0 %4338 }
 0x361   : > { %v7432_v47 = vpop.permute.xlu1 %4333 }
 0x363   : > { %v7456_v3 = vpop.permute.xlu0 %4348 }
 0x365   : > { %v7448_v53 = vpop.permute.xlu1 %4343 }
 0x367   : > { %v7472_v17 = vpop.permute.xlu0 %4358 }
 0x369   : > { %v7464_v46 = vpop.permute.xlu1 %4353 }
 0x3f5   : > { %v5351_v0 = vpop.f32.mrb[80].mxu0 }
 0x3f6   : > { %v4126_v10 = vadd.f32 %v5351_v0, %v7430_v59  ;;  %v4117_v1 = vpop.f32.mrb[81].mxu0 }
 0x3f7   : > { %v4118_v21 = vadd.f32 %v7430_v59, %v4117_v1  ;;  %v5352_v26 = vpop.f32.mrb[82].mxu0 }
 0x3f8   : > { %v4438_v18 = vmul.f32 %v4289_v29, %v4126_v10  ;;  %v4129_v23 = vadd.f32 %v5352_v26, %v7430_v59  ;;  %v4120_v27 = vpop.f32.mrb[83].mxu0 }
 0x3f9   : > { %v4436_v25 = vmul.f32 %v4279_v56, %v4118_v21  ;;  %v4121_v45 = vadd.f32 %v7430_v59, %v4120_v27 }
 0x3fa   : > { %v4470_v55 = vadd.f32 %v5599_v52, %v4438_v18  ;;  %v4439_v22 = vmul.f32 %v4294_v50, %v4129_v23  ;;  %v5607_v18 = vld [vmem:[%s5737_s18 + $0x50] sm:$0xff] }
 0x3fb   : > { %v4468_v6 = vadd.f32 %v5600_v41, %v4436_v25  ;;  %v4437_v54 = vmul.f32 %v4284_v43, %v4121_v45  ;;  %v4369_v25 = vpop.permute.xlu0 %4368  ;;  %v5608_v45 = vld [vmem:[%s5737_s18 + $0x40] sm:$0xff] }
 0x3fc   : > { %v4502_v34 = vmax.f32 %v4470_v55, 0.0  ;;  %v4471_v48 = vadd.f32 %v5601_v36, %v4439_v22  ;;  %v5609_v22 = vld [vmem:[%s5737_s18 + $0x58] sm:$0xff] }
 0x3fd   : > { %v4500_v19 = vmax.f32 %v4468_v6, 0.0  ;;  %v4469_v8 = vadd.f32 %v5602_v12, %v4437_v54  ;;  %v5355_v42 = vpop.f32.mrb[84].mxu0 }
 0x3fe   : > { %4534 = vst.msk [vmem:[%s7446_s25 + $0x10] sm:$0xff] %vm478_vm0, %v4502_v34  ;;  %v4503_v58 = vmax.f32 %v4471_v48, 0.0  ;;  %v4142_v24 = vadd.f32 %v5355_v42, %v7430_v59  ;;  %v4133_v61 = vpop.f32.mrb[85].mxu0 }
 0x3ff   : > { %4532 = vst.msk [vmem:[%s7446_s25] sm:$0xff] %vm478_vm0, %v4500_v19  ;;  %v4501_v31 = vmax.f32 %v4469_v8, 0.0  ;;  %v4134_v30 = vadd.f32 %v7430_v59, %v4133_v61  ;;  %v5356_v57 = vpop.f32.mrb[86].mxu0  ;;  %v7507_v61 = vpop.permute.xlu0 %4378 }
 0x400   : > { %4535 = vst.msk [vmem:[%s7446_s25 + $0x18] sm:$0xff] %vm478_vm0, %v4503_v58  ;;  %v4442_v63 = vmul.f32 %v4309_v60, %v4142_v24  ;;  %v4145_v9 = vadd.f32 %v5356_v57, %v7430_v59  ;;  %v4136_v2 = vpop.f32.mrb[87].mxu0  ;;  %v5611_v57 = vld [vmem:[%s5737_s18 + $0x70] sm:$0xff] }
 0x401   : > { %4533 = vst.msk [vmem:[%s7446_s25 + $0x8] sm:$0xff] %vm478_vm0, %v4501_v31  ;;  %v4440_v4 = vmul.f32 %v4299_v7, %v4134_v30  ;;  %v4137_v5 = vadd.f32 %v7430_v59, %v4136_v2  ;;  %v7478_v7 = vpop.permute.xlu1 %4363 }
 0x402   : > { %v4474_v13 = vadd.f32 %v5603_v28, %v4442_v63  ;;  %v4443_v16 = vmul.f32 %v4314_v44, %v4145_v9 }
 0x403   : > { %v4472_v32 = vadd.f32 %v5604_v15, %v4440_v4  ;;  %v4441_v11 = vmul.f32 %v4304_v39, %v4137_v5 }
 0x404   : > { %v4506_v35 = vmax.f32 %v4474_v13, 0.0  ;;  %v4475_v33 = vadd.f32 %v5605_v38, %v4443_v16  ;;  %v5613_v13 = vld [vmem:[%s5737_s18 + $0x78] sm:$0xff] }
 0x405   : > { %v4504_v62 = vmax.f32 %v4472_v32, 0.0  ;;  %v4473_v20 = vadd.f32 %v5606_v14, %v4441_v11  ;;  %v5359_v56 = vpop.f32.mrb[88].mxu0  ;;  %v4374_v6 = vpop.permute.xlu1 %4373 }
 0x406   : > { %4538 = vst.msk [vmem:[%s7446_s25 + $0x30] sm:$0xff] %vm478_vm0, %v4506_v35  ;;  %v4507_v43 = vmax.f32 %v4475_v33, 0.0  ;;  %v4158_v29 = vadd.f32 %v5359_v56, %v7430_v59  ;;  %v4149_v50 = vpop.f32.mrb[89].mxu0  ;;  %v4389_v33 = vpop.permute.xlu0 %4388 }
 0x407   : > { %4536 = vst.msk [vmem:[%s7446_s25 + $0x20] sm:$0xff] %vm478_vm0, %v4504_v62  ;;  %v4505_v39 = vmax.f32 %v4473_v20, 0.0  ;;  %v4150_v60 = vadd.f32 %v7430_v59, %v4149_v50  ;;  %v5360_v44 = vpop.f32.mrb[90].mxu0 }
 0x408   : > { %4539 = vst.msk [vmem:[%s7446_s25 + $0x38] sm:$0xff] %vm478_vm0, %v4507_v43  ;;  %v4446_v0 = vmul.f32 %v7425_v37, %v4158_v29  ;;  %v4161_v10 = vadd.f32 %v5360_v44, %v7430_v59  ;;  %v4152_v1 = vpop.f32.mrb[91].mxu0 }
 0x409   : > { %4537 = vst.msk [vmem:[%s7446_s25 + $0x28] sm:$0xff] %vm478_vm0, %v4505_v39  ;;  %v4444_v21 = vmul.f32 %v7421_v40, %v4150_v60  ;;  %v4153_v26 = vadd.f32 %v7430_v59, %v4152_v1  ;;  %v5610_v40 = vld [vmem:[%s5737_s18 + $0x48] sm:$0xff]  ;;  %v7515_v2 = vpop.permute.xlu1 %4383  ;;  %v5615_v60 = vld [vmem:[%s5737_s18 + $0x90] sm:$0xff] }
 0x40a   : > { %v4478_v23 = vadd.f32 %v5607_v18, %v4446_v0  ;;  %v4447_v27 = vmul.f32 %v7432_v47, %v4161_v10  ;;  %v5616_v10 = vld [vmem:[%s5737_s18 + $0x80] sm:$0xff]  ;;  %v5617_v18 = vld [vmem:[%s5737_s18 + $0x98] sm:$0xff] }
 0x40b   : > { %v4476_v52 = vadd.f32 %v5608_v45, %v4444_v21  ;;  %v4445_v37 = vmul.f32 %v7423_v51, %v4153_v26  ;;  %v5618_v45 = vld [vmem:[%s5737_s18 + $0x88] sm:$0xff] }
 0x40c   : > { %v4510_v55 = vmax.f32 %v4478_v23, 0.0  ;;  %v4479_v41 = vadd.f32 %v5609_v22, %v4447_v27  ;;  %v4399_v27 = vpop.permute.xlu0 %4398 }
 0x40d   : > { %v4508_v54 = vmax.f32 %v4476_v52, 0.0  ;;  %v4477_v34 = vadd.f32 %v5610_v40, %v4445_v37  ;;  %v5363_v36 = vpop.f32.mrb[92].mxu0  ;;  %v4394_v29 = vpop.permute.xlu1 %4393 }
 0x40e   : > { %4542 = vst.msk [vmem:[%s7446_s25 + $0x50] sm:$0xff] %vm478_vm0, %v4510_v55  ;;  %v4511_v47 = vmax.f32 %v4479_v41, 0.0  ;;  %v4174_v48 = vadd.f32 %v5363_v36, %v7430_v59  ;;  %v4165_v19 = vpop.f32.mrb[93].mxu0 }
 0x40f   : > { %4540 = vst.msk [vmem:[%s7446_s25 + $0x40] sm:$0xff] %vm478_vm0, %v4508_v54  ;;  %v4509_v51 = vmax.f32 %v4477_v34, 0.0  ;;  %v4166_v12 = vadd.f32 %v7430_v59, %v4165_v19  ;;  %v5364_v8 = vpop.f32.mrb[94].mxu0  ;;  %v5619_v19 = vld [vmem:[%s5737_s18 + $0xb0] sm:$0xff] }
 0x410   : > { %4543 = vst.msk [vmem:[%s7446_s25 + $0x58] sm:$0xff] %vm478_vm0, %v4511_v47  ;;  %v4450_v42 = vmul.f32 %v7456_v3, %v4174_v48  ;;  %v4177_v58 = vadd.f32 %v5364_v8, %v7430_v59  ;;  %v4168_v24 = vpop.f32.mrb[95].mxu0  ;;  %v5612_v3 = vld [vmem:[%s5737_s18 + $0x60] sm:$0xff]  ;;  %v4409_v8 = vpop.permute.xlu0 %4408 }
 0x411   : > { %4541 = vst.msk [vmem:[%s7446_s25 + $0x48] sm:$0xff] %vm478_vm0, %v4509_v51  ;;  %v4448_v31 = vmul.f32 %v7437_v49, %v4166_v12  ;;  %v4169_v30 = vadd.f32 %v7430_v59, %v4168_v24  ;;  %v5614_v49 = vld [vmem:[%s5737_s18 + $0x68] sm:$0xff]  ;;  %v4404_v41 = vpop.permute.xlu1 %4403 }
 0x412   : > { %v4482_v63 = vadd.f32 %v5611_v57, %v4450_v42  ;;  %v4451_v9 = vmul.f32 %v7464_v46, %v4177_v58  ;;  %v5620_v42 = vld [vmem:[%s5737_s18 + $0xa0] sm:$0xff] }
 0x413   : > { %v4480_v4 = vadd.f32 %v5612_v3, %v4448_v31  ;;  %v4449_v5 = vmul.f32 %v7448_v53, %v4169_v30  ;;  %v5621_v30 = vld [vmem:[%s5737_s18 + $0xb8] sm:$0xff]  ;;  %v5622_v3 = vld [vmem:[%s5737_s18 + $0xa8] sm:$0xff] }
 0x414   : > { %v4514_v28 = vmax.f32 %v4482_v63, 0.0  ;;  %v4483_v16 = vadd.f32 %v5613_v13, %v4451_v9 }
 0x415   : > { %v4512_v15 = vmax.f32 %v4480_v4, 0.0  ;;  %v4481_v32 = vadd.f32 %v5614_v49, %v4449_v5  ;;  %v5367_v11 = vpop.f32.mrb[96].mxu0  ;;  %v4414_v63 = vpop.permute.xlu1 %4413 }
 0x416   : > { %4546 = vst.msk [vmem:[%s7446_s25 + $0x70] sm:$0xff] %vm478_vm0, %v4514_v28  ;;  %v4515_v35 = vmax.f32 %v4483_v16, 0.0  ;;  %v4190_v46 = vadd.f32 %v5367_v11, %v7430_v59  ;;  %v4181_v38 = vpop.f32.mrb[97].mxu0 }
 0x417   : > { %4544 = vst.msk [vmem:[%s7446_s25 + $0x60] sm:$0xff] %vm478_vm0, %v4512_v15  ;;  %v4513_v53 = vmax.f32 %v4481_v32, 0.0  ;;  %v4182_v62 = vadd.f32 %v7430_v59, %v4181_v38  ;;  %v5368_v14 = vpop.f32.mrb[98].mxu0 }
 0x418   : > { %4547 = vst.msk [vmem:[%s7446_s25 + $0x78] sm:$0xff] %vm478_vm0, %v4515_v35  ;;  %v4454_v20 = vmul.f32 %v4369_v25, %v4190_v46  ;;  %v4193_v56 = vadd.f32 %v5368_v14, %v7430_v59  ;;  %v4184_v43 = vpop.f32.mrb[99].mxu0  ;;  %v4419_v35 = vpop.permute.xlu0 %4418 }
 0x419   : > { %4545 = vst.msk [vmem:[%s7446_s25 + $0x68] sm:$0xff] %vm478_vm0, %v4513_v53  ;;  %v4452_v50 = vmul.f32 %v7472_v17, %v4182_v62  ;;  %v4185_v39 = vadd.f32 %v7430_v59, %v4184_v43  ;;  %v4424_v14 = vpop.permute.xlu1 %4423 }
 0x41a   : > { %v4486_v44 = vadd.f32 %v5615_v60, %v4454_v20  ;;  %v4455_v0 = vmul.f32 %v4374_v6, %v4193_v56  ;;  %v5624_v20 = vld [vmem:[%s5737_s18 + $0xc0] sm:$0xff] }
 0x41b   : > { %v4484_v1 = vadd.f32 %v5616_v10, %v4452_v50  ;;  %v4453_v21 = vmul.f32 %v7478_v7, %v4185_v39  ;;  %v5625_v50 = vld [vmem:[%s5737_s18 + $0xd8] sm:$0xff] }
 0x41c   : > { %v4518_v26 = vmax.f32 %v4486_v44, 0.0  ;;  %v4487_v23 = vadd.f32 %v5617_v18, %v4455_v0  ;;  %v5626_v44 = vld [vmem:[%s5737_s18 + $0xc8] sm:$0xff]  ;;  %v4429_v18 = vpop.permute.xlu0 %4428 }
 0x41d   : > { %v4516_v25 = vmax.f32 %v4484_v1, 0.0  ;;  %v4485_v17 = vadd.f32 %v5618_v45, %v4453_v21  ;;  %v5371_v52 = vpop.f32.mrb[100].mxu0 }
 0x41e   : > { %4550 = vst.msk [vmem:[%s7446_s25 + $0x90] sm:$0xff] %vm478_vm0, %v4518_v26  ;;  %v4519_v37 = vmax.f32 %v4487_v23, 0.0  ;;  %v4206_v55 = vadd.f32 %v5371_v52, %v7430_v59  ;;  %v4197_v22 = vpop.f32.mrb[101].mxu0 }
 0x41f   : > { %4548 = vst.msk [vmem:[%s7446_s25 + $0x80] sm:$0xff] %vm478_vm0, %v4516_v25  ;;  %v4517_v7 = vmax.f32 %v4485_v17, 0.0  ;;  %v4198_v6 = vadd.f32 %v7430_v59, %v4197_v22  ;;  %v5372_v54 = vpop.f32.mrb[102].mxu0 }
 0x420   : > { %4551 = vst.msk [vmem:[%s7446_s25 + $0x98] sm:$0xff] %vm478_vm0, %v4519_v37  ;;  %v4458_v40 = vmul.f32 %v4389_v33, %v4206_v55  ;;  %v4209_v34 = vadd.f32 %v5372_v54, %v7430_v59  ;;  %v4200_v36 = vpop.f32.mrb[103].mxu0  ;;  %v5623_v33 = vld [vmem:[%s5737_s18 + $0xd0] sm:$0xff]  ;;  %v4434_v37 = vpop.permute.xlu1 %4433  ;;  %v5628_v54 = vld [vmem:[%s5737_s18 + $0xe0] sm:$0xff] }
 0x421   : > { %4549 = vst.msk [vmem:[%s7446_s25 + $0x88] sm:$0xff] %vm478_vm0, %v4517_v7  ;;  %v4456_v47 = vmul.f32 %v7507_v61, %v4198_v6  ;;  %v4201_v48 = vadd.f32 %v7430_v59, %v4200_v36 }
 0x422   : > { %v4490_v51 = vadd.f32 %v5619_v19, %v4458_v40  ;;  %v4459_v12 = vmul.f32 %v4394_v29, %v4209_v34 }
 0x423   : > { %v4488_v58 = vadd.f32 %v5620_v42, %v4456_v47  ;;  %v4457_v24 = vmul.f32 %v7515_v2, %v4201_v48  ;;  %v5629_v47 = vld [vmem:[%s5737_s18 + $0xf8] sm:$0xff] }
 0x424   : > { %v4522_v31 = vmax.f32 %v4490_v51, 0.0  ;;  %v4491_v57 = vadd.f32 %v5621_v30, %v4459_v12  ;;  %v5630_v51 = vld [vmem:[%s5737_s18 + $0xe8] sm:$0xff] }
 0x425   : > { %v4520_v9 = vmax.f32 %v4488_v58, 0.0  ;;  %v4489_v61 = vadd.f32 %v5622_v3, %v4457_v24  ;;  %v5375_v4 = vpop.f32.mrb[104].mxu0 }
 0x426   : > { %4554 = vst.msk [vmem:[%s7446_s25 + $0xb0] sm:$0xff] %vm478_vm0, %v4522_v31  ;;  %v4523_v5 = vmax.f32 %v4491_v57, 0.0  ;;  %v4222_v28 = vadd.f32 %v5375_v4, %v7430_v59  ;;  %v4213_v13 = vpop.f32.mrb[105].mxu0 }
 0x427   : > { %4552 = vst.msk [vmem:[%s7446_s25 + $0xa0] sm:$0xff] %vm478_vm0, %v4520_v9  ;;  %v4521_v2 = vmax.f32 %v4489_v61, 0.0  ;;  %v4214_v16 = vadd.f32 %v7430_v59, %v4213_v13  ;;  %v5376_v15 = vpop.f32.mrb[106].mxu0 }
 0x428   : > { %4555 = vst.msk [vmem:[%s7446_s25 + $0xb8] sm:$0xff] %vm478_vm0, %v4523_v5  ;;  %v4462_v49 = vmul.f32 %v4409_v8, %v4222_v28  ;;  %v4225_v32 = vadd.f32 %v5376_v15, %v7430_v59  ;;  %v4216_v11 = vpop.f32.mrb[107].mxu0 }
 0x429   : > { %4553 = vst.msk [vmem:[%s7446_s25 + $0xa8] sm:$0xff] %vm478_vm0, %v4521_v2  ;;  %v4460_v46 = vmul.f32 %v4399_v27, %v4214_v16  ;;  %v4217_v38 = vadd.f32 %v7430_v59, %v4216_v11 }
 0x42a   : > { %v4494_v53 = vadd.f32 %v5623_v33, %v4462_v49  ;;  %v4463_v62 = vmul.f32 %v4414_v63, %v4225_v32 }
 0x42b   : > { %v4492_v56 = vadd.f32 %v5624_v20, %v4460_v46  ;;  %v4461_v43 = vmul.f32 %v4404_v41, %v4217_v38  ;;  %v5627_v41 = vld [vmem:[%s5737_s18 + $0xf0] sm:$0xff] }
 0x42c   : > { %v4526_v29 = vmax.f32 %v4494_v53, 0.0  ;;  %v4495_v39 = vadd.f32 %v5625_v50, %v4463_v62 }
 0x42d   : > { %v4524_v60 = vmax.f32 %v4492_v56, 0.0  ;;  %v4493_v0 = vadd.f32 %v5626_v44, %v4461_v43  ;;  %v5379_v10 = vpop.f32.mrb[108].mxu0 }
 0x42e   : > { %4558 = vst.msk [vmem:[%s7446_s25 + $0xd0] sm:$0xff] %vm478_vm0, %v4526_v29  ;;  %v4527_v1 = vmax.f32 %v4495_v39, 0.0  ;;  %v4238_v21 = vadd.f32 %v5379_v10, %v7430_v59  ;;  %v4229_v26 = vpop.f32.mrb[109].mxu0 }
 0x42f   : > { %4556 = vst.msk [vmem:[%s7446_s25 + $0xc0] sm:$0xff] %vm478_vm0, %v4524_v60  ;;  %v4525_v23 = vmax.f32 %v4493_v0, 0.0  ;;  %v4230_v27 = vadd.f32 %v7430_v59, %v4229_v26  ;;  %v5380_v25 = vpop.f32.mrb[110].mxu0 }
 0x430   : > { %4559 = vst.msk [vmem:[%s7446_s25 + $0xd8] sm:$0xff] %vm478_vm0, %v4527_v1  ;;  %v4466_v45 = vmul.f32 %v4429_v18, %v4238_v21  ;;  %v4241_v17 = vadd.f32 %v5380_v25, %v7430_v59  ;;  %v4232_v52 = vpop.f32.mrb[111].mxu0 }
 0x431   : > { %4557 = vst.msk [vmem:[%s7446_s25 + $0xc8] sm:$0xff] %vm478_vm0, %v4525_v23  ;;  %v4464_v55 = vmul.f32 %v4419_v35, %v4230_v27  ;;  %v4233_v22 = vadd.f32 %v7430_v59, %v4232_v52 }
 0x432   : > { %v4498_v7 = vadd.f32 %v5627_v41, %v4466_v45  ;;  %v4467_v6 = vmul.f32 %v4434_v37, %v4241_v17 }
 0x433   : > { %v4496_v40 = vadd.f32 %v5628_v54, %v4464_v55  ;;  %v4465_v34 = vmul.f32 %v4424_v14, %v4233_v22 }
 0x434   : > { %v4530_v36 = vmax.f32 %v4498_v7, 0.0  ;;  %v4499_v48 = vadd.f32 %v5629_v47, %v4467_v6 }
 0x435   : > { %v4528_v19 = vmax.f32 %v4496_v40, 0.0  ;;  %v4497_v12 = vadd.f32 %v5630_v51, %v4465_v34 }
 0x436   : > { %4562 = vst.msk [vmem:[%s7446_s25 + $0xf0] sm:$0xff] %vm478_vm0, %v4530_v36  ;;  %v4531_v8 = vmax.f32 %v4499_v48, 0.0 }
 0x437   : > { %4560 = vst.msk [vmem:[%s7446_s25 + $0xe0] sm:$0xff] %vm478_vm0, %v4528_v19  ;;  %v4529_v59 = vmax.f32 %v4497_v12, 0.0 }
 0x438   : > { %4563 = vst.msk [vmem:[%s7446_s25 + $0xf8] sm:$0xff] %vm478_vm0, %v4531_v8 }
 0x439   : > { %4561 = vst.msk [vmem:[%s7446_s25 + $0xe8] sm:$0xff] %vm478_vm0, %v4529_v59 }
 0x43a PF: > { %s22_s21 = sadd.s32 1, %s5637_s21  }
 0x43b   : > { %p19_p4 = scmp.ge.s32.totalorder %s22_s21, 4  }
 0x43d   :  { %21 = sbr.rel (!%p19_p4) target bundleno = 1 (0x1), region = 106 }

</bundles_post_ra>
